<compile_context>
chip_gen: v5e
topology: v5e:2x2
jax: 0.10.0
libtpu: 0.0.40
codegen_flags: <defaults>
</compile_context>

<pallas_src>
import numpy as np
import jax
import jax.numpy as jnp
from jax import lax
from jax.experimental import pallas as pl
from jax.experimental.pallas import tpu as pltpu


# ----------------------------------------------------------------------------
# fused kernel (one grid step == one image; fully static straight-line body)
# ----------------------------------------------------------------------------
def _autoencoder_kernel(xp_ref,
                        a1_ref, b1_ref, a2_ref, b2_ref, a3_ref, b3_ref,
                        w1c_ref, w1n_ref, c1_ref,
                        w2c_ref, w2n_ref, c2_ref,
                        w3c_ref, w3n_ref, c3_ref,
                        comp_ref, recon_ref,
                        s2_ref, s3_ref):
    f32 = jnp.float32

    def mm(a, b):
        return jnp.dot(a, b, preferred_element_type=f32)

    def conv_down(src_ref, a_ref, b_ref):
        # Conv2d(k=3, s=2, p=1) + ReLU on a (H+1, W*Cin) ref whose row 0 is the
        # zero top pad.  One matmul per kernel row (M = H/2, K = W*Cin,
        # N = (W/2)*Cout); column taps / stride / column padding live in the
        # host-built block-sparse a_ref[i].
        ho = (src_ref.shape[0] - 1) // 2
        acc = mm(src_ref[pl.ds(0, ho, stride=2), :], a_ref[0])
        acc = acc + mm(src_ref[pl.ds(1, ho, stride=2), :], a_ref[1])
        acc = acc + mm(src_ref[pl.ds(2, ho, stride=2), :], a_ref[2])
        return jnp.maximum(acc + b_ref[...], 0.0)

    def deconv_up(p, wc_ref, wn_ref, c_ref, act):
        # ConvTranspose2d(k=3, s=2, p=1, output_padding=1) + activation on a
        # row-packed (hc, pin*Win*Cin) value.  The output stays row-packed with
        # pack factor 2*pin, so no row interleave / reshape is ever needed; the
        # cross-pack (kh=0) taps come from the next packed row (zero row at the
        # end supplies the out-of-range input row).
        k = p.shape[1]
        p_nxt = jnp.concatenate([p[1:, :], jnp.zeros((1, k), f32)], axis=0)
        return act(mm(p, wc_ref[...]) + mm(p_nxt, wn_ref[...]) + c_ref[...])

    relu = lambda v: jnp.maximum(v, 0.0)

    # zero only the single top-pad row of each encoder scratch (cheap, every
    # step, megacore-safe -- interiors are fully overwritten below).
    s2_ref[0:1, :] = jnp.zeros((1, s2_ref.shape[1]), f32)
    s3_ref[0:1, :] = jnp.zeros((1, s3_ref.shape[1]), f32)

    # ------------------------------ encoder ------------------------------
    y1 = conv_down(xp_ref, a1_ref, b1_ref)                 # (res/2, (res/2)*16)
    s2_ref[pl.ds(1, y1.shape[0]), :] = y1
    y2 = conv_down(s2_ref, a2_ref, b2_ref)                 # (res/4, (res/4)*32)
    s3_ref[pl.ds(1, y2.shape[0]), :] = y2
    comp = conv_down(s3_ref, a3_ref, b3_ref)                # (hc, hc*cdim)
    comp_ref[...] = comp

    # ------------------------------ decoder ------------------------------
    q1 = deconv_up(comp, w1c_ref, w1n_ref, c1_ref, relu)
    q2 = deconv_up(q1, w2c_ref, w2n_ref, c2_ref, relu)
    q3 = deconv_up(q2, w3c_ref, w3n_ref, c3_ref, jax.nn.sigmoid)
    recon_ref[...] = q3                                     # (hc, 8*res*feat)


# ----------------------------------------------------------------------------
# host-side one-time weight re-layout (block-sparse matmul matrices)
# ----------------------------------------------------------------------------
def _conv_tap_matrices(w, b, W_in):
    """Conv2d(k=3, s=2, p=1) as 3 matmuls over lane-flattened (W*Cin) rows."""
    w = np.asarray(w, np.float32)          # torch layout (Cout, Cin, 3, 3)
    b = np.asarray(b, np.float32)
    c_out, c_in = w.shape[0], w.shape[1]
    w_out = W_in // 2
    A = np.zeros((3, W_in * c_in, w_out * c_out), np.float32)
    for i in range(3):
        for wo in range(w_out):
            for j in range(3):
                u = 2 * wo + j - 1                      # unpadded input column
                if 0 <= u < W_in:                       # out-of-range = zero pad
                    A[i, u * c_in:(u + 1) * c_in,
                      wo * c_out:(wo + 1) * c_out] = w[:, :, i, j].T
    bias = np.tile(b, w_out)[None, :]
    return jnp.asarray(A), jnp.asarray(bias)


def _deconv_packed_matrices(w, b, W_in, pin):
    """ConvTranspose2d(k=3, s=2, p=1, op=1) on row-packed activations.

    Input rows packed `pin` per sublane row; output packed 2*pin per row.
    Returns (W_cur, W_nxt, bias): out = act(P @ W_cur + shift(P) @ W_nxt + bias).
    """
    w = np.asarray(w, np.float32)          # torch layout (Cin, Cout, 3, 3)
    b = np.asarray(b, np.float32)
    c_in, c_out = w.shape[0], w.shape[1]
    k0 = W_in * c_in
    n0 = 2 * W_in * c_out

    def col_matrix(kh):
        m = np.zeros((k0, n0), np.float32)
        for v in range(W_in):
            # even output column 2v: iw = v, kw = 1
            m[v * c_in:(v + 1) * c_in, (2 * v) * c_out:(2 * v + 1) * c_out] = w[:, :, kh, 1]
            # odd output column 2v+1: iw = v (kw=2) and iw = v+1 (kw=0)
            m[v * c_in:(v + 1) * c_in, (2 * v + 1) * c_out:(2 * v + 2) * c_out] = w[:, :, kh, 2]
            if v + 1 < W_in:
                m[(v + 1) * c_in:(v + 2) * c_in,
                  (2 * v + 1) * c_out:(2 * v + 2) * c_out] = w[:, :, kh, 0]
        return m

    b_mid, b_k2, b_k0 = col_matrix(1), col_matrix(2), col_matrix(0)
    pout = 2 * pin
    w_cur = np.zeros((pin * k0, pout * n0), np.float32)
    w_nxt = np.zeros((pin * k0, pout * n0), np.float32)
    for s in range(pin):
        # even output row of input row s: kh = 1
        w_cur[s * k0:(s + 1) * k0, (2 * s) * n0:(2 * s + 1) * n0] = b_mid
        # odd output row of input row s: kh = 2 (row s) + kh = 0 (row s+1)
        w_cur[s * k0:(s + 1) * k0, (2 * s + 1) * n0:(2 * s + 2) * n0] = b_k2
        if s + 1 < pin:
            w_cur[(s + 1) * k0:(s + 2) * k0, (2 * s + 1) * n0:(2 * s + 2) * n0] = b_k0
    # the kh=0 tap of the last in-pack row comes from block 0 of the NEXT pack
    w_nxt[0:k0, (pout - 1) * n0:pout * n0] = b_k0
    bias = np.tile(b, 2 * W_in * pout)[None, :]
    return jnp.asarray(w_cur), jnp.asarray(w_nxt), jnp.asarray(bias)


def init_params(key, feat, compressed_dim):
    """PyTorch-layout params (Conv2d: (Cout,Cin,3,3); ConvTranspose2d: (Cin,Cout,3,3))."""
    def conv_w(k, cout, cin):
        bound = 1.0 / jnp.sqrt(cin * 9.0)
        kw_, kb_ = jax.random.split(k)
        return (jax.random.uniform(kw_, (cout, cin, 3, 3), jnp.float32, -bound, bound),
                jax.random.uniform(kb_, (cout,), jnp.float32, -bound, bound))

    def convT_w(k, cin, cout):
        bound = 1.0 / jnp.sqrt(cin * 9.0)
        kw_, kb_ = jax.random.split(k)
        return (jax.random.uniform(kw_, (cin, cout, 3, 3), jnp.float32, -bound, bound),
                jax.random.uniform(kb_, (cout,), jnp.float32, -bound, bound))

    ks = jax.random.split(key, 6)
    return {
        "enc0": conv_w(ks[0], 16, feat),
        "enc1": conv_w(ks[1], 32, 16),
        "enc2": conv_w(ks[2], compressed_dim, 32),
        "dec0": convT_w(ks[3], compressed_dim, 32),
        "dec1": convT_w(ks[4], 32, 16),
        "dec2": convT_w(ks[5], 16, feat),
    }


def prepare_params(params, res):
    """One-time host re-layout into the kernel's block-sparse matmul matrices."""
    r2, r4, r8 = res // 2, res // 4, res // 8
    return {
        "enc0": _conv_tap_matrices(*params["enc0"], W_in=res),
        "enc1": _conv_tap_matrices(*params["enc1"], W_in=r2),
        "enc2": _conv_tap_matrices(*params["enc2"], W_in=r4),
        "dec0": _deconv_packed_matrices(*params["dec0"], W_in=r8, pin=1),
        "dec1": _deconv_packed_matrices(*params["dec1"], W_in=r4, pin=2),
        "dec2": _deconv_packed_matrices(*params["dec2"], W_in=r2, pin=4),
    }


# ----------------------------------------------------------------------------
# host-side wrapper
# ----------------------------------------------------------------------------
def autoencoder_forward(kp, x_nchw):
    N, feat, res, res_w = x_nchw.shape
    assert res == res_w and res % 8 == 0
    hc = res // 8
    c1 = kp["enc0"][0].shape[2] // (res // 2)       # 16
    c2 = kp["enc1"][0].shape[2] // (res // 4)       # 32
    comp_lanes = kp["enc2"][0].shape[2]             # hc * cdim
    recon_lanes = kp["dec2"][0].shape[1]            # 8 * res * feat
    cdim = comp_lanes // hc

    # NCHW -> (N, res, res*feat) lane-flattened rows, plus a single top zero-pad row
    xp = jnp.transpose(x_nchw, (0, 2, 3, 1)).astype(jnp.float32)
    xp = jnp.pad(xp.reshape(N, res, res * feat), ((0, 0), (1, 0), (0, 0)))

    def rep(a):
        return pl.BlockSpec(a.shape, lambda n, _nd=a.ndim: (0,) * _nd)

    in_specs = [pl.BlockSpec((None, res + 1, res * feat), lambda n: (n, 0, 0))]
    args = [xp]
    for name in ("enc0", "enc1", "enc2"):
        A, bias = kp[name]
        in_specs += [rep(A), rep(bias)]
        args += [A, bias]
    for name in ("dec0", "dec1", "dec2"):
        wc, wn, bias = kp[name]
        in_specs += [rep(wc), rep(wn), rep(bias)]
        args += [wc, wn, bias]

    comp_flat, recon_flat = pl.pallas_call(
        _autoencoder_kernel,
        grid=(N,),
        out_shape=(jax.ShapeDtypeStruct((N, hc, comp_lanes), jnp.float32),
                   jax.ShapeDtypeStruct((N, hc, recon_lanes), jnp.float32)),
        in_specs=in_specs,
        out_specs=(pl.BlockSpec((None, hc, comp_lanes), lambda n: (n, 0, 0)),
                   pl.BlockSpec((None, hc, recon_lanes), lambda n: (n, 0, 0))),
        scratch_shapes=[
            pltpu.VMEM((res // 2 + 1, (res // 2) * c1), jnp.float32),  # enc-2 input
            pltpu.VMEM((res // 4 + 1, (res // 4) * c2), jnp.float32),  # enc-3 input
        ],
        compiler_params=pltpu.CompilerParams(
            dimension_semantics=("parallel",),
            vmem_limit_bytes=32 * 1024 * 1024,
        ),
    )(*args)

    compressed = jnp.transpose(comp_flat.reshape(N, hc, hc, cdim), (0, 3, 1, 2))
    reconstructed = jnp.transpose(recon_flat.reshape(N, res, res, feat), (0, 3, 1, 2))
    return jnp.squeeze(compressed), jnp.squeeze(reconstructed)


# ----------------------------------------------------------------------------
# pure-XLA reference of the same PyTorch module (runtime correctness check)
# ----------------------------------------------------------------------------
def _reference_forward(params, x_nchw):
    dn = ("NCHW", "OIHW", "NCHW")
    prec = lax.Precision.HIGHEST

    def conv(x, w, b):
        y = lax.conv_general_dilated(x, w, (2, 2), ((1, 1), (1, 1)),
                                     dimension_numbers=dn, precision=prec)
        return jax.nn.relu(y + b[None, :, None, None])

    def deconv(x, w, b, act):
        w_f = jnp.transpose(w[:, :, ::-1, ::-1], (1, 0, 2, 3))   # flip + (Cout,Cin,3,3)
        y = lax.conv_general_dilated(x, w_f, (1, 1), ((1, 2), (1, 2)),
                                     lhs_dilation=(2, 2),
                                     dimension_numbers=dn, precision=prec)
        return act(y + b[None, :, None, None])

    h = conv(x_nchw, *params["enc0"])
    h = conv(h, *params["enc1"])
    comp = conv(h, *params["enc2"])
    d = deconv(comp, *params["dec0"], jax.nn.relu)
    d = deconv(d, *params["dec1"], jax.nn.relu)
    rec = deconv(d, *params["dec2"], jax.nn.sigmoid)
    return jnp.squeeze(comp), jnp.squeeze(rec)


if __name__ == "__main__":
    feat, res, compressed_dim = 4, 16, 8
    batch = 2

    key = jax.random.PRNGKey(0)
    k_params, k_x = jax.random.split(key)
    params = init_params(k_params, feat, compressed_dim)
    kparams = prepare_params(params, res)          # hoisted, one-time host re-layout
    x = jax.random.uniform(k_x, (batch, feat, res, res), jnp.float32)

    fwd = jax.jit(autoencoder_forward)
    compressed, reconstructed = fwd(kparams, x)
    jax.block_until_ready((compressed, reconstructed))

    assert compressed.shape == (batch, compressed_dim, res // 8, res // 8)
    assert reconstructed.shape == (batch, feat, res, res)

    # numerical check against a pure-XLA reference of the same PyTorch module
    ref_c, ref_r = _reference_forward(params, x)
    err_c = float(jnp.max(jnp.abs(compressed - ref_c)))
    err_r = float(jnp.max(jnp.abs(reconstructed - ref_r)))
    assert err_c < 1e-3 and err_r < 1e-3, (err_c, err_r)

    print("KERNEL_OK")
</pallas_src>

<mosaic_0001>
module attributes {stable_mosaic.version = 11 : i64} {
  func.func @_autoencoder_kernel(%arg0: i32, %arg1: memref<1x17x64xf32, #tpu.memory_space<vmem>>, %arg2: memref<3x64x128xf32, #tpu.memory_space<vmem>>, %arg3: memref<1x128xf32, #tpu.memory_space<vmem>>, %arg4: memref<3x128x128xf32, #tpu.memory_space<vmem>>, %arg5: memref<1x128xf32, #tpu.memory_space<vmem>>, %arg6: memref<3x128x16xf32, #tpu.memory_space<vmem>>, %arg7: memref<1x16xf32, #tpu.memory_space<vmem>>, %arg8: memref<16x256xf32, #tpu.memory_space<vmem>>, %arg9: memref<16x256xf32, #tpu.memory_space<vmem>>, %arg10: memref<1x256xf32, #tpu.memory_space<vmem>>, %arg11: memref<256x512xf32, #tpu.memory_space<vmem>>, %arg12: memref<256x512xf32, #tpu.memory_space<vmem>>, %arg13: memref<1x512xf32, #tpu.memory_space<vmem>>, %arg14: memref<512x512xf32, #tpu.memory_space<vmem>>, %arg15: memref<512x512xf32, #tpu.memory_space<vmem>>, %arg16: memref<1x512xf32, #tpu.memory_space<vmem>>, %arg17: memref<1x2x16xf32, #tpu.memory_space<vmem>>, %arg18: memref<1x2x512xf32, #tpu.memory_space<vmem>>, %arg19: memref<9x128xf32, #tpu.memory_space<vmem>>, %arg20: memref<5x128xf32, #tpu.memory_space<vmem>>) attributes {dimension_semantics = [#tpu.dimension_semantics<parallel>], iteration_bounds = array<i64: 2>, scalar_prefetch = 0 : i64, scratch_operands = 2 : i64, tpu.core_type = #tpu.core_type<tc>, window_params = [{transform_indices = @transform_0, window_bounds = array<i64: 1, 17, 64>}, {pipeline_mode = #tpu.pipeline_mode<synchronous>, transform_indices = @transform_1, window_bounds = array<i64: 3, 64, 128>}, {pipeline_mode = #tpu.pipeline_mode<synchronous>, transform_indices = @transform_2, window_bounds = array<i64: 1, 128>}, {pipeline_mode = #tpu.pipeline_mode<synchronous>, transform_indices = @transform_3, window_bounds = array<i64: 3, 128, 128>}, {pipeline_mode = #tpu.pipeline_mode<synchronous>, transform_indices = @transform_4, window_bounds = array<i64: 1, 128>}, {pipeline_mode = #tpu.pipeline_mode<synchronous>, transform_indices = @transform_5, window_bounds = array<i64: 3, 128, 16>}, {pipeline_mode = #tpu.pipeline_mode<synchronous>, transform_indices = @transform_6, window_bounds = array<i64: 1, 16>}, {pipeline_mode = #tpu.pipeline_mode<synchronous>, transform_indices = @transform_7, window_bounds = array<i64: 16, 256>}, {pipeline_mode = #tpu.pipeline_mode<synchronous>, transform_indices = @transform_8, window_bounds = array<i64: 16, 256>}, {pipeline_mode = #tpu.pipeline_mode<synchronous>, transform_indices = @transform_9, window_bounds = array<i64: 1, 256>}, {pipeline_mode = #tpu.pipeline_mode<synchronous>, transform_indices = @transform_10, window_bounds = array<i64: 256, 512>}, {pipeline_mode = #tpu.pipeline_mode<synchronous>, transform_indices = @transform_11, window_bounds = array<i64: 256, 512>}, {pipeline_mode = #tpu.pipeline_mode<synchronous>, transform_indices = @transform_12, window_bounds = array<i64: 1, 512>}, {pipeline_mode = #tpu.pipeline_mode<synchronous>, transform_indices = @transform_13, window_bounds = array<i64: 512, 512>}, {pipeline_mode = #tpu.pipeline_mode<synchronous>, transform_indices = @transform_14, window_bounds = array<i64: 512, 512>}, {pipeline_mode = #tpu.pipeline_mode<synchronous>, transform_indices = @transform_15, window_bounds = array<i64: 1, 512>}, {transform_indices = @transform_16, window_bounds = array<i64: 1, 2, 16>}, {transform_indices = @transform_17, window_bounds = array<i64: 1, 2, 512>}]} {
    %cst = arith.constant 0.000000e+00 : f32
    %0 = vector.broadcast %cst : f32 to vector<1x128xf32>
    %c0 = arith.constant 0 : index
    %c0_0 = arith.constant 0 : index
    %1 = vector.load %arg19[%c0, %c0_0] : memref<9x128xf32, #tpu.memory_space<vmem>>, vector<1x128xf32>
    tpu.vector_store %arg19[%c0, %c0_0], %0 {strides = array<i32>} : memref<9x128xf32, #tpu.memory_space<vmem>>, vector<1x128xf32>,
    %cst_1 = arith.constant 0.000000e+00 : f32
    %2 = vector.broadcast %cst_1 : f32 to vector<1x128xf32>
    %c0_2 = arith.constant 0 : index
    %c0_3 = arith.constant 0 : index
    %3 = vector.load %arg20[%c0_2, %c0_3] : memref<5x128xf32, #tpu.memory_space<vmem>>, vector<1x128xf32>
    tpu.vector_store %arg20[%c0_2, %c0_3], %2 {strides = array<i32>} : memref<5x128xf32, #tpu.memory_space<vmem>>, vector<1x128xf32>,
    %c0_4 = arith.constant 0 : index
    %c0_5 = arith.constant 0 : index
    %c0_6 = arith.constant 0 : index
    %4 = tpu.strided_load %arg1[%c0_4, %c0_5, %c0_6] {strides = array<i32: 1, 2, 1>} : memref<1x17x64xf32, #tpu.memory_space<vmem>>, vector<1x8x64xf32>
    %5 = vector.shape_cast %4 : vector<1x8x64xf32> to vector<8x64xf32>
    %c0_7 = arith.constant 0 : index
    %c0_8 = arith.constant 0 : index
    %c0_9 = arith.constant 0 : index
    %6 = vector.load %arg2[%c0_7, %c0_8, %c0_9] : memref<3x64x128xf32, #tpu.memory_space<vmem>>, vector<1x64x128xf32>
    %7 = vector.shape_cast %6 : vector<1x64x128xf32> to vector<64x128xf32>
    %cst_10 = arith.constant dense<0.000000e+00> : vector<8x128xf32>
    %8 = tpu.matmul %5, %7, %cst_10 {dimension_numbers = #tpu.dot_dimension_numbers<[1], [0], [0], [1], [0, 0, 1, 1], [], []>} : vector<8x64xf32>, vector<64x128xf32>, vector<8x128xf32> -> vector<8x128xf32>
    %c0_11 = arith.constant 0 : index
    %c1 = arith.constant 1 : index
    %c0_12 = arith.constant 0 : index
    %9 = tpu.strided_load %arg1[%c0_11, %c1, %c0_12] {strides = array<i32: 1, 2, 1>} : memref<1x17x64xf32, #tpu.memory_space<vmem>>, vector<1x8x64xf32>
    %10 = vector.shape_cast %9 : vector<1x8x64xf32> to vector<8x64xf32>
    %c1_13 = arith.constant 1 : index
    %c0_14 = arith.constant 0 : index
    %c0_15 = arith.constant 0 : index
    %11 = vector.load %arg2[%c1_13, %c0_14, %c0_15] : memref<3x64x128xf32, #tpu.memory_space<vmem>>, vector<1x64x128xf32>
    %12 = vector.shape_cast %11 : vector<1x64x128xf32> to vector<64x128xf32>
    %cst_16 = arith.constant dense<0.000000e+00> : vector<8x128xf32>
    %13 = tpu.matmul %10, %12, %cst_16 {dimension_numbers = #tpu.dot_dimension_numbers<[1], [0], [0], [1], [0, 0, 1, 1], [], []>} : vector<8x64xf32>, vector<64x128xf32>, vector<8x128xf32> -> vector<8x128xf32>
    %14 = arith.addf %8, %13 : vector<8x128xf32>
    %c0_17 = arith.constant 0 : index
    %c2 = arith.constant 2 : index
    %c0_18 = arith.constant 0 : index
    %15 = tpu.strided_load %arg1[%c0_17, %c2, %c0_18] {strides = array<i32: 1, 2, 1>} : memref<1x17x64xf32, #tpu.memory_space<vmem>>, vector<1x8x64xf32>
    %16 = vector.shape_cast %15 : vector<1x8x64xf32> to vector<8x64xf32>
    %c2_19 = arith.constant 2 : index
    %c0_20 = arith.constant 0 : index
    %c0_21 = arith.constant 0 : index
    %17 = vector.load %arg2[%c2_19, %c0_20, %c0_21] : memref<3x64x128xf32, #tpu.memory_space<vmem>>, vector<1x64x128xf32>
    %18 = vector.shape_cast %17 : vector<1x64x128xf32> to vector<64x128xf32>
    %cst_22 = arith.constant dense<0.000000e+00> : vector<8x128xf32>
    %19 = tpu.matmul %16, %18, %cst_22 {dimension_numbers = #tpu.dot_dimension_numbers<[1], [0], [0], [1], [0, 0, 1, 1], [], []>} : vector<8x64xf32>, vector<64x128xf32>, vector<8x128xf32> -> vector<8x128xf32>
    %20 = arith.addf %14, %19 : vector<8x128xf32>
    %c0_23 = arith.constant 0 : index
    %c0_24 = arith.constant 0 : index
    %21 = vector.load %arg3[%c0_23, %c0_24] : memref<1x128xf32, #tpu.memory_space<vmem>>, vector<1x128xf32>
    %22 = vector.broadcast %21 : vector<1x128xf32> to vector<8x128xf32>
    %23 = arith.addf %20, %22 : vector<8x128xf32>
    %cst_25 = arith.constant 0.000000e+00 : f32
    %24 = vector.broadcast %cst_25 : f32 to vector<8x128xf32>
    %25 = arith.maximumf %23, %24 : vector<8x128xf32>
    %c1_26 = arith.constant 1 : index
    %c0_27 = arith.constant 0 : index
    %26 = vector.load %arg19[%c1_26, %c0_27] : memref<9x128xf32, #tpu.memory_space<vmem>>, vector<8x128xf32>
    tpu.vector_store %arg19[%c1_26, %c0_27], %25 {strides = array<i32>} : memref<9x128xf32, #tpu.memory_space<vmem>>, vector<8x128xf32>,
    %c0_28 = arith.constant 0 : index
    %c0_29 = arith.constant 0 : index
    %27 = tpu.strided_load %arg19[%c0_28, %c0_29] {strides = array<i32: 2, 1>} : memref<9x128xf32, #tpu.memory_space<vmem>>, vector<4x128xf32>
    %c0_30 = arith.constant 0 : index
    %c0_31 = arith.constant 0 : index
    %c0_32 = arith.constant 0 : index
    %28 = vector.load %arg4[%c0_30, %c0_31, %c0_32] : memref<3x128x128xf32, #tpu.memory_space<vmem>>, vector<1x128x128xf32>
    %29 = vector.shape_cast %28 : vector<1x128x128xf32> to vector<128x128xf32>
    %cst_33 = arith.constant dense<0.000000e+00> : vector<4x128xf32>
    %30 = tpu.matmul %27, %29, %cst_33 {dimension_numbers = #tpu.dot_dimension_numbers<[1], [0], [0], [1], [0, 0, 1, 1], [], []>} : vector<4x128xf32>, vector<128x128xf32>, vector<4x128xf32> -> vector<4x128xf32>
    %c1_34 = arith.constant 1 : index
    %c0_35 = arith.constant 0 : index
    %31 = tpu.strided_load %arg19[%c1_34, %c0_35] {strides = array<i32: 2, 1>} : memref<9x128xf32, #tpu.memory_space<vmem>>, vector<4x128xf32>
    %c1_36 = arith.constant 1 : index
    %c0_37 = arith.constant 0 : index
    %c0_38 = arith.constant 0 : index
    %32 = vector.load %arg4[%c1_36, %c0_37, %c0_38] : memref<3x128x128xf32, #tpu.memory_space<vmem>>, vector<1x128x128xf32>
    %33 = vector.shape_cast %32 : vector<1x128x128xf32> to vector<128x128xf32>
    %cst_39 = arith.constant dense<0.000000e+00> : vector<4x128xf32>
    %34 = tpu.matmul %31, %33, %cst_39 {dimension_numbers = #tpu.dot_dimension_numbers<[1], [0], [0], [1], [0, 0, 1, 1], [], []>} : vector<4x128xf32>, vector<128x128xf32>, vector<4x128xf32> -> vector<4x128xf32>
    %35 = arith.addf %30, %34 : vector<4x128xf32>
    %c2_40 = arith.constant 2 : index
    %c0_41 = arith.constant 0 : index
    %36 = tpu.strided_load %arg19[%c2_40, %c0_41] {strides = array<i32: 2, 1>} : memref<9x128xf32, #tpu.memory_space<vmem>>, vector<4x128xf32>
    %c2_42 = arith.constant 2 : index
    %c0_43 = arith.constant 0 : index
    %c0_44 = arith.constant 0 : index
    %37 = vector.load %arg4[%c2_42, %c0_43, %c0_44] : memref<3x128x128xf32, #tpu.memory_space<vmem>>, vector<1x128x128xf32>
    %38 = vector.shape_cast %37 : vector<1x128x128xf32> to vector<128x128xf32>
    %cst_45 = arith.constant dense<0.000000e+00> : vector<4x128xf32>
    %39 = tpu.matmul %36, %38, %cst_45 {dimension_numbers = #tpu.dot_dimension_numbers<[1], [0], [0], [1], [0, 0, 1, 1], [], []>} : vector<4x128xf32>, vector<128x128xf32>, vector<4x128xf32> -> vector<4x128xf32>
    %40 = arith.addf %35, %39 : vector<4x128xf32>
    %c0_46 = arith.constant 0 : index
    %c0_47 = arith.constant 0 : index
    %41 = vector.load %arg5[%c0_46, %c0_47] : memref<1x128xf32, #tpu.memory_space<vmem>>, vector<1x128xf32>
    %42 = vector.broadcast %41 : vector<1x128xf32> to vector<4x128xf32>
    %43 = arith.addf %40, %42 : vector<4x128xf32>
    %cst_48 = arith.constant 0.000000e+00 : f32
    %44 = vector.broadcast %cst_48 : f32 to vector<4x128xf32>
    %45 = arith.maximumf %43, %44 : vector<4x128xf32>
    %c1_49 = arith.constant 1 : index
    %c0_50 = arith.constant 0 : index
    %46 = vector.load %arg20[%c1_49, %c0_50] : memref<5x128xf32, #tpu.memory_space<vmem>>, vector<4x128xf32>
    tpu.vector_store %arg20[%c1_49, %c0_50], %45 {strides = array<i32>} : memref<5x128xf32, #tpu.memory_space<vmem>>, vector<4x128xf32>,
    %c0_51 = arith.constant 0 : index
    %c0_52 = arith.constant 0 : index
    %47 = tpu.strided_load %arg20[%c0_51, %c0_52] {strides = array<i32: 2, 1>} : memref<5x128xf32, #tpu.memory_space<vmem>>, vector<2x128xf32>
    %c0_53 = arith.constant 0 : index
    %c0_54 = arith.constant 0 : index
    %c0_55 = arith.constant 0 : index
    %48 = vector.load %arg6[%c0_53, %c0_54, %c0_55] : memref<3x128x16xf32, #tpu.memory_space<vmem>>, vector<1x128x16xf32>
    %49 = vector.shape_cast %48 : vector<1x128x16xf32> to vector<128x16xf32>
    %cst_56 = arith.constant dense<0.000000e+00> : vector<2x16xf32>
    %50 = tpu.matmul %47, %49, %cst_56 {dimension_numbers = #tpu.dot_dimension_numbers<[1], [0], [0], [1], [0, 0, 1, 1], [], []>} : vector<2x128xf32>, vector<128x16xf32>, vector<2x16xf32> -> vector<2x16xf32>
    %c1_57 = arith.constant 1 : index
    %c0_58 = arith.constant 0 : index
    %51 = tpu.strided_load %arg20[%c1_57, %c0_58] {strides = array<i32: 2, 1>} : memref<5x128xf32, #tpu.memory_space<vmem>>, vector<2x128xf32>
    %c1_59 = arith.constant 1 : index
    %c0_60 = arith.constant 0 : index
    %c0_61 = arith.constant 0 : index
    %52 = vector.load %arg6[%c1_59, %c0_60, %c0_61] : memref<3x128x16xf32, #tpu.memory_space<vmem>>, vector<1x128x16xf32>
    %53 = vector.shape_cast %52 : vector<1x128x16xf32> to vector<128x16xf32>
    %cst_62 = arith.constant dense<0.000000e+00> : vector<2x16xf32>
    %54 = tpu.matmul %51, %53, %cst_62 {dimension_numbers = #tpu.dot_dimension_numbers<[1], [0], [0], [1], [0, 0, 1, 1], [], []>} : vector<2x128xf32>, vector<128x16xf32>, vector<2x16xf32> -> vector<2x16xf32>
    %55 = arith.addf %50, %54 : vector<2x16xf32>
    %c2_63 = arith.constant 2 : index
    %c0_64 = arith.constant 0 : index
    %56 = tpu.strided_load %arg20[%c2_63, %c0_64] {strides = array<i32: 2, 1>} : memref<5x128xf32, #tpu.memory_space<vmem>>, vector<2x128xf32>
    %c2_65 = arith.constant 2 : index
    %c0_66 = arith.constant 0 : index
    %c0_67 = arith.constant 0 : index
    %57 = vector.load %arg6[%c2_65, %c0_66, %c0_67] : memref<3x128x16xf32, #tpu.memory_space<vmem>>, vector<1x128x16xf32>
    %58 = vector.shape_cast %57 : vector<1x128x16xf32> to vector<128x16xf32>
    %cst_68 = arith.constant dense<0.000000e+00> : vector<2x16xf32>
    %59 = tpu.matmul %56, %58, %cst_68 {dimension_numbers = #tpu.dot_dimension_numbers<[1], [0], [0], [1], [0, 0, 1, 1], [], []>} : vector<2x128xf32>, vector<128x16xf32>, vector<2x16xf32> -> vector<2x16xf32>
    %60 = arith.addf %55, %59 : vector<2x16xf32>
    %c0_69 = arith.constant 0 : index
    %c0_70 = arith.constant 0 : index
    %61 = vector.load %arg7[%c0_69, %c0_70] : memref<1x16xf32, #tpu.memory_space<vmem>>, vector<1x16xf32>
    %62 = vector.broadcast %61 : vector<1x16xf32> to vector<2x16xf32>
    %63 = arith.addf %60, %62 : vector<2x16xf32>
    %cst_71 = arith.constant 0.000000e+00 : f32
    %64 = vector.broadcast %cst_71 : f32 to vector<2x16xf32>
    %65 = arith.maximumf %63, %64 : vector<2x16xf32>
    %c0_72 = arith.constant 0 : index
    %c0_73 = arith.constant 0 : index
    %c0_74 = arith.constant 0 : index
    %66 = vector.load %arg17[%c0_72, %c0_73, %c0_74] : memref<1x2x16xf32, #tpu.memory_space<vmem>>, vector<1x2x16xf32>
    %67 = vector.shape_cast %66 : vector<1x2x16xf32> to vector<2x16xf32>
    %68 = vector.shape_cast %65 : vector<2x16xf32> to vector<1x2x16xf32>
    tpu.vector_store %arg17[%c0_72, %c0_73, %c0_74], %68 {strides = array<i32>} : memref<1x2x16xf32, #tpu.memory_space<vmem>>, vector<1x2x16xf32>,
    %69 = vector.extract_strided_slice %65 {offsets = [1, 0], sizes = [1, 16], strides = [1, 1]} : vector<2x16xf32> to vector<1x16xf32>
    %cst_75 = arith.constant 0.000000e+00 : f32
    %70 = vector.broadcast %cst_75 : f32 to vector<1x16xf32>
    %71 = tpu.concatenate %69, %70 in 0 : vector<1x16xf32>, vector<1x16xf32> -> vector<2x16xf32>
    %c0_76 = arith.constant 0 : index
    %c0_77 = arith.constant 0 : index
    %72 = vector.load %arg8[%c0_76, %c0_77] : memref<16x256xf32, #tpu.memory_space<vmem>>, vector<16x256xf32>
    %cst_78 = arith.constant dense<0.000000e+00> : vector<2x256xf32>
    %73 = tpu.matmul %65, %72, %cst_78 {dimension_numbers = #tpu.dot_dimension_numbers<[1], [0], [0], [1], [0, 0, 1, 1], [], []>} : vector<2x16xf32>, vector<16x256xf32>, vector<2x256xf32> -> vector<2x256xf32>
    %c0_79 = arith.constant 0 : index
    %c0_80 = arith.constant 0 : index
    %74 = vector.load %arg9[%c0_79, %c0_80] : memref<16x256xf32, #tpu.memory_space<vmem>>, vector<16x256xf32>
    %cst_81 = arith.constant dense<0.000000e+00> : vector<2x256xf32>
    %75 = tpu.matmul %71, %74, %cst_81 {dimension_numbers = #tpu.dot_dimension_numbers<[1], [0], [0], [1], [0, 0, 1, 1], [], []>} : vector<2x16xf32>, vector<16x256xf32>, vector<2x256xf32> -> vector<2x256xf32>
    %76 = arith.addf %73, %75 : vector<2x256xf32>
    %c0_82 = arith.constant 0 : index
    %c0_83 = arith.constant 0 : index
    %77 = vector.load %arg10[%c0_82, %c0_83] : memref<1x256xf32, #tpu.memory_space<vmem>>, vector<1x256xf32>
    %78 = vector.broadcast %77 : vector<1x256xf32> to vector<2x256xf32>
    %79 = arith.addf %76, %78 : vector<2x256xf32>
    %cst_84 = arith.constant 0.000000e+00 : f32
    %80 = vector.broadcast %cst_84 : f32 to vector<2x256xf32>
    %81 = arith.maximumf %79, %80 : vector<2x256xf32>
    %82 = vector.extract_strided_slice %81 {offsets = [1, 0], sizes = [1, 256], strides = [1, 1]} : vector<2x256xf32> to vector<1x256xf32>
    %cst_85 = arith.constant 0.000000e+00 : f32
    %83 = vector.broadcast %cst_85 : f32 to vector<1x256xf32>
    %84 = tpu.concatenate %82, %83 in 0 : vector<1x256xf32>, vector<1x256xf32> -> vector<2x256xf32>
    %c0_86 = arith.constant 0 : index
    %c0_87 = arith.constant 0 : index
    %85 = vector.load %arg11[%c0_86, %c0_87] : memref<256x512xf32, #tpu.memory_space<vmem>>, vector<256x512xf32>
    %cst_88 = arith.constant dense<0.000000e+00> : vector<2x512xf32>
    %86 = tpu.matmul %81, %85, %cst_88 {dimension_numbers = #tpu.dot_dimension_numbers<[1], [0], [0], [1], [0, 0, 1, 1], [], []>} : vector<2x256xf32>, vector<256x512xf32>, vector<2x512xf32> -> vector<2x512xf32>
    %c0_89 = arith.constant 0 : index
    %c0_90 = arith.constant 0 : index
    %87 = vector.load %arg12[%c0_89, %c0_90] : memref<256x512xf32, #tpu.memory_space<vmem>>, vector<256x512xf32>
    %cst_91 = arith.constant dense<0.000000e+00> : vector<2x512xf32>
    %88 = tpu.matmul %84, %87, %cst_91 {dimension_numbers = #tpu.dot_dimension_numbers<[1], [0], [0], [1], [0, 0, 1, 1], [], []>} : vector<2x256xf32>, vector<256x512xf32>, vector<2x512xf32> -> vector<2x512xf32>
    %89 = arith.addf %86, %88 : vector<2x512xf32>
    %c0_92 = arith.constant 0 : index
    %c0_93 = arith.constant 0 : index
    %90 = vector.load %arg13[%c0_92, %c0_93] : memref<1x512xf32, #tpu.memory_space<vmem>>, vector<1x512xf32>
    %91 = vector.broadcast %90 : vector<1x512xf32> to vector<2x512xf32>
    %92 = arith.addf %89, %91 : vector<2x512xf32>
    %cst_94 = arith.constant 0.000000e+00 : f32
    %93 = vector.broadcast %cst_94 : f32 to vector<2x512xf32>
    %94 = arith.maximumf %92, %93 : vector<2x512xf32>
    %95 = vector.extract_strided_slice %94 {offsets = [1, 0], sizes = [1, 512], strides = [1, 1]} : vector<2x512xf32> to vector<1x512xf32>
    %cst_95 = arith.constant 0.000000e+00 : f32
    %96 = vector.broadcast %cst_95 : f32 to vector<1x512xf32>
    %97 = tpu.concatenate %95, %96 in 0 : vector<1x512xf32>, vector<1x512xf32> -> vector<2x512xf32>
    %c0_96 = arith.constant 0 : index
    %c0_97 = arith.constant 0 : index
    %98 = vector.load %arg14[%c0_96, %c0_97] : memref<512x512xf32, #tpu.memory_space<vmem>>, vector<512x512xf32>
    %cst_98 = arith.constant dense<0.000000e+00> : vector<2x512xf32>
    %99 = tpu.matmul %94, %98, %cst_98 {dimension_numbers = #tpu.dot_dimension_numbers<[1], [0], [0], [1], [0, 0, 1, 1], [], []>} : vector<2x512xf32>, vector<512x512xf32>, vector<2x512xf32> -> vector<2x512xf32>
    %c0_99 = arith.constant 0 : index
    %c0_100 = arith.constant 0 : index
    %100 = vector.load %arg15[%c0_99, %c0_100] : memref<512x512xf32, #tpu.memory_space<vmem>>, vector<512x512xf32>
    %cst_101 = arith.constant dense<0.000000e+00> : vector<2x512xf32>
    %101 = tpu.matmul %97, %100, %cst_101 {dimension_numbers = #tpu.dot_dimension_numbers<[1], [0], [0], [1], [0, 0, 1, 1], [], []>} : vector<2x512xf32>, vector<512x512xf32>, vector<2x512xf32> -> vector<2x512xf32>
    %102 = arith.addf %99, %101 : vector<2x512xf32>
    %c0_102 = arith.constant 0 : index
    %c0_103 = arith.constant 0 : index
    %103 = vector.load %arg16[%c0_102, %c0_103] : memref<1x512xf32, #tpu.memory_space<vmem>>, vector<1x512xf32>
    %104 = vector.broadcast %103 : vector<1x512xf32> to vector<2x512xf32>
    %105 = arith.addf %102, %104 : vector<2x512xf32>
    %106 = arith.negf %105 : vector<2x512xf32>
    %107 = math.exp %106 : vector<2x512xf32>
    %cst_104 = arith.constant 1.000000e+00 : f32
    %108 = vector.broadcast %cst_104 : f32 to vector<2x512xf32>
    %109 = arith.addf %108, %107 : vector<2x512xf32>
    %110 = arith.divf %108, %109 : vector<2x512xf32>
    %c0_105 = arith.constant 0 : index
    %c0_106 = arith.constant 0 : index
    %c0_107 = arith.constant 0 : index
    %111 = vector.load %arg18[%c0_105, %c0_106, %c0_107] : memref<1x2x512xf32, #tpu.memory_space<vmem>>, vector<1x2x512xf32>
    %112 = vector.shape_cast %111 : vector<1x2x512xf32> to vector<2x512xf32>
    %113 = vector.shape_cast %110 : vector<2x512xf32> to vector<1x2x512xf32>
    tpu.vector_store %arg18[%c0_105, %c0_106, %c0_107], %113 {strides = array<i32>} : memref<1x2x512xf32, #tpu.memory_space<vmem>>, vector<1x2x512xf32>,
    return
  }
  func.func @transform_0(%arg0: i32) -> (i32, i32, i32) {
    %c0_i32 = arith.constant 0 : i32
    %c0_i32_0 = arith.constant 0 : i32
    %c0_i32_1 = arith.constant 0 : i32
    return %arg0, %c0_i32, %c0_i32_0 : i32, i32, i32
  }
  func.func @transform_1(%arg0: i32) -> (i32, i32, i32) {
    %c0_i32 = arith.constant 0 : i32
    %c0_i32_0 = arith.constant 0 : i32
    %c0_i32_1 = arith.constant 0 : i32
    %c0_i32_2 = arith.constant 0 : i32
    return %c0_i32, %c0_i32_0, %c0_i32_1 : i32, i32, i32
  }
  func.func @transform_2(%arg0: i32) -> (i32, i32) {
    %c0_i32 = arith.constant 0 : i32
    %c0_i32_0 = arith.constant 0 : i32
    %c0_i32_1 = arith.constant 0 : i32
    return %c0_i32, %c0_i32_0 : i32, i32
  }
  func.func @transform_3(%arg0: i32) -> (i32, i32, i32) {
    %c0_i32 = arith.constant 0 : i32
    %c0_i32_0 = arith.constant 0 : i32
    %c0_i32_1 = arith.constant 0 : i32
    %c0_i32_2 = arith.constant 0 : i32
    return %c0_i32, %c0_i32_0, %c0_i32_1 : i32, i32, i32
  }
  func.func @transform_4(%arg0: i32) -> (i32, i32) {
    %c0_i32 = arith.constant 0 : i32
    %c0_i32_0 = arith.constant 0 : i32
    %c0_i32_1 = arith.constant 0 : i32
    return %c0_i32, %c0_i32_0 : i32, i32
  }
  func.func @transform_5(%arg0: i32) -> (i32, i32, i32) {
    %c0_i32 = arith.constant 0 : i32
    %c0_i32_0 = arith.constant 0 : i32
    %c0_i32_1 = arith.constant 0 : i32
    %c0_i32_2 = arith.constant 0 : i32
    return %c0_i32, %c0_i32_0, %c0_i32_1 : i32, i32, i32
  }
  func.func @transform_6(%arg0: i32) -> (i32, i32) {
    %c0_i32 = arith.constant 0 : i32
    %c0_i32_0 = arith.constant 0 : i32
    %c0_i32_1 = arith.constant 0 : i32
    return %c0_i32, %c0_i32_0 : i32, i32
  }
  func.func @transform_7(%arg0: i32) -> (i32, i32) {
    %c0_i32 = arith.constant 0 : i32
    %c0_i32_0 = arith.constant 0 : i32
    %c0_i32_1 = arith.constant 0 : i32
    return %c0_i32, %c0_i32_0 : i32, i32
  }
  func.func @transform_8(%arg0: i32) -> (i32, i32) {
    %c0_i32 = arith.constant 0 : i32
    %c0_i32_0 = arith.constant 0 : i32
    %c0_i32_1 = arith.constant 0 : i32
    return %c0_i32, %c0_i32_0 : i32, i32
  }
  func.func @transform_9(%arg0: i32) -> (i32, i32) {
    %c0_i32 = arith.constant 0 : i32
    %c0_i32_0 = arith.constant 0 : i32
    %c0_i32_1 = arith.constant 0 : i32
    return %c0_i32, %c0_i32_0 : i32, i32
  }
  func.func @transform_10(%arg0: i32) -> (i32, i32) {
    %c0_i32 = arith.constant 0 : i32
    %c0_i32_0 = arith.constant 0 : i32
    %c0_i32_1 = arith.constant 0 : i32
    return %c0_i32, %c0_i32_0 : i32, i32
  }
  func.func @transform_11(%arg0: i32) -> (i32, i32) {
    %c0_i32 = arith.constant 0 : i32
    %c0_i32_0 = arith.constant 0 : i32
    %c0_i32_1 = arith.constant 0 : i32
    return %c0_i32, %c0_i32_0 : i32, i32
  }
  func.func @transform_12(%arg0: i32) -> (i32, i32) {
    %c0_i32 = arith.constant 0 : i32
    %c0_i32_0 = arith.constant 0 : i32
    %c0_i32_1 = arith.constant 0 : i32
    return %c0_i32, %c0_i32_0 : i32, i32
  }
  func.func @transform_13(%arg0: i32) -> (i32, i32) {
    %c0_i32 = arith.constant 0 : i32
    %c0_i32_0 = arith.constant 0 : i32
    %c0_i32_1 = arith.constant 0 : i32
    return %c0_i32, %c0_i32_0 : i32, i32
  }
  func.func @transform_14(%arg0: i32) -> (i32, i32) {
    %c0_i32 = arith.constant 0 : i32
    %c0_i32_0 = arith.constant 0 : i32
    %c0_i32_1 = arith.constant 0 : i32
    return %c0_i32, %c0_i32_0 : i32, i32
  }
  func.func @transform_15(%arg0: i32) -> (i32, i32) {
    %c0_i32 = arith.constant 0 : i32
    %c0_i32_0 = arith.constant 0 : i32
    %c0_i32_1 = arith.constant 0 : i32
    return %c0_i32, %c0_i32_0 : i32, i32
  }
  func.func @transform_16(%arg0: i32) -> (i32, i32, i32) {
    %c0_i32 = arith.constant 0 : i32
    %c0_i32_0 = arith.constant 0 : i32
    %c0_i32_1 = arith.constant 0 : i32
    return %arg0, %c0_i32, %c0_i32_0 : i32, i32, i32
  }
  func.func @transform_17(%arg0: i32) -> (i32, i32, i32) {
    %c0_i32 = arith.constant 0 : i32
    %c0_i32_0 = arith.constant 0 : i32
    %c0_i32_1 = arith.constant 0 : i32
    return %arg0, %c0_i32, %c0_i32_0 : i32, i32, i32
  }
}

</mosaic_0001>

<bundles_post_ra>
// kernel: autoencoder_forward.1
= control target key start
LH: loop header
LB: loop body
LE: loop exit
PB: predicated region body
PF: predicated region fallthrough
CT: control target
= control target key end

     0   :  { %s4170_s0 = inlined_call_operand.vmem [shape: f32[2,17,64], index: 0, kind: input, shape index: {}]   ;;  %s4171_s1 = inlined_call_operand.vmem [shape: f32[3,64,128], index: 1, kind: input, shape index: {}]   ;;  %s4172_s2 = inlined_call_operand.vmem [shape: f32[1,128], index: 2, kind: input, shape index: {}]   ;;  %s4173_s3 = inlined_call_operand.vmem [shape: f32[3,128,128], index: 3, kind: input, shape index: {}]   ;;  %s4174_s4 = inlined_call_operand.vmem [shape: f32[1,128], index: 4, kind: input, shape index: {}]   ;;  %s4175_s5 = inlined_call_operand.vmem [shape: f32[3,128,16], index: 5, kind: input, shape index: {}]   ;;  %s4176_s6 = inlined_call_operand.vmem [shape: f32[1,16], index: 6, kind: input, shape index: {}]   ;;  %s4177_s7 = inlined_call_operand.vmem [shape: f32[16,256], index: 7, kind: input, shape index: {}]   ;;  %s4178_s8 = inlined_call_operand.vmem [shape: f32[16,256], index: 8, kind: input, shape index: {}]   ;;  %s4179_s9 = inlined_call_operand.vmem [shape: f32[1,256], index: 9, kind: input, shape index: {}]   ;;  %s4180_s10 = inlined_call_operand.hbm [shape: f32[256,512], index: 10, kind: input, shape index: {}]   ;;  %s4181_s11 = inlined_call_operand.hbm [shape: f32[256,512], index: 11, kind: input, shape index: {}]   ;;  %s4182_s12 = inlined_call_operand.vmem [shape: f32[1,512], index: 12, kind: input, shape index: {}]   ;;  %s4183_s13 = inlined_call_operand.hbm [shape: f32[512,512], index: 13, kind: input, shape index: {}]   ;;  %s4184_s14 = inlined_call_operand.hbm [shape: f32[512,512], index: 14, kind: input, shape index: {}]   ;;  %s4185_s15 = inlined_call_operand.vmem [shape: f32[1,512], index: 15, kind: input, shape index: {}]   ;;  %s4186_s16 = inlined_call_operand.vmem [shape: f32[2,2,16], index: 16, kind: output, shape index: {0}]   ;;  %s4187_s17 = inlined_call_operand.vmem [shape: f32[2,2,512], index: 17, kind: output, shape index: {1}]  }
   0x1   :  { %4190 = sst [smem:[#allocation15_spill]] %s4170_s0 }
   0x2   :  { %4191 = sst [smem:[#allocation16_spill]] %s4171_s1 }
   0x3   :  { %4192 = sst [smem:[#allocation17_spill]] %s4180_s10 }
   0x4   :  { %4193 = sst [smem:[#allocation18_spill]] %s4181_s11 }
   0x5   :  { %4194 = sst [smem:[#allocation19_spill]] %s4187_s17 }
   0x6   :  { %23 = vsyncpa [#allocation5], 0 }
   0x7   :  { %24 = vsyncpa [#allocation7], 0 }
   0x8   :  { %25 = vsyncpa [#allocation10], 0  ;;  %s3542_s24 = smov 0  }
   0x9 LB: > { %4195 = sst [smem:[#allocation14_spill]] %s3443_s24  ;;  %s3548_s25 = sadd.s32 4294967295, %s3443_s24   ;;  %s3443_s24 = sphi %s3542_s24, %s31_s24  }
   0xa   : > { %p3098_p0 = scmp.ge.s32.totalorder %s3443_s24, 1  ;;  %p429_p1 = scmp.lt.s32.totalorder %s3443_s24, 3 }
   0xb   : > { %p3263_p2 = scmp.eq.s32.totalorder %s3548_s25, 0  ;;  %s4196_s11 = sld [smem:[#allocation18_spill]] }
   0xc   : > { %p3556_p3 = pnand %p3098_p0, %p429_p1  ;;  %s4198_s10 = sld [smem:[#allocation17_spill]] }
   0xd   : > { %s3445_s19 = smov [#allocation6]   ;;  %s3446_s21 = smov [#allocation4]  }
   0xe   : > { %p3250_p4 = pneg %p3556_p3  ;;  %s483_s1 = sshll.u32 %s3445_s19, 4  ;;  %s484_s1 = int_to_ptr.vmem [resolvable:$true] %s483_s1 }
   0xf   : > { %s469_s22 = sshll.u32 %s3446_s21, 4  ;;  %s498_s27 = sshll.u32 %s4183_s13, 4  ;;  %s470_s22 = int_to_ptr.vmem [resolvable:$true] %s469_s22  ;;  %s499_s27 = int_to_ptr.hbm [resolvable:$true] %s498_s27 }
  0x10   : > { %p3567_p5 = pnand %p3263_p2, %p3250_p4  ;;  %s3447_s0 = smov 512  }
  0x11   : > { %s481_s28 = sshll.u32 %s4196_s11, 4  ;;  %s3448_s30 = smov 32   ;;  %s482_s28 = int_to_ptr.hbm [resolvable:$true] %s481_s28 }
  0x12   : > { %s467_s18 = sshll.u32 %s4198_s10, 4  ;;  %s3449_s19 = smov [#allocation8]   ;;  %s468_s18 = int_to_ptr.hbm [resolvable:$true] %s467_s18 }
  0x13   : > { %3256 = dma.hbm_to_vmem [thread:$0]  (!%p3567_p5), %s482_s28, 16384, %s484_s1, [#allocation7], %s3447_s0, %s3447_s0, %s3448_s30  }
  0x14   : > { %3253 = dma.hbm_to_vmem [thread:$0]  (!%p3567_p5), %s468_s18, 16384, %s470_s22, [#allocation5], %s3447_s0, %s3447_s0, %s3448_s30  }
  0x15   : > { %s500_s10 = sshll.u32 %s3449_s19, 4  ;;  %s512_s17 = sshll.u32 %s4184_s14, 4  ;;  %s501_s10 = int_to_ptr.vmem [resolvable:$true] %s500_s10  ;;  %s513_s17 = int_to_ptr.hbm [resolvable:$true] %s512_s17 }
  0x16   : > { %3259 = dma.hbm_to_vmem [thread:$0]  (!%p3567_p5), %s499_s27, 32768, %s501_s10, [#allocation7], %s3447_s0, %s3447_s0, %s3448_s30  }
  0x17   : > { %s3450_s21 = smov [#allocation9]   ;;  %541 = sbr.rel (%p3556_p3) target bundleno = 1222 (0x4c6), region = 84 }
  0x18   : > { %s514_s23 = sshll.u32 %s3450_s21, 4  ;;  %s515_s23 = int_to_ptr.vmem [resolvable:$true] %s514_s23 }
  0x19   : > { %3262 = dma.hbm_to_vmem [thread:$0]  (!%p3567_p5), %s513_s17, 32768, %s515_s23, [#allocation10], %s3447_s0, %s3447_s0, %s3448_s30  }
  0x1c   : > { %3430 = dma.done.wait (%p3263_p2), [#allocation5], 16384  }
  0x1d   : > { %3432 = vsyncadd (%p3263_p2), [#allocation5], 4294950912 }
  0x1e   : > { %3434 = dma.done.wait (%p3263_p2), [#allocation7], 49152  }
  0x1f   : > { %3436 = vsyncadd (%p3263_p2), [#allocation7], 4294918144 }
  0x20   : > { %3438 = dma.done.wait (%p3263_p2), [#allocation10], 32768  }
  0x21   : > { %3440 = vsyncadd (%p3263_p2), [#allocation10], 4294934528  ;;  %p613_p6 = scmp.lt.s32.totalorder %s3548_s25, 1  ;;  %s4200_s17 = sld [smem:[#allocation16_spill]]  ;;  %v3149_v18 = vld [vmem:[%s4173_s3 + $0xf8] sm:$0xff]  ;;  %v3148_v21 = vld [vmem:[%s4173_s3 + $0xf0] sm:$0xff] }
  0x22   : > { %s4201_s0 = sld [smem:[#allocation15_spill]]  ;;  %774 = vmatpush.msra.mxu3 %v3149_v18  ;;  %v3147_v23 = vld [vmem:[%s4173_s3 + $0xe8] sm:$0xff]  ;;  %vm649_vm0 = vcmask 523264   ;;  %v754_v30 = vld [vmem:[%s4173_s3 + $0x78] sm:$0xff]  ;;  %v3146_v32 = vld [vmem:[%s4173_s3 + $0xe0] sm:$0xff]  ;;  %vm983_vm1 = vcmask 123904  }
  0x23   : > { %s4211_s25 = smov (!%p613_p6, %s3548_s25), 1  ;;  %v3165_v31 = vld [vmem:[%s4173_s3 + $0x178] sm:$0xff]  ;;  %v753_v33 = vld [vmem:[%s4173_s3 + $0x70] sm:$0xff]  ;;  %v752_v36 = vld [vmem:[%s4173_s3 + $0x68] sm:$0xff]  ;;  %vm988_vm2 = vcmask 1040384   ;;  %vm998_vm3 = vcmask 130048  }
  0x24   : > { %s3233_s30 = smul.u32 24, %s4211_s25  ;;  %775 = vmatpush.msra.mxu3 %v3148_v21  ;;  %v3164_v34 = vld [vmem:[%s4173_s3 + $0x170] sm:$0xff]  ;;  %v3145_v35 = vld [vmem:[%s4173_s3 + $0xd8] sm:$0xff]  ;;  %v3163_v37 = vld [vmem:[%s4173_s3 + $0x168] sm:$0xff]  ;;  %s4208_s22 = sld [smem:[#allocation19_spill]] }
  0x25   : > { %v3144_v38 = vld [vmem:[%s4173_s3 + $0xd0] sm:$0xff]  ;;  %v751_v39 = vld [vmem:[%s4173_s3 + $0x60] sm:$0xff]  ;;  %v3143_v41 = vld [vmem:[%s4173_s3 + $0xc8] sm:$0xff] }
  0x26   : > { %776 = vmatpush.msra.mxu3 %v3147_v23  ;;  %v3162_v40 = vld [vmem:[%s4173_s3 + $0x160] sm:$0xff]  ;;  %v750_v42 = vld [vmem:[%s4173_s3 + $0x58] sm:$0xff]  ;;  %v749_v44 = vld [vmem:[%s4173_s3 + $0x50] sm:$0xff] }
  0x27   : > { %v3132_v0 = vld [vmem:[%s4200_s17 + $0xb8] sm:$0xff]  ;;  %v3131_v1 = vld [vmem:[%s4200_s17 + $0xb0] sm:$0xff]  ;;  %v3130_v5 = vld [vmem:[%s4200_s17 + $0xa8] sm:$0xff] }
  0x28   : > { %v3121_v2 = vld [vmem:[%s4200_s17 + $0x78] sm:$0xff]  ;;  %718 = vmatpush.msra.mxu2 %v3132_v0  ;;  %v3120_v4 = vld [vmem:[%s4200_s17 + $0x70] sm:$0xff]  ;;  %v3119_v7 = vld [vmem:[%s4200_s17 + $0x68] sm:$0xff]  ;;  %s617_s19 = scalar_lea.vmem %s4201_s0, %s3233_s30  ;;  %777 = vmatpush.msra.mxu3 %v3146_v32  ;;  %s3110_s0 = sshll.u32 %s4211_s25, 1 }
  0x29   : > { %661 = vmatpush.msra.mxu0 %v3121_v2  ;;  %v637_v3 = vld [vmem:[%s4200_s17 + $0x38] sm:$0xff]  ;;  %v636_v6 = vld [vmem:[%s4200_s17 + $0x30] sm:$0xff]  ;;  %v635_v8 = vld [vmem:[%s4200_s17 + $0x28] sm:$0xff]  ;;  %v3451_v2 = vmov 0.0   ;;  %s621_s10 = scalar_lea.vmem %s4186_s16, %s3110_s0  ;;  %s3232_s30 = sshll.u32 %s4211_s25, 3 }
  0x2a   : > { %684 = vmatpush.msra.mxu1 %v637_v3  ;;  %719 = vmatpush.msra.mxu2 %v3131_v1  ;;  %v3129_v9 = vld [vmem:[%s4200_s17 + $0xa0] sm:$0xff]  ;;  %v3128_v12 = vld [vmem:[%s4200_s17 + $0x98] sm:$0xff]  ;;  %v3127_v15 = vld [vmem:[%s4200_s17 + $0x90] sm:$0xff]  ;;  %627 = vst [vmem:[#allocation2] sm:$0x1] %v3451_v2  ;;  %s626_s26 = scalar_lea.vmem %s4208_s22, %s3232_s30 }
  0x2b   : > { %662 = vmatpush.msra.mxu0 %v3120_v4  ;;  %v3118_v10 = vld [vmem:[%s4200_s17 + $0x60] sm:$0xff]  ;;  %v3117_v13 = vld [vmem:[%s4200_s17 + $0x58] sm:$0xff]  ;;  %v3116_v16 = vld [vmem:[%s4200_s17 + $0x50] sm:$0xff]  ;;  %778 = vmatpush.msra.mxu3 %v3145_v35  ;;  %628 = vst [vmem:[#allocation3] sm:$0x1] %v3451_v2 }
  0x2c   : > { %685 = vmatpush.msra.mxu1 %v636_v6  ;;  %720 = vmatpush.msra.mxu2 %v3130_v5  ;;  %v634_v11 = vld [vmem:[%s4200_s17 + $0x20] sm:$0xff]  ;;  %v633_v14 = vld [vmem:[%s4200_s17 + $0x18] sm:$0xff]  ;;  %v632_v17 = vld [vmem:[%s4200_s17 + $0x10] sm:$0xff] }
  0x2d   : > { %663 = vmatpush.msra.mxu0 %v3119_v7  ;;  %v3126_v19 = vld [vmem:[%s4200_s17 + $0x88] sm:$0xff]  ;;  %v3125_v24 = vld [vmem:[%s4200_s17 + $0x80] sm:$0xff]  ;;  %v3161_v43 = vld [vmem:[%s4173_s3 + $0x158] sm:$0xff]  ;;  %779 = vmatpush.msra.mxu3 %v3144_v38 }
  0x2e   : > { %686 = vmatpush.msra.mxu1 %v635_v8  ;;  %721 = vmatpush.msra.mxu2 %v3129_v9  ;;  %v3115_v20 = vld [vmem:[%s4200_s17 + $0x48] sm:$0xff]  ;;  %v3114_v25 = vld [vmem:[%s4200_s17 + $0x40] sm:$0xff]  ;;  %v3160_v45 = vld [vmem:[%s4173_s3 + $0x150] sm:$0xff] }
  0x2f   : > { %664 = vmatpush.msra.mxu0 %v3118_v10  ;;  %v631_v22 = vld [vmem:[%s4200_s17 + $0x8] sm:$0xff]  ;;  %v630_v27 = vld [vmem:[%s4200_s17] sm:$0xff]  ;;  %780 = vmatpush.msra.mxu3 %v3143_v41  ;;  %v3141_v51 = vld [vmem:[%s4173_s3 + $0xb8] sm:$0xff] }
  0x30   : > { %687 = vmatpush.msra.mxu1 %v634_v11  ;;  %722 = vmatpush.msra.mxu2 %v3128_v12  ;;  %v3124_v26 = vld [vmem:[%s617_s19 + $0x2] ss:$2 sm:$0xff]  ;;  %v3113_v28 = vld [vmem:[%s617_s19 + $0x1] ss:$2 sm:$0xff]  ;;  %v746_v52 = vld [vmem:[%s4173_s3 + $0x38] sm:$0xff] }
  0x31   : > { %665 = vmatpush.msra.mxu0 %v3117_v13  ;;  %v629_v29 = vld [vmem:[%s617_s19] ss:$2 sm:$0xff]  ;;  %v3157_v53 = vld [vmem:[%s4173_s3 + $0x138] sm:$0xff]  ;;  %v3140_v54 = vld [vmem:[%s4173_s3 + $0xb0] sm:$0xff] }
  0x32   : > { %688 = vmatpush.msra.mxu1 %v633_v14  ;;  %723 = vmatpush.msra.mxu2 %v3127_v15  ;;  %v748_v46 = vld [vmem:[%s4173_s3 + $0x48] sm:$0xff]  ;;  %v3142_v48 = vld [vmem:[%s4173_s3 + $0xc0] sm:$0xff]  ;;  %v745_v55 = vld [vmem:[%s4173_s3 + $0x30] sm:$0xff] }
  0x33   : > { %666 = vmatpush.msra.mxu0 %v3116_v16  ;;  %v3159_v47 = vld [vmem:[%s4173_s3 + $0x148] sm:$0xff]  ;;  %v747_v49 = vld [vmem:[%s4173_s3 + $0x40] sm:$0xff]  ;;  %781 = vmatpush.msra.mxu3 %v3142_v48  ;;  %v3156_v56 = vld [vmem:[%s4173_s3 + $0x130] sm:$0xff] }
  0x34   : > { %689 = vmatpush.msra.mxu1 %v632_v17  ;;  %724 = vmatpush.msra.mxu2 %v3126_v19  ;;  %v3158_v50 = vld [vmem:[%s4173_s3 + $0x140] sm:$0xff]  ;;  %v3139_v57 = vld [vmem:[%s4173_s3 + $0xa8] sm:$0xff]  ;;  %v3137_v63 = vld [vmem:[%s4173_s3 + $0x98] sm:$0xff] }
  0x35   : > { %667 = vmatpush.msra.mxu0 %v3115_v20  ;;  %782 = vmatpush.msra.mxu3 %v3141_v51  ;;  %v744_v58 = vld [vmem:[%s4173_s3 + $0x28] sm:$0xff]  ;;  %v3138_v60 = vld [vmem:[%s4173_s3 + $0xa0] sm:$0xff]  ;;  %v742_v0 = vld [vmem:[%s4173_s3 + $0x18] sm:$0xff] }
  0x36   : > { %690 = vmatpush.msra.mxu1 %v631_v22  ;;  %725 = vmatpush.msra.mxu2 %v3125_v24  ;;  %v3155_v59 = vld [vmem:[%s4173_s3 + $0x128] sm:$0xff]  ;;  %v743_v61 = vld [vmem:[%s4173_s3 + $0x20] sm:$0xff]  ;;  %v3153_v1 = vld [vmem:[%s4173_s3 + $0x118] sm:$0xff] }
  0x37   : > { %668 = vmatpush.msra.mxu0 %v3114_v25  ;;  %3133 = vmatmul.msk.f32.vlgmr.msra.gmra.mxu2 %vm649_vm0, %v3124_v26  ;;  %v3154_v62 = vld [vmem:[%s4173_s3 + $0x120] sm:$0xff]  ;;  %v3136_v3 = vld [vmem:[%s4173_s3 + $0x90] sm:$0xff]  ;;  %v3135_v6 = vld [vmem:[%s4173_s3 + $0x88] sm:$0xff] }
  0x38   : > { %691 = vmatpush.msra.mxu1 %v630_v27  ;;  %3122 = vmatmul.msk.f32.vlgmr.msra.gmra.mxu0 %vm649_vm0, %v3113_v28  ;;  %v741_v4 = vld [vmem:[%s4173_s3 + $0x10] sm:$0xff]  ;;  %v740_v7 = vld [vmem:[%s4173_s3 + $0x8] sm:$0xff]  ;;  %v3134_v9 = vld [vmem:[%s4173_s3 + $0x80] sm:$0xff] }
  0x39   : > { %3123 = vmatmul.msk.f32.vlgmr.msra.gmra.mxu1 %vm649_vm0, %v629_v29  ;;  %794 = vmatpush.msrb.mxu0 %v754_v30  ;;  %v3152_v5 = vld [vmem:[%s4173_s3 + $0x110] sm:$0xff]  ;;  %v3151_v8 = vld [vmem:[%s4173_s3 + $0x108] sm:$0xff]  ;;  %v739_v10 = vld [vmem:[%s4173_s3] sm:$0xff] }
  0x3a   : > { %833 = vmatpush.msrb.mxu1 %v3165_v31  ;;  %783 = vmatpush.msra.mxu3 %v3140_v54  ;;  %v3150_v11 = vld [vmem:[%s4173_s3 + $0x100] sm:$0xff]  ;;  %v3181_v12 = vld [vmem:[%s4175_s5 + $0xf8] sm:$0xff]  ;;  %v3180_v15 = vld [vmem:[%s4175_s5 + $0xf0] sm:$0xff] }
  0x3b   : > { %795 = vmatpush.msrb.mxu0 %v753_v33  ;;  %v877_v13 = vld [vmem:[%s4175_s5 + $0x78] sm:$0xff]  ;;  %897 = vmatpush.msrb.mxu2 %v3181_v12  ;;  %v876_v16 = vld [vmem:[%s4175_s5 + $0x70] sm:$0xff]  ;;  %v3179_v18 = vld [vmem:[%s4175_s5 + $0xe8] sm:$0xff] }
  0x3c   : > { %834 = vmatpush.msrb.mxu1 %v3164_v34  ;;  %784 = vmatpush.msra.mxu3 %v3139_v57  ;;  %v3197_v14 = vld [vmem:[%s4175_s5 + $0x178] sm:$0xff]  ;;  %v3196_v17 = vld [vmem:[%s4175_s5 + $0x170] sm:$0xff]  ;;  %v875_v19 = vld [vmem:[%s4175_s5 + $0x68] sm:$0xff] }
  0x3d   : > { %796 = vmatpush.msrb.mxu0 %v752_v36  ;;  %898 = vmatpush.msrb.mxu2 %v3180_v15  ;;  %v3195_v20 = vld [vmem:[%s4175_s5 + $0x168] sm:$0xff]  ;;  %v3178_v21 = vld [vmem:[%s4175_s5 + $0xe0] sm:$0xff]  ;;  %v3177_v35 = vld [vmem:[%s4175_s5 + $0xd8] sm:$0xff] }
  0x3e   : > { %835 = vmatpush.msrb.mxu1 %v3163_v37  ;;  %785 = vmatpush.msra.mxu3 %v3138_v60  ;;  %v874_v22 = vld [vmem:[%s4175_s5 + $0x60] sm:$0xff]  ;;  %v873_v36 = vld [vmem:[%s4175_s5 + $0x58] sm:$0xff]  ;;  %v3176_v38 = vld [vmem:[%s4175_s5 + $0xd0] sm:$0xff] }
  0x3f   : > { %797 = vmatpush.msrb.mxu0 %v751_v39  ;;  %899 = vmatpush.msrb.mxu2 %v3179_v18  ;;  %v3194_v23 = vld [vmem:[%s4175_s5 + $0x160] sm:$0xff]  ;;  %v3193_v37 = vld [vmem:[%s4175_s5 + $0x158] sm:$0xff]  ;;  %v872_v39 = vld [vmem:[%s4175_s5 + $0x50] sm:$0xff] }
  0x40   : > { %836 = vmatpush.msrb.mxu1 %v3162_v40  ;;  %786 = vmatpush.msra.mxu3 %v3137_v63  ;;  %v3286_v27 = vld [vmem:[%s4172_s2] ss:$0 sm:$0xff]  ;;  %v3192_v40 = vld [vmem:[%s4175_s5 + $0x150] sm:$0xff]  ;;  %v3175_v41 = vld [vmem:[%s4175_s5 + $0xc8] sm:$0xff] }
  0x41   : > { %798 = vmatpush.msrb.mxu0 %v750_v42  ;;  %900 = vmatpush.msrb.mxu2 %v3178_v21  ;;  %v871_v42 = vld [vmem:[%s4175_s5 + $0x48] sm:$0xff]  ;;  %v869_v48 = vld [vmem:[%s4175_s5 + $0x38] sm:$0xff]  ;;  %v868_v51 = vld [vmem:[%s4175_s5 + $0x30] sm:$0xff] }
  0x42   : > { %837 = vmatpush.msrb.mxu1 %v3161_v43  ;;  %787 = vmatpush.msra.mxu3 %v3136_v3  ;;  %v3191_v43 = vld [vmem:[%s4175_s5 + $0x148] sm:$0xff]  ;;  %v866_v57 = vld [vmem:[%s4175_s5 + $0x20] sm:$0xff]  ;;  %v865_v60 = vld [vmem:[%s4175_s5 + $0x18] sm:$0xff] }
  0x43   : > { %799 = vmatpush.msrb.mxu0 %v749_v44  ;;  %901 = vmatpush.msrb.mxu2 %v3177_v35  ;;  %v3174_v44 = vld [vmem:[%s4175_s5 + $0xc0] sm:$0xff]  ;;  %v867_v54 = vld [vmem:[%s4175_s5 + $0x28] sm:$0xff]  ;;  %v864_v63 = vld [vmem:[%s4175_s5 + $0x10] sm:$0xff] }
  0x44   : > { %838 = vmatpush.msrb.mxu1 %v3160_v45  ;;  %788 = vmatpush.msra.mxu3 %v3135_v6  ;;  %v870_v45 = vld [vmem:[%s4175_s5 + $0x40] sm:$0xff]  ;;  %v863_v2 = vld [vmem:[%s4175_s5 + $0x8] sm:$0xff]  ;;  %v996_v18 = vld [vmem:[%s4178_s8 + $0x10] sm:$0xff] }
  0x45   : > { %800 = vmatpush.msrb.mxu0 %v748_v46  ;;  %902 = vmatpush.msrb.mxu2 %v3176_v38  ;;  %v3190_v46 = vld [vmem:[%s4175_s5 + $0x140] sm:$0xff]  ;;  %v3183_v3 = vld [vmem:[%s4175_s5 + $0x108] sm:$0xff] }
  0x46   : > { %839 = vmatpush.msrb.mxu1 %v3159_v47  ;;  %789 = vmatpush.msra.mxu3 %v3134_v9  ;;  %v3173_v47 = vld [vmem:[%s4175_s5 + $0xb8] sm:$0xff]  ;;  %v3182_v6 = vld [vmem:[%s4175_s5 + $0x100] sm:$0xff]  ;;  %v995_v21 = vld [vmem:[%s4178_s8 + $0x8] sm:$0xff] }
  0x47   : > { %801 = vmatpush.msrb.mxu0 %v747_v49  ;;  %903 = vmatpush.msrb.mxu2 %v3175_v41  ;;  %v3189_v49 = vld [vmem:[%s4175_s5 + $0x138] sm:$0xff]  ;;  %v1271_v35 = vld [vmem:[#allocation6 + $0x148] sm:$0xff] }
  0x48   : > { %840 = vmatpush.msrb.mxu1 %v3158_v50  ;;  %917 = vmatpush.msrb.mxu3 %v877_v13  ;;  %v3172_v50 = vld [vmem:[%s4175_s5 + $0xb0] sm:$0xff]  ;;  %v1335_v38 = vld [vmem:[#allocation6 + $0x348] sm:$0xff] }
  0x49   : > { %802 = vmatpush.msrb.mxu0 %v746_v52  ;;  %904 = vmatpush.msrb.mxu2 %v3174_v44  ;;  %v3188_v52 = vld [vmem:[%s4175_s5 + $0x130] sm:$0xff]  ;;  %v1263_v41 = vld [vmem:[#allocation6 + $0x108] sm:$0xff] }
  0x4a   : > { %841 = vmatpush.msrb.mxu1 %v3157_v53  ;;  %918 = vmatpush.msrb.mxu3 %v876_v16  ;;  %v3171_v53 = vld [vmem:[%s4175_s5 + $0xa8] sm:$0xff]  ;;  %v1331_v44 = vld [vmem:[#allocation6 + $0x328] sm:$0xff] }
  0x4b   : > { %803 = vmatpush.msrb.mxu0 %v745_v55  ;;  %905 = vmatpush.msrb.mxu2 %v3173_v47  ;;  %v3187_v55 = vld [vmem:[%s4175_s5 + $0x128] sm:$0xff] }
  0x4c   : > { %842 = vmatpush.msrb.mxu1 %v3156_v56  ;;  %919 = vmatpush.msrb.mxu3 %v875_v19  ;;  %v3170_v56 = vld [vmem:[%s4175_s5 + $0xa0] sm:$0xff]  ;;  %v997_v19 = vld [vmem:[%s4178_s8 + $0x18] sm:$0xff] }
  0x4d   : > { %804 = vmatpush.msrb.mxu0 %v744_v58  ;;  %906 = vmatpush.msrb.mxu2 %v3172_v50  ;;  %v3186_v58 = vld [vmem:[%s4175_s5 + $0x120] sm:$0xff] }
  0x4e   : > { %843 = vmatpush.msrb.mxu1 %v3155_v59  ;;  %920 = vmatpush.msrb.mxu3 %v874_v22  ;;  %v3169_v59 = vld [vmem:[%s4175_s5 + $0x98] sm:$0xff]  ;;  %v992_v22 = vld [vmem:[%s4177_s7 + $0x10] sm:$0xff] }
  0x4f   : > { %805 = vmatpush.msrb.mxu0 %v743_v61  ;;  %907 = vmatpush.msrb.mxu2 %v3171_v53  ;;  %v3185_v61 = vld [vmem:[%s4175_s5 + $0x118] sm:$0xff] }
  0x50   : > { %844 = vmatpush.msrb.mxu1 %v3154_v62  ;;  %921 = vmatpush.msrb.mxu3 %v873_v36  ;;  %v3168_v62 = vld [vmem:[%s4175_s5 + $0x90] sm:$0xff]  ;;  %v1339_v36 = vld [vmem:[#allocation6 + $0x368] sm:$0xff] }
  0x51   : > { %806 = vmatpush.msrb.mxu0 %v742_v0  ;;  %908 = vmatpush.msrb.mxu2 %v3170_v56  ;;  %v3184_v0 = vld [vmem:[%s4175_s5 + $0x110] sm:$0xff] }
  0x52   : > { %845 = vmatpush.msrb.mxu1 %v3153_v1  ;;  %922 = vmatpush.msrb.mxu3 %v872_v39  ;;  %v3167_v1 = vld [vmem:[%s4175_s5 + $0x88] sm:$0xff] }
  0x53   : > { %807 = vmatpush.msrb.mxu0 %v741_v4  ;;  %909 = vmatpush.msrb.mxu2 %v3169_v59  ;;  %v3166_v4 = vld [vmem:[%s4175_s5 + $0x80] sm:$0xff] }
  0x54   : > { %846 = vmatpush.msrb.mxu1 %v3152_v5  ;;  %923 = vmatpush.msrb.mxu3 %v871_v42  ;;  %v862_v5 = vld [vmem:[%s4175_s5] sm:$0xff] }
  0x55   : > { %808 = vmatpush.msrb.mxu0 %v740_v7  ;;  %910 = vmatpush.msrb.mxu2 %v3168_v62  ;;  %v1286_v62 = vld [vmem:[#allocation6 + $0x1c0] sm:$0xff] }
  0x56   : > { %847 = vmatpush.msrb.mxu1 %v3151_v8  ;;  %924 = vmatpush.msrb.mxu3 %v870_v45 }
  0x57   : > { %809 = vmatpush.msrb.mxu0 %v739_v10  ;;  %911 = vmatpush.msrb.mxu2 %v3167_v1  ;;  %v3287_v10 = vld [vmem:[%s4174_s4] ss:$0 sm:$0xff] }
  0x58   : > { %848 = vmatpush.msrb.mxu1 %v3150_v11  ;;  %925 = vmatpush.msrb.mxu3 %v869_v48  ;;  %v1327_v48 = vld [vmem:[#allocation6 + $0x308] sm:$0xff] }
  0x59   : > { %956 = vmatpush.msra.mxu0 %v3197_v14  ;;  %912 = vmatpush.msrb.mxu2 %v3166_v4  ;;  %v1311_v1 = vld [vmem:[#allocation6 + $0x288] sm:$0xff] }
  0x5a   : > { %926 = vmatpush.msrb.mxu3 %v868_v51  ;;  %1016 = vmatpush.msra.mxu1 %v996_v18  ;;  %v1323_v51 = vld [vmem:[#allocation6 + $0x2e8] sm:$0xff]  ;;  %v1289_v18 = vld [vmem:[#allocation6 + $0x1d8] sm:$0xff] }
  0x5b   : > { %957 = vmatpush.msra.mxu0 %v3196_v17  ;;  %1036 = vmatpush.msra.mxu2 %v997_v19  ;;  %v1235_v4 = vld [vmem:[#allocation6 + $0x28] sm:$0xff] }
  0x5c   : > { %927 = vmatpush.msrb.mxu3 %v867_v54  ;;  %v1319_v54 = vld [vmem:[#allocation6 + $0x2c8] sm:$0xff] }
  0x5d   : > { %958 = vmatpush.msra.mxu0 %v3195_v20  ;;  %v994_v20 = vld [vmem:[%s4178_s8] sm:$0xff]  ;;  %1037 = vmatpush.msra.mxu2 %v995_v21  ;;  %v1326_v21 = vld [vmem:[#allocation6 + $0x300] sm:$0xff] }
  0x5e   : > { %928 = vmatpush.msrb.mxu3 %v866_v57  ;;  %1017 = vmatpush.msra.mxu1 %v994_v20  ;;  %v1290_v57 = vld [vmem:[#allocation6 + $0x1e0] sm:$0xff]  ;;  %v1295_v19 = vld [vmem:[#allocation6 + $0x208] sm:$0xff] }
  0x5f   : > { %959 = vmatpush.msra.mxu0 %v3194_v23  ;;  %v993_v23 = vld [vmem:[%s4177_s7 + $0x18] sm:$0xff] }
  0x60   : > { %929 = vmatpush.msrb.mxu3 %v865_v60  ;;  %v1243_v60 = vld [vmem:[#allocation6 + $0x68] sm:$0xff]  ;;  %v1262_v20 = vld [vmem:[#allocation6 + $0x100] sm:$0xff] }
  0x61   : > { %960 = vmatpush.msra.mxu0 %v3193_v37  ;;  %v1267_v37 = vld [vmem:[#allocation6 + $0x128] sm:$0xff] }
  0x62   : > { %930 = vmatpush.msrb.mxu3 %v864_v63  ;;  %v1350_v63 = vld [vmem:[#allocation6 + $0x3c0] sm:$0xff] }
  0x63   : > { %961 = vmatpush.msra.mxu0 %v3192_v40 }
  0x64   : > { %931 = vmatpush.msrb.mxu3 %v863_v2  ;;  %v1282_v2 = vld [vmem:[#allocation6 + $0x1a0] sm:$0xff] }
  0x65   : > { %962 = vmatpush.msra.mxu0 %v3191_v43  ;;  %v3288_v43 = vld [vmem:[%s4176_s6] ss:$0 sm:$0xff] }
  0x66   : > { %932 = vmatpush.msrb.mxu3 %v862_v5  ;;  %v1307_v5 = vld [vmem:[#allocation6 + $0x268] sm:$0xff] }
  0x67   : > { %963 = vmatpush.msra.mxu0 %v3190_v46  ;;  %v1259_v46 = vld [vmem:[#allocation6 + $0xe8] sm:$0xff] }
  0x69   : > { %964 = vmatpush.msra.mxu0 %v3189_v49  ;;  %v1255_v49 = vld [vmem:[#allocation6 + $0xc8] sm:$0xff] }
  0x6b   : > { %965 = vmatpush.msra.mxu0 %v3188_v52  ;;  %v1251_v52 = vld [vmem:[#allocation6 + $0xa8] sm:$0xff] }
  0x6d   : > { %966 = vmatpush.msra.mxu0 %v3187_v55  ;;  %v1247_v55 = vld [vmem:[#allocation6 + $0x88] sm:$0xff] }
  0x6f   : > { %967 = vmatpush.msra.mxu0 %v3186_v58  ;;  %v1354_v58 = vld [vmem:[#allocation6 + $0x3e0] sm:$0xff] }
  0x71   : > { %968 = vmatpush.msra.mxu0 %v3185_v61  ;;  %v1315_v61 = vld [vmem:[#allocation6 + $0x2a8] sm:$0xff] }
  0x73   : > { %969 = vmatpush.msra.mxu0 %v3184_v0  ;;  %v1239_v0 = vld [vmem:[#allocation6 + $0x48] sm:$0xff] }
  0x75   : > { %970 = vmatpush.msra.mxu0 %v3183_v3  ;;  %v1346_v3 = vld [vmem:[#allocation6 + $0x3a0] sm:$0xff] }
  0x77   : > { %971 = vmatpush.msra.mxu0 %v3182_v6  ;;  %v1278_v6 = vld [vmem:[#allocation6 + $0x180] sm:$0xff] }
  0xb5   : > { %v670_v24 = vpop.f32.mrf.mxu0 }
  0xb6   : > { %v693_v25 = vpop.f32.mrf.mxu1 }
  0xb7   : > { %v694_v26 = vadd.f32 %v693_v25, %v670_v24  ;;  %v990_v24 = vld [vmem:[%s4177_s7] sm:$0xff]  ;;  %v991_v25 = vld [vmem:[%s4177_s7 + $0x8] sm:$0xff] }
  0xba   : > { %v727_v28 = vpop.f32.mrf.mxu2 }
  0xbb   : > { %v730_v29 = vadd.f32 %v727_v28, %v694_v26  ;;  %v1291_v26 = vld [vmem:[#allocation6 + $0x1e8] sm:$0xff] }
  0xbc   : > { %v1283_v28 = vld [vmem:[#allocation6 + $0x1a8] sm:$0xff] }
  0xbd   : > { %v735_v30 = vadd.f32 %v3286_v27, %v730_v29  ;;  %v1287_v27 = vld [vmem:[#allocation6 + $0x1c8] sm:$0xff] }
  0xbe   : > { %v1355_v29 = vld [vmem:[#allocation6 + $0x3e8] sm:$0xff] }
  0xbf   : > { %v736_v31 = vmax.f32 %v735_v30, 0.0  ;;  %v1279_v30 = vld [vmem:[#allocation6 + $0x188] sm:$0xff] }
  0xc1   : > { %737 = vst [vmem:[#allocation2 + $0x1] sm:$0xff] %v736_v31  ;;  %v1351_v31 = vld [vmem:[#allocation6 + $0x3c8] sm:$0xff] }
  0xc8   : > { %v756_v32 = vld [vmem:[#allocation2 + $0x1] ss:$2 sm:$0xf]  ;;  %v738_v33 = vld [vmem:[#allocation2] ss:$2 sm:$0xf] }
  0xc9   : > { %790 = vmatmul.f32.vlgmr.msra.gmra.mxu3 %v756_v32  ;;  %810 = vmatmul.f32.vlgmr.msrb.gmra.mxu0 %v738_v33  ;;  %v815_v34 = vld [vmem:[#allocation2 + $0x2] ss:$2 sm:$0xf] }
  0xca   : > { %849 = vmatmul.f32.vlgmr.msrb.gmra.mxu1 %v815_v34  ;;  %1398 = vmatpush.msra.mxu3 %v1291_v26  ;;  %v1347_v32 = vld [vmem:[#allocation6 + $0x3a8] sm:$0xff]  ;;  %v1281_v26 = vld [vmem:[#allocation6 + $0x198] sm:$0xff] }
  0xcb   : > { %1058 = vmatpush.msrb.mxu1 %v992_v22  ;;  %1418 = vmatpush.msrb.mxu0 %v1355_v29  ;;  %v1275_v33 = vld [vmem:[#allocation6 + $0x168] sm:$0xff]  ;;  %v1285_v22 = vld [vmem:[#allocation6 + $0x1b8] sm:$0xff]  ;;  %v1318_v29 = vld [vmem:[#allocation6 + $0x2c0] sm:$0xff] }
  0xcc   : > { %1399 = vmatpush.msra.mxu3 %v1287_v27  ;;  %v1343_v34 = vld [vmem:[#allocation6 + $0x388] sm:$0xff]  ;;  %v1353_v27 = vld [vmem:[#allocation6 + $0x3d8] sm:$0xff] }
  0xcd   : > { %1059 = vmatpush.msrb.mxu1 %v990_v24  ;;  %1419 = vmatpush.msrb.mxu0 %v1351_v31  ;;  %v1258_v24 = vld [vmem:[#allocation6 + $0xe0] sm:$0xff]  ;;  %v1349_v31 = vld [vmem:[#allocation6 + $0x3b8] sm:$0xff] }
  0xce   : > { %1400 = vmatpush.msra.mxu3 %v1283_v28  ;;  %v1254_v28 = vld [vmem:[#allocation6 + $0xc0] sm:$0xff] }
  0xcf   : > { %1420 = vmatpush.msrb.mxu0 %v1347_v32  ;;  %v1250_v32 = vld [vmem:[#allocation6 + $0xa0] sm:$0xff] }
  0xd0   : > { %1401 = vmatpush.msra.mxu3 %v1279_v30  ;;  %v1277_v30 = vld [vmem:[#allocation6 + $0x178] sm:$0xff] }
  0xd1   : > { %1421 = vmatpush.msrb.mxu0 %v1343_v34  ;;  %v1273_v34 = vld [vmem:[#allocation6 + $0x158] sm:$0xff] }
  0xd2   : > { %1402 = vmatpush.msra.mxu3 %v1275_v33  ;;  %v1314_v33 = vld [vmem:[#allocation6 + $0x2a0] sm:$0xff] }
  0xd3   : > { %1422 = vmatpush.msrb.mxu0 %v1339_v36  ;;  %v1246_v36 = vld [vmem:[#allocation6 + $0x80] sm:$0xff] }
  0xd4   : > { %1403 = vmatpush.msra.mxu3 %v1271_v35  ;;  %v1345_v35 = vld [vmem:[#allocation6 + $0x398] sm:$0xff] }
  0xd5   : > { %1423 = vmatpush.msrb.mxu0 %v1335_v38  ;;  %v1269_v38 = vld [vmem:[#allocation6 + $0x138] sm:$0xff] }
  0xd6   : > { %1404 = vmatpush.msra.mxu3 %v1267_v37  ;;  %v1310_v37 = vld [vmem:[#allocation6 + $0x280] sm:$0xff] }
  0xd7   : > { %1424 = vmatpush.msrb.mxu0 %v1331_v44  ;;  %v1298_v44 = vld [vmem:[#allocation6 + $0x220] sm:$0xff] }
  0xd8   : > { %1405 = vmatpush.msra.mxu3 %v1263_v41  ;;  %v1238_v41 = vld [vmem:[#allocation6 + $0x40] sm:$0xff] }
  0xd9   : > { %1425 = vmatpush.msrb.mxu0 %v1327_v48  ;;  %v1356_v48 = vld [vmem:[#allocation6 + $0x3f0] sm:$0xff] }
  0xda   : > { %1406 = vmatpush.msra.mxu3 %v1259_v46  ;;  %v1294_v46 = vld [vmem:[#allocation6 + $0x200] sm:$0xff] }
  0xdb   : > { %1426 = vmatpush.msrb.mxu0 %v1323_v51  ;;  %v1284_v51 = vld [vmem:[#allocation6 + $0x1b0] sm:$0xff] }
  0xdc   : > { %1407 = vmatpush.msra.mxu3 %v1255_v49  ;;  %v1288_v49 = vld [vmem:[#allocation6 + $0x1d0] sm:$0xff] }
  0xdd   : > { %1427 = vmatpush.msrb.mxu0 %v1319_v54  ;;  %v1344_v54 = vld [vmem:[#allocation6 + $0x390] sm:$0xff] }
  0xde   : > { %1408 = vmatpush.msra.mxu3 %v1251_v52  ;;  %v1348_v52 = vld [vmem:[#allocation6 + $0x3b0] sm:$0xff] }
  0xdf   : > { %1428 = vmatpush.msrb.mxu0 %v1315_v61  ;;  %v1341_v61 = vld [vmem:[#allocation6 + $0x378] sm:$0xff] }
  0xe0   : > { %1409 = vmatpush.msra.mxu3 %v1247_v55  ;;  %v1276_v55 = vld [vmem:[#allocation6 + $0x170] sm:$0xff] }
  0xe1   : > { %1429 = vmatpush.msrb.mxu0 %v1311_v1  ;;  %v1337_v1 = vld [vmem:[#allocation6 + $0x358] sm:$0xff] }
  0xe2   : > { %1410 = vmatpush.msra.mxu3 %v1243_v60  ;;  %v1265_v60 = vld [vmem:[#allocation6 + $0x118] sm:$0xff] }
  0xe3   : > { %1430 = vmatpush.msrb.mxu0 %v1307_v5  ;;  %v1333_v5 = vld [vmem:[#allocation6 + $0x338] sm:$0xff] }
  0xe4   : > { %1411 = vmatpush.msra.mxu3 %v1239_v0  ;;  %v1261_v0 = vld [vmem:[#allocation6 + $0xf8] sm:$0xff] }
  0xe6   : > { %1412 = vmatpush.msra.mxu3 %v1235_v4  ;;  %v1257_v4 = vld [vmem:[#allocation6 + $0xd8] sm:$0xff] }
 0x146   : > { %v811_v7 = vpop.f32.mrf.mxu0 }
 0x147   : > { %v850_v11 = vpop.f32.mrf.mxu1 }
 0x14c   : > { %v791_v8 = vpop.f32.mrf.mxu3 }
 0x14d   : > { %v812_v9 = vadd.f32 %v811_v7, %v791_v8  ;;  %v1342_v7 = vld [vmem:[#allocation6 + $0x380] sm:$0xff] }
 0x14e   : > { %v1274_v8 = vld [vmem:[#allocation6 + $0x160] sm:$0xff] }
 0x14f   : > { %v853_v12 = vadd.f32 %v850_v11, %v812_v9  ;;  %v1338_v9 = vld [vmem:[#allocation6 + $0x360] sm:$0xff]  ;;  %v1303_v11 = vld [vmem:[#allocation6 + $0x248] sm:$0xff] }
 0x150   : > { %1431 = vmatpush.msrb.mxu0 %v1303_v11  ;;  %v1324_v11 = vld [vmem:[#allocation6 + $0x2f0] sm:$0xff] }
 0x151   : > { %v858_v13 = vadd.f32 %v3287_v10, %v853_v12  ;;  %v1231_v10 = vld [vmem:[#allocation6 + $0x8] sm:$0xff]  ;;  %v1270_v12 = vld [vmem:[#allocation6 + $0x140] sm:$0xff] }
 0x152   : > { %1413 = vmatpush.msra.mxu3 %v1231_v10  ;;  %v1248_v10 = vld [vmem:[#allocation6 + $0x90] sm:$0xff] }
 0x153   : > { %v859_v14 = vmax.f32 %v858_v13, 0.0  ;;  %v1334_v13 = vld [vmem:[#allocation6 + $0x340] sm:$0xff] }
 0x155   : > { %860 = vst [vmem:[#allocation3 + $0x1] sm:$0xf] %v859_v14  ;;  %v1293_v14 = vld [vmem:[#allocation6 + $0x1f8] sm:$0xff] }
 0x15c   : > { %v879_v15 = vld [vmem:[#allocation3 + $0x1] ss:$2 sm:$0x3]  ;;  %v861_v16 = vld [vmem:[#allocation3] ss:$2 sm:$0x3] }
 0x15d   : > { %913 = vmatmul.f32.vlgmr.msrb.gmra.mxu2 %v879_v15  ;;  %933 = vmatmul.f32.vlgmr.msrb.gmra.mxu3 %v861_v16  ;;  %v938_v17 = vld [vmem:[#allocation3 + $0x2] ss:$2 sm:$0x3]  ;;  %v1299_v15 = vld [vmem:[#allocation6 + $0x228] sm:$0xff]  ;;  %v1266_v16 = vld [vmem:[#allocation6 + $0x120] sm:$0xff] }
 0x15e   : > { %972 = vmatmul.f32.vlgmr.msra.gmra.mxu0 %v938_v17  ;;  %1078 = vmatpush.msrb.mxu2 %v993_v23  ;;  %v1330_v17 = vld [vmem:[#allocation6 + $0x320] sm:$0xff]  ;;  %v1357_v23 = vld [vmem:[#allocation6 + $0x3f8] sm:$0xff] }
 0x15f   : > { %1478 = vmatpush.msrb.mxu3 %v1293_v14  ;;  %1432 = vmatpush.msrb.mxu0 %v1299_v15  ;;  %v1244_v14 = vld [vmem:[#allocation6 + $0x70] sm:$0xff] }
 0x160   : > { %1079 = vmatpush.msrb.mxu2 %v991_v25  ;;  %v1322_v25 = vld [vmem:[#allocation6 + $0x2e0] sm:$0xff]  ;;  %v1320_v15 = vld [vmem:[#allocation6 + $0x2d0] sm:$0xff] }
 0x161   : > { %1479 = vmatpush.msrb.mxu3 %v1289_v18  ;;  %1433 = vmatpush.msrb.mxu0 %v1295_v19  ;;  %v1240_v18 = vld [vmem:[#allocation6 + $0x50] sm:$0xff] }
 0x162   : > { %v1316_v19 = vld [vmem:[#allocation6 + $0x2b0] sm:$0xff] }
 0x163   : > { %1480 = vmatpush.msrb.mxu3 %v1285_v22  ;;  %1498 = vmatpush.msra.mxu0 %v1357_v23  ;;  %v1236_v22 = vld [vmem:[#allocation6 + $0x30] sm:$0xff] }
 0x164   : > { %v1312_v23 = vld [vmem:[#allocation6 + $0x290] sm:$0xff] }
 0x165   : > { %1481 = vmatpush.msrb.mxu3 %v1281_v26  ;;  %1499 = vmatpush.msra.mxu0 %v1353_v27  ;;  %v1232_v26 = vld [vmem:[#allocation6 + $0x10] sm:$0xff] }
 0x166   : > { %v1308_v27 = vld [vmem:[#allocation6 + $0x270] sm:$0xff] }
 0x167   : > { %1482 = vmatpush.msrb.mxu3 %v1277_v30  ;;  %1500 = vmatpush.msra.mxu0 %v1349_v31  ;;  %v1304_v30 = vld [vmem:[#allocation6 + $0x250] sm:$0xff]  ;;  %v1305_v31 = vld [vmem:[#allocation6 + $0x258] sm:$0xff] }
 0x169   : > { %1483 = vmatpush.msrb.mxu3 %v1273_v34  ;;  %1501 = vmatpush.msra.mxu0 %v1345_v35  ;;  %v1296_v34 = vld [vmem:[#allocation6 + $0x210] sm:$0xff]  ;;  %v1297_v35 = vld [vmem:[#allocation6 + $0x218] sm:$0xff] }
 0x16b   : > { %1484 = vmatpush.msrb.mxu3 %v1269_v38  ;;  %1502 = vmatpush.msra.mxu0 %v1341_v61  ;;  %v1146_v61 = vld [vmem:[#allocation4 + $0x160] sm:$0xff] }
 0x16d   : > { %1485 = vmatpush.msrb.mxu3 %v1265_v60  ;;  %1503 = vmatpush.msra.mxu0 %v1337_v1  ;;  %v1227_v60 = vld [vmem:[#allocation4 + $0x3e8] sm:$0xff]  ;;  %v1142_v1 = vld [vmem:[#allocation4 + $0x140] sm:$0xff] }
 0x16f   : > { %1486 = vmatpush.msrb.mxu3 %v1261_v0  ;;  %1504 = vmatpush.msra.mxu0 %v1333_v5  ;;  %v1223_v0 = vld [vmem:[#allocation4 + $0x3c8] sm:$0xff]  ;;  %v1138_v5 = vld [vmem:[#allocation4 + $0x120] sm:$0xff] }
 0x171   : > { %1487 = vmatpush.msrb.mxu3 %v1257_v4  ;;  %v1219_v4 = vld [vmem:[#allocation4 + $0x3a8] sm:$0xff] }
 0x1db   : > { %v973_v45 = vpop.f32.mrf.mxu0 }
 0x1e0   : > { %v914_v39 = vpop.f32.mrf.mxu2  ;;  %v934_v40 = vpop.f32.mrf.mxu3 }
 0x1e1   : > { %v935_v42 = vadd.f32 %v934_v40, %v914_v39  ;;  %v1242_v39 = vld [vmem:[#allocation6 + $0x60] sm:$0xff] }
 0x1e2   : > { %v1306_v40 = vld [vmem:[#allocation6 + $0x260] sm:$0xff] }
 0x1e3   : > { %v976_v47 = vadd.f32 %v973_v45, %v935_v42  ;;  %v1302_v42 = vld [vmem:[#allocation6 + $0x240] sm:$0xff] }
 0x1e4   : > { %v1230_v45 = vld [vmem:[#allocation6] sm:$0xff] }
 0x1e5   : > { %v981_v50 = vadd.f32 %v3288_v43, %v976_v47  ;;  %v1234_v43 = vld [vmem:[#allocation6 + $0x20] sm:$0xff]  ;;  %v1292_v47 = vld [vmem:[#allocation6 + $0x1f0] sm:$0xff] }
 0x1e7   : > { %v982_v53 = vmax.f32 %v981_v50, 0.0  ;;  %v1352_v50 = vld [vmem:[#allocation6 + $0x3d0] sm:$0xff] }
 0x1e9   : > { %984 = vst.msk [vmem:[%s621_s10] sm:$0x3] %vm983_vm1, %v982_v53  ;;  %v986_v56 = vrot.slane %v982_v53, 1 }
 0x1eb   : > { %v989_v59 = vsel %vm988_vm2, %v986_v56, 0.0  ;;  %v1272_v56 = vld [vmem:[#allocation6 + $0x150] sm:$0xff] }
 0x1ec   : > { %3198 = vmatmul.msk.f32.vlgmr.msra.gmra.mxu1 %vm998_vm3, %v989_v59  ;;  %3199 = vmatmul.msk.f32.vlgmr.msra.gmra.mxu2 %vm998_vm3, %v989_v59  ;;  %v1340_v59 = vld [vmem:[#allocation6 + $0x370] sm:$0xff] }
 0x1ed   : > { %1358 = vmatpush.msra.mxu1 %v1290_v57  ;;  %1378 = vmatpush.msra.mxu2 %v1354_v58  ;;  %v1268_v57 = vld [vmem:[#allocation6 + $0x130] sm:$0xff] }
 0x1ee   : > { %v1264_v58 = vld [vmem:[#allocation6 + $0x110] sm:$0xff] }
 0x1ef   : > { %1359 = vmatpush.msra.mxu1 %v1286_v62  ;;  %1379 = vmatpush.msra.mxu2 %v1350_v63  ;;  %v1260_v62 = vld [vmem:[#allocation6 + $0xf0] sm:$0xff] }
 0x1f0   : > { %v1336_v63 = vld [vmem:[#allocation6 + $0x350] sm:$0xff] }
 0x1f1   : > { %1360 = vmatpush.msra.mxu1 %v1282_v2  ;;  %1380 = vmatpush.msra.mxu2 %v1346_v3  ;;  %v1256_v2 = vld [vmem:[#allocation6 + $0xd0] sm:$0xff] }
 0x1f2   : > { %v1332_v3 = vld [vmem:[#allocation6 + $0x330] sm:$0xff] }
 0x1f3   : > { %1361 = vmatpush.msra.mxu1 %v1278_v6  ;;  %1381 = vmatpush.msra.mxu2 %v1342_v7  ;;  %v1252_v6 = vld [vmem:[#allocation6 + $0xb0] sm:$0xff] }
 0x1f4   : > { %3200 = vmatmul.msk.f32.vlgmr.msrb.gmra.mxu1 %vm998_vm3, %v982_v53  ;;  %3201 = vmatmul.msk.f32.vlgmr.msrb.gmra.mxu2 %vm998_vm3, %v982_v53  ;;  %v1280_v53 = vld [vmem:[#allocation6 + $0x190] sm:$0xff]  ;;  %vm2961_vm3 = vcmask 1041408  }
 0x1f5   : > { %1362 = vmatpush.msra.mxu1 %v1274_v8  ;;  %1382 = vmatpush.msra.mxu2 %v1338_v9  ;;  %v1328_v7 = vld [vmem:[#allocation6 + $0x310] sm:$0xff]  ;;  %v1253_v8 = vld [vmem:[#allocation6 + $0xb8] sm:$0xff] }
 0x1f6   : > { %v1329_v9 = vld [vmem:[#allocation6 + $0x318] sm:$0xff]  ;;  %1488 = vmatpush.msrb.mxu3 %v1253_v8  ;;  %v1215_v8 = vld [vmem:[#allocation4 + $0x388] sm:$0xff] }
 0x1f7   : > { %1363 = vmatpush.msra.mxu1 %v1270_v12  ;;  %1383 = vmatpush.msra.mxu2 %v1334_v13  ;;  %v1249_v12 = vld [vmem:[#allocation6 + $0x98] sm:$0xff] }
 0x1f8   : > { %1505 = vmatpush.msra.mxu0 %v1329_v9  ;;  %v1325_v13 = vld [vmem:[#allocation6 + $0x2f8] sm:$0xff]  ;;  %1489 = vmatpush.msrb.mxu3 %v1249_v12  ;;  %v1134_v9 = vld [vmem:[#allocation4 + $0x100] sm:$0xff]  ;;  %v1211_v12 = vld [vmem:[#allocation4 + $0x368] sm:$0xff] }
 0x1f9   : > { %1364 = vmatpush.msra.mxu1 %v1266_v16  ;;  %1384 = vmatpush.msra.mxu2 %v1330_v17  ;;  %v1245_v16 = vld [vmem:[#allocation6 + $0x78] sm:$0xff] }
 0x1fa   : > { %1506 = vmatpush.msra.mxu0 %v1325_v13  ;;  %v1321_v17 = vld [vmem:[#allocation6 + $0x2d8] sm:$0xff]  ;;  %1490 = vmatpush.msrb.mxu3 %v1245_v16  ;;  %v1130_v13 = vld [vmem:[#allocation4 + $0xe0] sm:$0xff]  ;;  %v1207_v16 = vld [vmem:[#allocation4 + $0x348] sm:$0xff] }
 0x1fb   : > { %1365 = vmatpush.msra.mxu1 %v1262_v20  ;;  %1385 = vmatpush.msra.mxu2 %v1326_v21  ;;  %v1241_v20 = vld [vmem:[#allocation6 + $0x58] sm:$0xff] }
 0x1fc   : > { %1507 = vmatpush.msra.mxu0 %v1321_v17  ;;  %v1317_v21 = vld [vmem:[#allocation6 + $0x2b8] sm:$0xff]  ;;  %1491 = vmatpush.msrb.mxu3 %v1241_v20  ;;  %v1126_v17 = vld [vmem:[#allocation4 + $0xc0] sm:$0xff]  ;;  %v1203_v20 = vld [vmem:[#allocation4 + $0x328] sm:$0xff] }
 0x1fd   : > { %1366 = vmatpush.msra.mxu1 %v1258_v24  ;;  %1386 = vmatpush.msra.mxu2 %v1322_v25  ;;  %v1237_v24 = vld [vmem:[#allocation6 + $0x38] sm:$0xff] }
 0x1fe   : > { %1508 = vmatpush.msra.mxu0 %v1317_v21  ;;  %v1313_v25 = vld [vmem:[#allocation6 + $0x298] sm:$0xff]  ;;  %1492 = vmatpush.msrb.mxu3 %v1237_v24  ;;  %v1122_v21 = vld [vmem:[#allocation4 + $0xa0] sm:$0xff]  ;;  %v1199_v24 = vld [vmem:[#allocation4 + $0x308] sm:$0xff] }
 0x1ff   : > { %1367 = vmatpush.msra.mxu1 %v1254_v28  ;;  %1387 = vmatpush.msra.mxu2 %v1318_v29  ;;  %v1233_v28 = vld [vmem:[#allocation6 + $0x18] sm:$0xff] }
 0x200   : > { %1509 = vmatpush.msra.mxu0 %v1313_v25  ;;  %v1309_v29 = vld [vmem:[#allocation6 + $0x278] sm:$0xff]  ;;  %1493 = vmatpush.msrb.mxu3 %v1233_v28  ;;  %v1118_v25 = vld [vmem:[#allocation4 + $0x80] sm:$0xff]  ;;  %v1195_v28 = vld [vmem:[#allocation4 + $0x2e8] sm:$0xff] }
 0x201   : > { %1368 = vmatpush.msra.mxu1 %v1250_v32  ;;  %1388 = vmatpush.msra.mxu2 %v1314_v33  ;;  %v1300_v32 = vld [vmem:[#allocation6 + $0x230] sm:$0xff]  ;;  %v1301_v33 = vld [vmem:[#allocation6 + $0x238] sm:$0xff] }
 0x202   : > { %1510 = vmatpush.msra.mxu0 %v1309_v29  ;;  %v1114_v29 = vld [vmem:[#allocation4 + $0x60] sm:$0xff] }
 0x203   : > { %1369 = vmatpush.msra.mxu1 %v1246_v36  ;;  %1389 = vmatpush.msra.mxu2 %v1310_v37  ;;  %v1084_v37 = vld [vmem:[%s4179_s9] sm:$0x3] }
 0x204   : > { %1511 = vmatpush.msra.mxu0 %v1305_v31  ;;  %v1115_v31 = vld [vmem:[#allocation4 + $0x68] sm:$0xff] }
 0x205   : > { %1370 = vmatpush.msra.mxu1 %v1242_v39  ;;  %1390 = vmatpush.msra.mxu2 %v1306_v40  ;;  %v1086_v39 = vperm.slane %v1084_v37, 0 }
 0x206   : > { %1512 = vmatpush.msra.mxu0 %v1301_v33  ;;  %v1110_v33 = vld [vmem:[#allocation4 + $0x40] sm:$0xff] }
 0x207   : > { %1371 = vmatpush.msra.mxu1 %v1238_v41  ;;  %1391 = vmatpush.msra.mxu2 %v1302_v42 }
 0x208   : > { %1513 = vmatpush.msra.mxu0 %v1297_v35  ;;  %v1111_v35 = vld [vmem:[#allocation4 + $0x48] sm:$0xff] }
 0x209   : > { %1372 = vmatpush.msra.mxu1 %v1234_v43  ;;  %1392 = vmatpush.msra.mxu2 %v1298_v44  ;;  %v1087_v44 = vperm.slane %v1084_v37, 1  ;;  %v1106_v37 = vld [vmem:[#allocation4 + $0x20] sm:$0xff] }
 0x20b   : > { %1373 = vmatpush.msra.mxu1 %v1230_v45  ;;  %1393 = vmatpush.msra.mxu2 %v1294_v46 }
 0x20d   : > { %1438 = vmatpush.msrb.mxu1 %v1292_v47  ;;  %1458 = vmatpush.msrb.mxu2 %v1356_v48  ;;  %v1162_v48 = vld [vmem:[#allocation4 + $0x1e0] sm:$0xff] }
 0x20f   : > { %1439 = vmatpush.msrb.mxu1 %v1288_v49  ;;  %1459 = vmatpush.msrb.mxu2 %v1352_v50  ;;  %v1163_v49 = vld [vmem:[#allocation4 + $0x1e8] sm:$0xff] }
 0x211   : > { %1440 = vmatpush.msrb.mxu1 %v1284_v51  ;;  %1460 = vmatpush.msrb.mxu2 %v1348_v52  ;;  %v1158_v51 = vld [vmem:[#allocation4 + $0x1c0] sm:$0xff]  ;;  %v1159_v52 = vld [vmem:[#allocation4 + $0x1c8] sm:$0xff] }
 0x213   : > { %1441 = vmatpush.msrb.mxu1 %v1280_v53  ;;  %1461 = vmatpush.msrb.mxu2 %v1344_v54  ;;  %v1154_v54 = vld [vmem:[#allocation4 + $0x1a0] sm:$0xff] }
 0x215   : > { %1442 = vmatpush.msrb.mxu1 %v1276_v55  ;;  %1462 = vmatpush.msrb.mxu2 %v1340_v59  ;;  %v1155_v55 = vld [vmem:[#allocation4 + $0x1a8] sm:$0xff] }
 0x216   : > { %v1151_v59 = vld [vmem:[#allocation4 + $0x188] sm:$0xff] }
 0x217   : > { %1443 = vmatpush.msrb.mxu1 %v1272_v56  ;;  %1463 = vmatpush.msrb.mxu2 %v1336_v63  ;;  %v1147_v63 = vld [vmem:[#allocation4 + $0x168] sm:$0xff] }
 0x219   : > { %1444 = vmatpush.msrb.mxu1 %v1268_v57  ;;  %1464 = vmatpush.msrb.mxu2 %v1332_v3  ;;  %v1150_v57 = vld [vmem:[#allocation4 + $0x180] sm:$0xff]  ;;  %v1143_v3 = vld [vmem:[#allocation4 + $0x148] sm:$0xff] }
 0x21b   : > { %1445 = vmatpush.msrb.mxu1 %v1264_v58  ;;  %1465 = vmatpush.msrb.mxu2 %v1328_v7  ;;  %v1226_v58 = vld [vmem:[#allocation4 + $0x3e0] sm:$0xff]  ;;  %v1139_v7 = vld [vmem:[#allocation4 + $0x128] sm:$0xff] }
 0x21d   : > { %1446 = vmatpush.msrb.mxu1 %v1260_v62  ;;  %1466 = vmatpush.msrb.mxu2 %v1324_v11  ;;  %v1222_v62 = vld [vmem:[#allocation4 + $0x3c0] sm:$0xff]  ;;  %v1135_v11 = vld [vmem:[#allocation4 + $0x108] sm:$0xff] }
 0x21f   : > { %1447 = vmatpush.msrb.mxu1 %v1256_v2  ;;  %1467 = vmatpush.msrb.mxu2 %v1320_v15  ;;  %v1218_v2 = vld [vmem:[#allocation4 + $0x3a0] sm:$0xff]  ;;  %v1131_v15 = vld [vmem:[#allocation4 + $0xe8] sm:$0xff] }
 0x221   : > { %1448 = vmatpush.msrb.mxu1 %v1252_v6  ;;  %1468 = vmatpush.msrb.mxu2 %v1316_v19  ;;  %v1214_v6 = vld [vmem:[#allocation4 + $0x380] sm:$0xff]  ;;  %v1127_v19 = vld [vmem:[#allocation4 + $0xc8] sm:$0xff] }
 0x223   : > { %1449 = vmatpush.msrb.mxu1 %v1248_v10  ;;  %1469 = vmatpush.msrb.mxu2 %v1312_v23  ;;  %v1210_v10 = vld [vmem:[#allocation4 + $0x360] sm:$0xff]  ;;  %v1123_v23 = vld [vmem:[#allocation4 + $0xa8] sm:$0xff] }
 0x225   : > { %1450 = vmatpush.msrb.mxu1 %v1244_v14  ;;  %1470 = vmatpush.msrb.mxu2 %v1308_v27  ;;  %v1206_v14 = vld [vmem:[#allocation4 + $0x340] sm:$0xff]  ;;  %v1119_v27 = vld [vmem:[#allocation4 + $0x88] sm:$0xff] }
 0x227   : > { %1451 = vmatpush.msrb.mxu1 %v1240_v18  ;;  %1471 = vmatpush.msrb.mxu2 %v1304_v30  ;;  %v1202_v18 = vld [vmem:[#allocation4 + $0x320] sm:$0xff] }
 0x228   : > { %v1190_v30 = vld [vmem:[#allocation4 + $0x2c0] sm:$0xff] }
 0x229   : > { %1452 = vmatpush.msrb.mxu1 %v1236_v22  ;;  %1472 = vmatpush.msrb.mxu2 %v1300_v32  ;;  %v1198_v22 = vld [vmem:[#allocation4 + $0x300] sm:$0xff]  ;;  %v1191_v32 = vld [vmem:[#allocation4 + $0x2c8] sm:$0xff] }
 0x22b   : > { %1453 = vmatpush.msrb.mxu1 %v1232_v26  ;;  %1473 = vmatpush.msrb.mxu2 %v1296_v34  ;;  %v1194_v26 = vld [vmem:[#allocation4 + $0x2e0] sm:$0xff] }
 0x22c   : > { %v1186_v34 = vld [vmem:[#allocation4 + $0x2a0] sm:$0xff] }
 0x269   : > { %v1019_v36 = vpop.f32.mrf.mxu1 }
 0x26f   : > { %v1039_v38 = vpop.f32.mrf.mxu2 }
 0x271   : > { %v1061_v40 = vpop.f32.mrf.mxu1 }
 0x272   : > { %v1062_v41 = vadd.f32 %v1061_v40, %v1019_v36  ;;  %v1187_v36 = vld [vmem:[#allocation4 + $0x2a8] sm:$0xff] }
 0x273   : > { %v1183_v40 = vld [vmem:[#allocation4 + $0x288] sm:$0xff] }
 0x274   : > { %v1090_v42 = vadd.f32 %v1086_v39, %v1062_v41  ;;  %v1107_v39 = vld [vmem:[#allocation4 + $0x28] sm:$0xff]  ;;  %v1102_v41 = vld [vmem:[#allocation4] sm:$0xff] }
 0x276   : > { %v4015_v43 = vmax.f32 %v1090_v42, 0.0  ;;  %v1178_v42 = vld [vmem:[#allocation4 + $0x260] sm:$0xff] }
 0x277   : > { %v1081_v45 = vpop.f32.mrf.mxu2 }
 0x278   : > { %v1082_v46 = vadd.f32 %v1081_v45, %v1039_v38  ;;  %v1096_v47 = vrot.slane %v4015_v43, 1  ;;  %v1182_v38 = vld [vmem:[#allocation4 + $0x280] sm:$0xff]  ;;  %v1179_v45 = vld [vmem:[#allocation4 + $0x268] sm:$0xff] }
 0x27a   : > { %v1091_v50 = vadd.f32 %v1087_v44, %v1082_v46  ;;  %3202 = vmatmul.msk.f32.vlgmr.msra.gmra.mxu1 %vm988_vm2, %v1096_v47  ;;  %3204 = vmatmul.msk.f32.vlgmr.msra.gmra.mxu3 %vm988_vm2, %v1096_v47  ;;  %v1103_v44 = vld [vmem:[#allocation4 + $0x8] sm:$0xff]  ;;  %v1164_v46 = vld [vmem:[#allocation4 + $0x1f0] sm:$0xff] }
 0x27b   : > { %1518 = vmatpush.msra.mxu1 %v1162_v48  ;;  %1558 = vmatpush.msra.mxu3 %v1163_v49  ;;  %v1174_v48 = vld [vmem:[#allocation4 + $0x240] sm:$0xff]  ;;  %v1175_v49 = vld [vmem:[#allocation4 + $0x248] sm:$0xff] }
 0x27c   : > { %v4020_v53 = vmax.f32 %v1091_v50, 0.0  ;;  %v1160_v50 = vld [vmem:[#allocation4 + $0x1d0] sm:$0xff] }
 0x27d   : > { %1519 = vmatpush.msra.mxu1 %v1158_v51  ;;  %1559 = vmatpush.msra.mxu3 %v1159_v52  ;;  %v1161_v51 = vld [vmem:[#allocation4 + $0x1d8] sm:$0xff]  ;;  %v1170_v52 = vld [vmem:[#allocation4 + $0x220] sm:$0xff] }
 0x27e   : > { %v1097_v56 = vrot.slane %v4020_v53, 1 }
 0x27f   : > { %1520 = vmatpush.msra.mxu1 %v1154_v54  ;;  %1560 = vmatpush.msra.mxu3 %v1155_v55  ;;  %v1171_v54 = vld [vmem:[#allocation4 + $0x228] sm:$0xff]  ;;  %v1156_v55 = vld [vmem:[#allocation4 + $0x1b0] sm:$0xff] }
 0x280   : > { %3203 = vmatmul.msk.f32.vlgmr.msra.gmra.mxu2 %vm988_vm2, %v1097_v56  ;;  %3205 = vmatmul.msk.f32.vlgmr.msrb.gmra.mxu0 %vm988_vm2, %v1097_v56 }
 0x281   : > { %1521 = vmatpush.msra.mxu1 %v1150_v57  ;;  %1538 = vmatpush.msra.mxu2 %v1226_v58  ;;  %v1166_v57 = vld [vmem:[#allocation4 + $0x200] sm:$0xff]  ;;  %v1167_v58 = vld [vmem:[#allocation4 + $0x208] sm:$0xff] }
 0x282   : > { %1561 = vmatpush.msra.mxu3 %v1151_v59  ;;  %1578 = vmatpush.msrb.mxu0 %v1227_v60  ;;  %v1152_v59 = vld [vmem:[#allocation4 + $0x190] sm:$0xff] }
 0x283   : > { %3206 = vmatmul.msk.f32.vlgmr.msrb.gmra.mxu1 %vm988_vm2, %v1096_v47  ;;  %3208 = vmatmul.msk.f32.vlgmr.msrb.gmra.mxu3 %vm988_vm2, %v1096_v47  ;;  %v1165_v47 = vld [vmem:[#allocation4 + $0x1f8] sm:$0xff]  ;;  %v1228_v60 = vld [vmem:[#allocation4 + $0x3f0] sm:$0xff] }
 0x284   : > { %1522 = vmatpush.msra.mxu1 %v1146_v61  ;;  %1539 = vmatpush.msra.mxu2 %v1222_v62  ;;  %v1153_v61 = vld [vmem:[#allocation4 + $0x198] sm:$0xff] }
 0x285   : > { %1562 = vmatpush.msra.mxu3 %v1147_v63  ;;  %1579 = vmatpush.msrb.mxu0 %v1223_v0  ;;  %v1229_v62 = vld [vmem:[#allocation4 + $0x3f8] sm:$0xff]  ;;  %v1148_v63 = vld [vmem:[#allocation4 + $0x170] sm:$0xff] }
 0x286   : > { %1523 = vmatpush.msra.mxu1 %v1142_v1  ;;  %1540 = vmatpush.msra.mxu2 %v1218_v2  ;;  %v1224_v0 = vld [vmem:[#allocation4 + $0x3d0] sm:$0xff]  ;;  %v1149_v1 = vld [vmem:[#allocation4 + $0x178] sm:$0xff] }
 0x287   : > { %1563 = vmatpush.msra.mxu3 %v1143_v3  ;;  %1580 = vmatpush.msrb.mxu0 %v1219_v4  ;;  %v1225_v2 = vld [vmem:[#allocation4 + $0x3d8] sm:$0xff]  ;;  %v1144_v3 = vld [vmem:[#allocation4 + $0x150] sm:$0xff] }
 0x288   : > { %1524 = vmatpush.msra.mxu1 %v1138_v5  ;;  %1541 = vmatpush.msra.mxu2 %v1214_v6  ;;  %v1220_v4 = vld [vmem:[#allocation4 + $0x3b0] sm:$0xff]  ;;  %v1145_v5 = vld [vmem:[#allocation4 + $0x158] sm:$0xff] }
 0x289   : > { %1564 = vmatpush.msra.mxu3 %v1139_v7  ;;  %1581 = vmatpush.msrb.mxu0 %v1215_v8  ;;  %v1221_v6 = vld [vmem:[#allocation4 + $0x3b8] sm:$0xff]  ;;  %v1140_v7 = vld [vmem:[#allocation4 + $0x130] sm:$0xff] }
 0x28a   : > { %3207 = vmatmul.msk.f32.vlgmr.msrb.gmra.mxu2 %vm988_vm2, %v1097_v56  ;;  %3209 = vmatmul.msk.f32.vlgmr.msra.gmra.mxu0 %vm988_vm2, %v1097_v56  ;;  %v1157_v56 = vld [vmem:[#allocation4 + $0x1b8] sm:$0xff]  ;;  %v1216_v8 = vld [vmem:[#allocation4 + $0x390] sm:$0xff] }
 0x28b   : > { %1525 = vmatpush.msra.mxu1 %v1134_v9  ;;  %1542 = vmatpush.msra.mxu2 %v1210_v10  ;;  %v1141_v9 = vld [vmem:[#allocation4 + $0x138] sm:$0xff] }
 0x28c   : > { %1565 = vmatpush.msra.mxu3 %v1135_v11  ;;  %1582 = vmatpush.msrb.mxu0 %v1211_v12  ;;  %v1217_v10 = vld [vmem:[#allocation4 + $0x398] sm:$0xff]  ;;  %v1136_v11 = vld [vmem:[#allocation4 + $0x110] sm:$0xff] }
 0x28d   : > { %1526 = vmatpush.msra.mxu1 %v1130_v13  ;;  %1543 = vmatpush.msra.mxu2 %v1206_v14  ;;  %v1212_v12 = vld [vmem:[#allocation4 + $0x370] sm:$0xff]  ;;  %v1137_v13 = vld [vmem:[#allocation4 + $0x118] sm:$0xff] }
 0x28e   : > { %1566 = vmatpush.msra.mxu3 %v1131_v15  ;;  %1583 = vmatpush.msrb.mxu0 %v1207_v16  ;;  %v1213_v14 = vld [vmem:[#allocation4 + $0x378] sm:$0xff]  ;;  %v1132_v15 = vld [vmem:[#allocation4 + $0xf0] sm:$0xff] }
 0x28f   : > { %1527 = vmatpush.msra.mxu1 %v1126_v17  ;;  %1544 = vmatpush.msra.mxu2 %v1202_v18  ;;  %v1208_v16 = vld [vmem:[#allocation4 + $0x350] sm:$0xff]  ;;  %v1133_v17 = vld [vmem:[#allocation4 + $0xf8] sm:$0xff] }
 0x290   : > { %1567 = vmatpush.msra.mxu3 %v1127_v19  ;;  %1584 = vmatpush.msrb.mxu0 %v1203_v20  ;;  %v1209_v18 = vld [vmem:[#allocation4 + $0x358] sm:$0xff]  ;;  %v1128_v19 = vld [vmem:[#allocation4 + $0xd0] sm:$0xff] }
 0x291   : > { %1528 = vmatpush.msra.mxu1 %v1122_v21  ;;  %1545 = vmatpush.msra.mxu2 %v1198_v22  ;;  %v1204_v20 = vld [vmem:[#allocation4 + $0x330] sm:$0xff]  ;;  %v1129_v21 = vld [vmem:[#allocation4 + $0xd8] sm:$0xff] }
 0x292   : > { %1568 = vmatpush.msra.mxu3 %v1123_v23  ;;  %1585 = vmatpush.msrb.mxu0 %v1199_v24  ;;  %v1205_v22 = vld [vmem:[#allocation4 + $0x338] sm:$0xff]  ;;  %v1124_v23 = vld [vmem:[#allocation4 + $0xb0] sm:$0xff] }
 0x293   : > { %1529 = vmatpush.msra.mxu1 %v1118_v25  ;;  %1546 = vmatpush.msra.mxu2 %v1194_v26  ;;  %v1200_v24 = vld [vmem:[#allocation4 + $0x310] sm:$0xff]  ;;  %v1125_v25 = vld [vmem:[#allocation4 + $0xb8] sm:$0xff] }
 0x294   : > { %1569 = vmatpush.msra.mxu3 %v1119_v27  ;;  %1586 = vmatpush.msrb.mxu0 %v1195_v28  ;;  %v1201_v26 = vld [vmem:[#allocation4 + $0x318] sm:$0xff]  ;;  %v1120_v27 = vld [vmem:[#allocation4 + $0x90] sm:$0xff] }
 0x295   : > { %1530 = vmatpush.msra.mxu1 %v1114_v29  ;;  %1547 = vmatpush.msra.mxu2 %v1190_v30  ;;  %v1196_v28 = vld [vmem:[#allocation4 + $0x2f0] sm:$0xff]  ;;  %v1121_v29 = vld [vmem:[#allocation4 + $0x98] sm:$0xff] }
 0x296   : > { %1570 = vmatpush.msra.mxu3 %v1115_v31  ;;  %1587 = vmatpush.msrb.mxu0 %v1191_v32  ;;  %v1197_v30 = vld [vmem:[#allocation4 + $0x2f8] sm:$0xff]  ;;  %v1116_v31 = vld [vmem:[#allocation4 + $0x70] sm:$0xff] }
 0x297   : > { %1531 = vmatpush.msra.mxu1 %v1110_v33  ;;  %1548 = vmatpush.msra.mxu2 %v1186_v34  ;;  %v1192_v32 = vld [vmem:[#allocation4 + $0x2d0] sm:$0xff]  ;;  %v1117_v33 = vld [vmem:[#allocation4 + $0x78] sm:$0xff] }
 0x298   : > { %1571 = vmatpush.msra.mxu3 %v1111_v35  ;;  %1588 = vmatpush.msrb.mxu0 %v1187_v36  ;;  %v1193_v34 = vld [vmem:[#allocation4 + $0x2d8] sm:$0xff]  ;;  %v1112_v35 = vld [vmem:[#allocation4 + $0x50] sm:$0xff] }
 0x299   : > { %1532 = vmatpush.msra.mxu1 %v1106_v37  ;;  %1549 = vmatpush.msra.mxu2 %v1182_v38  ;;  %v1188_v36 = vld [vmem:[#allocation4 + $0x2b0] sm:$0xff]  ;;  %v1113_v37 = vld [vmem:[#allocation4 + $0x58] sm:$0xff] }
 0x29a   : > { %1572 = vmatpush.msra.mxu3 %v1107_v39  ;;  %1589 = vmatpush.msrb.mxu0 %v1183_v40  ;;  %v1189_v38 = vld [vmem:[#allocation4 + $0x2b8] sm:$0xff]  ;;  %v1108_v39 = vld [vmem:[#allocation4 + $0x30] sm:$0xff] }
 0x29b   : > { %1533 = vmatpush.msra.mxu1 %v1102_v41  ;;  %1550 = vmatpush.msra.mxu2 %v1178_v42  ;;  %v1184_v40 = vld [vmem:[#allocation4 + $0x290] sm:$0xff]  ;;  %v1109_v41 = vld [vmem:[#allocation4 + $0x38] sm:$0xff] }
 0x29c   : > { %1573 = vmatpush.msra.mxu3 %v1103_v44  ;;  %1590 = vmatpush.msrb.mxu0 %v1179_v45  ;;  %v1185_v42 = vld [vmem:[#allocation4 + $0x298] sm:$0xff]  ;;  %v1104_v44 = vld [vmem:[#allocation4 + $0x10] sm:$0xff] }
 0x29d   : > { %1534 = vmatmul.f32.vlgmr.msra.gmra.mxu1 %v4015_v43  ;;  %1574 = vmatmul.f32.vlgmr.msra.gmra.mxu3 %v4015_v43  ;;  %v1180_v45 = vld [vmem:[#allocation4 + $0x270] sm:$0xff] }
 0x29e   : > { %1598 = vmatpush.msrb.mxu1 %v1164_v46  ;;  %1638 = vmatpush.msrb.mxu3 %v1165_v47  ;;  %v1105_v46 = vld [vmem:[#allocation4 + $0x18] sm:$0xff] }
 0x29f   : > { %1551 = vmatpush.msra.mxu2 %v1174_v48  ;;  %1591 = vmatpush.msrb.mxu0 %v1175_v49  ;;  %v1181_v47 = vld [vmem:[#allocation4 + $0x278] sm:$0xff]  ;;  %v1176_v48 = vld [vmem:[#allocation4 + $0x250] sm:$0xff] }
 0x2a0   : > { %1599 = vmatpush.msrb.mxu1 %v1160_v50  ;;  %1639 = vmatpush.msrb.mxu3 %v1161_v51  ;;  %v1177_v49 = vld [vmem:[#allocation4 + $0x258] sm:$0xff]  ;;  %v2028_v50 = vld [vmem:[#allocation9 + $0x1e0] sm:$0xff]  ;;  %v1172_v51 = vld [vmem:[#allocation4 + $0x230] sm:$0xff] }
 0x2a1   : > { %1552 = vmatpush.msra.mxu2 %v1170_v52  ;;  %1592 = vmatpush.msrb.mxu0 %v1171_v54  ;;  %v1173_v52 = vld [vmem:[#allocation4 + $0x238] sm:$0xff]  ;;  %v2024_v54 = vld [vmem:[#allocation9 + $0x1c0] sm:$0xff] }
 0x2a2   : > { %1600 = vmatpush.msrb.mxu1 %v1156_v55  ;;  %1640 = vmatpush.msrb.mxu3 %v1157_v56  ;;  %v1168_v55 = vld [vmem:[#allocation4 + $0x210] sm:$0xff]  ;;  %v1169_v56 = vld [vmem:[#allocation4 + $0x218] sm:$0xff] }
 0x2a3   : > { %1553 = vmatpush.msra.mxu2 %v1166_v57  ;;  %1593 = vmatpush.msrb.mxu0 %v1167_v58  ;;  %v2092_v57 = vld [vmem:[#allocation9 + $0x3e0] sm:$0xff] }
 0x2a4   : > { %1554 = vmatmul.f32.vlgmr.msra.gmra.mxu2 %v4020_v53  ;;  %1594 = vmatmul.f32.vlgmr.msrb.gmra.mxu0 %v4020_v53  ;;  %v2020_v58 = vld [vmem:[#allocation9 + $0x1a0] sm:$0xff] }
 0x2a5   : > { %1601 = vmatpush.msrb.mxu1 %v1152_v59  ;;  %1618 = vmatpush.msrb.mxu2 %v1228_v60  ;;  %v2016_v59 = vld [vmem:[#allocation9 + $0x180] sm:$0xff] }
 0x2a6   : > { %1641 = vmatpush.msrb.mxu3 %v1153_v61  ;;  %1658 = vmatpush.msra.mxu0 %v1229_v62  ;;  %v2084_v60 = vld [vmem:[#allocation9 + $0x3a0] sm:$0xff] }
 0x2a7   : > { %1602 = vmatpush.msrb.mxu1 %v1148_v63  ;;  %1619 = vmatpush.msrb.mxu2 %v1224_v0  ;;  %v2012_v61 = vld [vmem:[#allocation9 + $0x160] sm:$0xff] }
 0x2a8   : > { %1642 = vmatpush.msrb.mxu3 %v1149_v1  ;;  %1659 = vmatpush.msra.mxu0 %v1225_v2  ;;  %v2080_v62 = vld [vmem:[#allocation9 + $0x380] sm:$0xff] }
 0x2a9   : > { %1603 = vmatpush.msrb.mxu1 %v1144_v3  ;;  %1620 = vmatpush.msrb.mxu2 %v1220_v4  ;;  %v2076_v63 = vld [vmem:[#allocation9 + $0x360] sm:$0xff] }
 0x2aa   : > { %1643 = vmatpush.msrb.mxu3 %v1145_v5  ;;  %1660 = vmatpush.msra.mxu0 %v1221_v6  ;;  %v2072_v0 = vld [vmem:[#allocation9 + $0x340] sm:$0xff] }
 0x2ab   : > { %1604 = vmatpush.msrb.mxu1 %v1140_v7  ;;  %1621 = vmatpush.msrb.mxu2 %v1216_v8  ;;  %v2068_v1 = vld [vmem:[#allocation9 + $0x320] sm:$0xff] }
 0x2ac   : > { %1644 = vmatpush.msrb.mxu3 %v1141_v9  ;;  %1661 = vmatpush.msra.mxu0 %v1217_v10  ;;  %v2008_v2 = vld [vmem:[#allocation9 + $0x140] sm:$0xff] }
 0x2ad   : > { %1605 = vmatpush.msrb.mxu1 %v1136_v11  ;;  %1622 = vmatpush.msrb.mxu2 %v1212_v12  ;;  %v2004_v3 = vld [vmem:[#allocation9 + $0x120] sm:$0xff] }
 0x2ae   : > { %1645 = vmatpush.msrb.mxu3 %v1137_v13  ;;  %1662 = vmatpush.msra.mxu0 %v1213_v14  ;;  %v2060_v4 = vld [vmem:[#allocation9 + $0x2e0] sm:$0xff] }
 0x2af   : > { %1606 = vmatpush.msrb.mxu1 %v1132_v15  ;;  %1623 = vmatpush.msrb.mxu2 %v1208_v16  ;;  %v2000_v5 = vld [vmem:[#allocation9 + $0x100] sm:$0xff] }
 0x2b0   : > { %1646 = vmatpush.msrb.mxu3 %v1133_v17  ;;  %1663 = vmatpush.msra.mxu0 %v1209_v18  ;;  %v2056_v6 = vld [vmem:[#allocation9 + $0x2c0] sm:$0xff] }
 0x2b1   : > { %1607 = vmatpush.msrb.mxu1 %v1128_v19  ;;  %1624 = vmatpush.msrb.mxu2 %v1204_v20  ;;  %v1996_v7 = vld [vmem:[#allocation9 + $0xe0] sm:$0xff]  ;;  %v2093_v20 = vld [vmem:[#allocation9 + $0x3e8] sm:$0xff] }
 0x2b2   : > { %1647 = vmatpush.msrb.mxu3 %v1129_v21  ;;  %1664 = vmatpush.msra.mxu0 %v1205_v22  ;;  %v2052_v8 = vld [vmem:[#allocation9 + $0x2a0] sm:$0xff] }
 0x2b3   : > { %1608 = vmatpush.msrb.mxu1 %v1124_v23  ;;  %1625 = vmatpush.msrb.mxu2 %v1200_v24  ;;  %v1992_v9 = vld [vmem:[#allocation9 + $0xc0] sm:$0xff]  ;;  %v2089_v23 = vld [vmem:[#allocation9 + $0x3c8] sm:$0xff] }
 0x2b4   : > { %1648 = vmatpush.msrb.mxu3 %v1125_v25  ;;  %1665 = vmatpush.msra.mxu0 %v1201_v26  ;;  %v2048_v10 = vld [vmem:[#allocation9 + $0x280] sm:$0xff] }
 0x2b5   : > { %1609 = vmatpush.msrb.mxu1 %v1120_v27  ;;  %1626 = vmatpush.msrb.mxu2 %v1196_v28  ;;  %v1988_v11 = vld [vmem:[#allocation9 + $0xa0] sm:$0xff]  ;;  %v2029_v27 = vld [vmem:[#allocation9 + $0x1e8] sm:$0xff] }
 0x2b6   : > { %1649 = vmatpush.msrb.mxu3 %v1121_v29  ;;  %1666 = vmatpush.msra.mxu0 %v1197_v30  ;;  %v2044_v12 = vld [vmem:[#allocation9 + $0x260] sm:$0xff]  ;;  %v2085_v28 = vld [vmem:[#allocation9 + $0x3a8] sm:$0xff] }
 0x2b7   : > { %1610 = vmatpush.msrb.mxu1 %v1116_v31  ;;  %1627 = vmatpush.msrb.mxu2 %v1192_v32  ;;  %v1984_v13 = vld [vmem:[#allocation9 + $0x80] sm:$0xff]  ;;  %v2025_v31 = vld [vmem:[#allocation9 + $0x1c8] sm:$0xff] }
 0x2b8   : > { %1650 = vmatpush.msrb.mxu3 %v1117_v33  ;;  %1667 = vmatpush.msra.mxu0 %v1193_v34  ;;  %v2040_v14 = vld [vmem:[#allocation9 + $0x240] sm:$0xff]  ;;  %v2081_v32 = vld [vmem:[#allocation9 + $0x388] sm:$0xff] }
 0x2b9   : > { %1611 = vmatpush.msrb.mxu1 %v1112_v35  ;;  %1628 = vmatpush.msrb.mxu2 %v1188_v36  ;;  %v1980_v15 = vld [vmem:[#allocation9 + $0x60] sm:$0xff]  ;;  %v2021_v35 = vld [vmem:[#allocation9 + $0x1a8] sm:$0xff] }
 0x2ba   : > { %1651 = vmatpush.msrb.mxu3 %v1113_v37  ;;  %1668 = vmatpush.msra.mxu0 %v1189_v38  ;;  %v2036_v16 = vld [vmem:[#allocation9 + $0x220] sm:$0xff]  ;;  %v2077_v36 = vld [vmem:[#allocation9 + $0x368] sm:$0xff] }
 0x2bb   : > { %1612 = vmatpush.msrb.mxu1 %v1108_v39  ;;  %1629 = vmatpush.msrb.mxu2 %v1184_v40  ;;  %v1976_v17 = vld [vmem:[#allocation9 + $0x40] sm:$0xff]  ;;  %v2017_v39 = vld [vmem:[#allocation9 + $0x188] sm:$0xff] }
 0x2bc   : > { %1652 = vmatpush.msrb.mxu3 %v1109_v41  ;;  %1669 = vmatpush.msra.mxu0 %v1185_v42  ;;  %v2032_v18 = vld [vmem:[#allocation9 + $0x200] sm:$0xff]  ;;  %v2073_v40 = vld [vmem:[#allocation9 + $0x348] sm:$0xff] }
 0x2bd   : > { %1613 = vmatpush.msrb.mxu1 %v1104_v44  ;;  %1630 = vmatpush.msrb.mxu2 %v1180_v45  ;;  %v2220_v19 = vld [vmem:[#allocation9 + $0x7e0] sm:$0xff]  ;;  %v2013_v44 = vld [vmem:[#allocation9 + $0x168] sm:$0xff] }
 0x2be   : > { %1653 = vmatpush.msrb.mxu3 %v1105_v46  ;;  %1670 = vmatpush.msra.mxu0 %v1181_v47  ;;  %v1972_v21 = vld [vmem:[#allocation9 + $0x20] sm:$0xff]  ;;  %v2069_v45 = vld [vmem:[#allocation9 + $0x328] sm:$0xff] }
 0x2bf   : > { %1614 = vmatmul.f32.vlgmr.msrb.gmra.mxu1 %v4015_v43  ;;  %1654 = vmatmul.f32.vlgmr.msrb.gmra.mxu3 %v4015_v43  ;;  %v2088_v43 = vld [vmem:[#allocation9 + $0x3c0] sm:$0xff] }
 0x2c0   : > { %1631 = vmatpush.msrb.mxu2 %v1176_v48  ;;  %1671 = vmatpush.msra.mxu0 %v1177_v49  ;;  %v2216_v22 = vld [vmem:[#allocation9 + $0x7c0] sm:$0xff]  ;;  %v2009_v48 = vld [vmem:[#allocation9 + $0x148] sm:$0xff] }
 0x2c1   : > { %2224 = vmatpush.msra.mxu1 %v2028_v50  ;;  %v1968_v24 = vld [vmem:[#allocation9] sm:$0xff]  ;;  %v2065_v49 = vld [vmem:[#allocation9 + $0x308] sm:$0xff] }
 0x2c2   : > { %1632 = vmatpush.msrb.mxu2 %v1172_v51  ;;  %1672 = vmatpush.msra.mxu0 %v1173_v52  ;;  %v2156_v25 = vld [vmem:[#allocation9 + $0x5e0] sm:$0xff]  ;;  %v2005_v52 = vld [vmem:[#allocation9 + $0x128] sm:$0xff] }
 0x2c3   : > { %2225 = vmatpush.msra.mxu1 %v2024_v54  ;;  %v2212_v26 = vld [vmem:[#allocation9 + $0x7a0] sm:$0xff]  ;;  %2264 = vmatpush.msra.mxu3 %v2156_v25  ;;  %v2061_v54 = vld [vmem:[#allocation9 + $0x2e8] sm:$0xff] }
 0x2c4   : > { %1633 = vmatpush.msrb.mxu2 %v1168_v55  ;;  %1673 = vmatpush.msra.mxu0 %v1169_v56  ;;  %v2152_v29 = vld [vmem:[#allocation9 + $0x5c0] sm:$0xff]  ;;  %v2157_v25 = vld [vmem:[#allocation9 + $0x5e8] sm:$0xff] }
 0x2c5   : > { %1634 = vmatmul.f32.vlgmr.msrb.gmra.mxu2 %v4020_v53  ;;  %1674 = vmatmul.f32.vlgmr.msra.gmra.mxu0 %v4020_v53  ;;  %v2064_v53 = vld [vmem:[#allocation9 + $0x300] sm:$0xff] }
 0x2c6   : > { %2244 = vmatpush.msra.mxu2 %v2092_v57  ;;  %2226 = vmatpush.msra.mxu1 %v2020_v58  ;;  %v2208_v30 = vld [vmem:[#allocation9 + $0x780] sm:$0xff]  ;;  %v2001_v57 = vld [vmem:[#allocation9 + $0x108] sm:$0xff] }
 0x2c7   : > { %2284 = vmatpush.msrb.mxu0 %v2220_v19  ;;  %2265 = vmatpush.msra.mxu3 %v2152_v29  ;;  %v2148_v33 = vld [vmem:[#allocation9 + $0x5a0] sm:$0xff]  ;;  %v2057_v58 = vld [vmem:[#allocation9 + $0x2c8] sm:$0xff] }
 0x2c8   : > { %2245 = vmatpush.msra.mxu2 %v2088_v43  ;;  %2227 = vmatpush.msra.mxu1 %v2016_v59  ;;  %v2204_v34 = vld [vmem:[#allocation9 + $0x760] sm:$0xff]  ;;  %v2209_v29 = vld [vmem:[#allocation9 + $0x788] sm:$0xff] }
 0x2c9   : > { %2285 = vmatpush.msrb.mxu0 %v2216_v22  ;;  %v2144_v37 = vld [vmem:[#allocation9 + $0x580] sm:$0xff]  ;;  %2266 = vmatpush.msra.mxu3 %v2148_v33  ;;  %v2145_v33 = vld [vmem:[#allocation9 + $0x588] sm:$0xff] }
 0x2ca   : > { %2246 = vmatpush.msra.mxu2 %v2084_v60  ;;  %2228 = vmatpush.msra.mxu1 %v2012_v61  ;;  %v2200_v38 = vld [vmem:[#allocation9 + $0x740] sm:$0xff]  ;;  %v1997_v60 = vld [vmem:[#allocation9 + $0xe8] sm:$0xff] }
 0x2cb   : > { %2286 = vmatpush.msrb.mxu0 %v2212_v26  ;;  %v2140_v41 = vld [vmem:[#allocation9 + $0x560] sm:$0xff]  ;;  %2267 = vmatpush.msra.mxu3 %v2144_v37  ;;  %v2053_v61 = vld [vmem:[#allocation9 + $0x2a8] sm:$0xff] }
 0x2cc   : > { %2247 = vmatpush.msra.mxu2 %v2080_v62  ;;  %2229 = vmatpush.msra.mxu1 %v2008_v2  ;;  %v2196_v42 = vld [vmem:[#allocation9 + $0x720] sm:$0xff]  ;;  %v2213_v26 = vld [vmem:[#allocation9 + $0x7a8] sm:$0xff] }
 0x2cd   : > { %2287 = vmatpush.msrb.mxu0 %v2208_v30  ;;  %2268 = vmatpush.msra.mxu3 %v2140_v41  ;;  %v2136_v46 = vld [vmem:[#allocation9 + $0x540] sm:$0xff]  ;;  %v2149_v30 = vld [vmem:[#allocation9 + $0x5a8] sm:$0xff] }
 0x2ce   : > { %2248 = vmatpush.msra.mxu2 %v2076_v63  ;;  %2230 = vmatpush.msra.mxu1 %v2004_v3  ;;  %v2192_v47 = vld [vmem:[#allocation9 + $0x700] sm:$0xff]  ;;  %v1989_v3 = vld [vmem:[#allocation9 + $0xa8] sm:$0xff] }
 0x2cf   : > { %2288 = vmatpush.msrb.mxu0 %v2204_v34  ;;  %2269 = vmatpush.msra.mxu3 %v2136_v46  ;;  %v2132_v50 = vld [vmem:[#allocation9 + $0x520] sm:$0xff]  ;;  %v2201_v34 = vld [vmem:[#allocation9 + $0x748] sm:$0xff] }
 0x2d0   : > { %2249 = vmatpush.msra.mxu2 %v2072_v0  ;;  %2231 = vmatpush.msra.mxu1 %v2000_v5  ;;  %v2188_v51 = vld [vmem:[#allocation9 + $0x6e0] sm:$0xff]  ;;  %v1993_v0 = vld [vmem:[#allocation9 + $0xc8] sm:$0xff] }
 0x2d1   : > { %2289 = vmatpush.msrb.mxu0 %v2200_v38  ;;  %v2128_v55 = vld [vmem:[#allocation9 + $0x500] sm:$0xff]  ;;  %2270 = vmatpush.msra.mxu3 %v2132_v50  ;;  %v2197_v37 = vld [vmem:[#allocation9 + $0x728] sm:$0xff] }
 0x2d2   : > { %2250 = vmatpush.msra.mxu2 %v2068_v1  ;;  %2232 = vmatpush.msra.mxu1 %v1996_v7  ;;  %v2184_v56 = vld [vmem:[#allocation9 + $0x6c0] sm:$0xff]  ;;  %v2049_v1 = vld [vmem:[#allocation9 + $0x288] sm:$0xff] }
 0x2d3   : > { %2290 = vmatpush.msrb.mxu0 %v2196_v42  ;;  %2271 = vmatpush.msra.mxu3 %v2128_v55  ;;  %v2124_v43 = vld [vmem:[#allocation9 + $0x4e0] sm:$0xff]  ;;  %v1985_v7 = vld [vmem:[#allocation9 + $0x88] sm:$0xff] }
 0x2d4   : > { %2251 = vmatpush.msra.mxu2 %v2064_v53  ;;  %2233 = vmatpush.msra.mxu1 %v1992_v9  ;;  %v2180_v59 = vld [vmem:[#allocation9 + $0x6a0] sm:$0xff]  ;;  %v2193_v41 = vld [vmem:[#allocation9 + $0x708] sm:$0xff] }
 0x2d5   : > { %2291 = vmatpush.msrb.mxu0 %v2192_v47  ;;  %2272 = vmatpush.msra.mxu3 %v2124_v43  ;;  %v2120_v62 = vld [vmem:[#allocation9 + $0x4c0] sm:$0xff]  ;;  %v2133_v42 = vld [vmem:[#allocation9 + $0x528] sm:$0xff] }
 0x2d6   : > { %2252 = vmatpush.msra.mxu2 %v2060_v4  ;;  %2234 = vmatpush.msra.mxu1 %v1988_v11  ;;  %v2176_v63 = vld [vmem:[#allocation9 + $0x680] sm:$0xff]  ;;  %v2045_v4 = vld [vmem:[#allocation9 + $0x268] sm:$0xff] }
 0x2d7   : > { %2292 = vmatpush.msrb.mxu0 %v2188_v51  ;;  %2273 = vmatpush.msra.mxu3 %v2120_v62  ;;  %v2116_v2 = vld [vmem:[#allocation9 + $0x4a0] sm:$0xff]  ;;  %v1981_v11 = vld [vmem:[#allocation9 + $0x68] sm:$0xff] }
 0x2d8   : > { %2253 = vmatpush.msra.mxu2 %v2056_v6  ;;  %2235 = vmatpush.msra.mxu1 %v1984_v13  ;;  %v2172_v53 = vld [vmem:[#allocation9 + $0x660] sm:$0xff]  ;;  %v2129_v46 = vld [vmem:[#allocation9 + $0x508] sm:$0xff] }
 0x2d9   : > { %2293 = vmatpush.msrb.mxu0 %v2184_v56  ;;  %2274 = vmatpush.msra.mxu3 %v2116_v2  ;;  %v2112_v5 = vld [vmem:[#allocation9 + $0x480] sm:$0xff]  ;;  %v2185_v47 = vld [vmem:[#allocation9 + $0x6c8] sm:$0xff] }
 0x2da   : > { %2254 = vmatpush.msra.mxu2 %v2052_v8  ;;  %2236 = vmatpush.msra.mxu1 %v1980_v15  ;;  %v2168_v6 = vld [vmem:[#allocation9 + $0x640] sm:$0xff]  ;;  %v2041_v8 = vld [vmem:[#allocation9 + $0x248] sm:$0xff] }
 0x2db   : > { %2294 = vmatpush.msrb.mxu0 %v2180_v59  ;;  %2275 = vmatpush.msra.mxu3 %v2112_v5  ;;  %v2108_v9 = vld [vmem:[#allocation9 + $0x460] sm:$0xff]  ;;  %v1977_v15 = vld [vmem:[#allocation9 + $0x48] sm:$0xff] }
 0x2dc   : > { %2255 = vmatpush.msra.mxu2 %v2048_v10  ;;  %2237 = vmatpush.msra.mxu1 %v1976_v17  ;;  %v2164_v10 = vld [vmem:[#allocation9 + $0x620] sm:$0xff]  ;;  %v2221_v17 = vld [vmem:[#allocation9 + $0x7e8] sm:$0xff] }
 0x2dd   : > { %2295 = vmatpush.msrb.mxu0 %v2176_v63  ;;  %2276 = vmatpush.msra.mxu3 %v2108_v9  ;;  %v2104_v13 = vld [vmem:[#allocation9 + $0x440] sm:$0xff]  ;;  %v2181_v55 = vld [vmem:[#allocation9 + $0x6a8] sm:$0xff] }
 0x2de   : > { %2256 = vmatpush.msra.mxu2 %v2044_v12  ;;  %2238 = vmatpush.msra.mxu1 %v1972_v21  ;;  %v2037_v12 = vld [vmem:[#allocation9 + $0x228] sm:$0xff]  ;;  %v2100_v19 = vld [vmem:[#allocation9 + $0x420] sm:$0xff] }
 0x2df   : > { %2296 = vmatpush.msrb.mxu0 %v2172_v53  ;;  %2277 = vmatpush.msra.mxu3 %v2104_v13  ;;  %v2217_v21 = vld [vmem:[#allocation9 + $0x7c8] sm:$0xff]  ;;  %v2096_v22 = vld [vmem:[#allocation9 + $0x400] sm:$0xff] }
 0x2e0   : > { %2257 = vmatpush.msra.mxu2 %v2040_v14  ;;  %2239 = vmatpush.msra.mxu1 %v1968_v24  ;;  %v2160_v14 = vld [vmem:[#allocation9 + $0x600] sm:$0xff]  ;;  %v2121_v43 = vld [vmem:[#allocation9 + $0x4c8] sm:$0xff] }
 0x2e1   : > { %2297 = vmatpush.msrb.mxu0 %v2168_v6  ;;  %2278 = vmatpush.msra.mxu3 %v2100_v19  ;;  %v2177_v59 = vld [vmem:[#allocation9 + $0x688] sm:$0xff]  ;;  %v2082_v19 = vld [vmem:[#allocation9 + $0x390] sm:$0xff] }
 0x2e2   : > { %2258 = vmatpush.msra.mxu2 %v2036_v16  ;;  %2304 = vmatpush.msrb.mxu1 %v2029_v27  ;;  %v2033_v16 = vld [vmem:[#allocation9 + $0x208] sm:$0xff] }
 0x2e3   : > { %2298 = vmatpush.msrb.mxu0 %v2164_v10  ;;  %2279 = vmatpush.msra.mxu3 %v2096_v22  ;;  %v2117_v62 = vld [vmem:[#allocation9 + $0x4a8] sm:$0xff]  ;;  %v2078_v22 = vld [vmem:[#allocation9 + $0x370] sm:$0xff] }
 0x2e4   : > { %2259 = vmatpush.msra.mxu2 %v2032_v18  ;;  %2305 = vmatpush.msrb.mxu1 %v2025_v31  ;;  %v2205_v31 = vld [vmem:[#allocation9 + $0x768] sm:$0xff] }
 0x2e5   : > { %2299 = vmatpush.msrb.mxu0 %v2160_v14  ;;  %2344 = vmatpush.msrb.mxu3 %v2157_v25  ;;  %v2173_v63 = vld [vmem:[#allocation9 + $0x668] sm:$0xff]  ;;  %v2018_v25 = vld [vmem:[#allocation9 + $0x190] sm:$0xff] }
 0x2e6   : > { %2324 = vmatpush.msrb.mxu2 %v2093_v20  ;;  %2306 = vmatpush.msrb.mxu1 %v2021_v35  ;;  %v1973_v20 = vld [vmem:[#allocation9 + $0x28] sm:$0xff] }
 0x2e7   : > { %2364 = vmatpush.msra.mxu0 %v2221_v17  ;;  %v2165_v9 = vld [vmem:[#allocation9 + $0x628] sm:$0xff]  ;;  %v2030_v17 = vld [vmem:[#allocation9 + $0x1f0] sm:$0xff] }
 0x2e8   : > { %2325 = vmatpush.msrb.mxu2 %v2089_v23  ;;  %2307 = vmatpush.msrb.mxu1 %v2017_v39  ;;  %v1969_v23 = vld [vmem:[#allocation9 + $0x8] sm:$0xff] }
 0x2e9   : > { %2365 = vmatpush.msra.mxu0 %v2217_v21  ;;  %v2161_v13 = vld [vmem:[#allocation9 + $0x608] sm:$0xff] }
 0x2ea   : > { %2326 = vmatpush.msrb.mxu2 %v2085_v28  ;;  %2308 = vmatpush.msrb.mxu1 %v2013_v44  ;;  %v2153_v28 = vld [vmem:[#allocation9 + $0x5c8] sm:$0xff] }
 0x2eb   : > { %2366 = vmatpush.msra.mxu0 %v2213_v26  ;;  %2345 = vmatpush.msrb.mxu3 %v2153_v28  ;;  %v2189_v44 = vld [vmem:[#allocation9 + $0x6e8] sm:$0xff]  ;;  %v2070_v26 = vld [vmem:[#allocation9 + $0x330] sm:$0xff] }
 0x2ec   : > { %2327 = vmatpush.msrb.mxu2 %v2081_v32  ;;  %2309 = vmatpush.msrb.mxu1 %v2009_v48  ;;  %v2097_v21 = vld [vmem:[#allocation9 + $0x408] sm:$0xff]  ;;  %v2066_v28 = vld [vmem:[#allocation9 + $0x310] sm:$0xff] }
 0x2ed   : > { %2367 = vmatpush.msra.mxu0 %v2209_v29  ;;  %2346 = vmatpush.msrb.mxu3 %v2149_v30  ;;  %v2010_v29 = vld [vmem:[#allocation9 + $0x150] sm:$0xff] }
 0x2ee   : > { %2328 = vmatpush.msrb.mxu2 %v2077_v36  ;;  %2310 = vmatpush.msrb.mxu1 %v2005_v52  ;;  %v2141_v36 = vld [vmem:[#allocation9 + $0x568] sm:$0xff]  ;;  %v2062_v30 = vld [vmem:[#allocation9 + $0x2f0] sm:$0xff] }
 0x2ef   : > { %2368 = vmatpush.msra.mxu0 %v2205_v31  ;;  %2347 = vmatpush.msrb.mxu3 %v2145_v33  ;;  %v2006_v31 = vld [vmem:[#allocation9 + $0x130] sm:$0xff] }
 0x2f0   : > { %2329 = vmatpush.msrb.mxu2 %v2073_v40  ;;  %2311 = vmatpush.msrb.mxu1 %v2001_v57  ;;  %v2137_v40 = vld [vmem:[#allocation9 + $0x548] sm:$0xff]  ;;  %v2002_v33 = vld [vmem:[#allocation9 + $0x110] sm:$0xff] }
 0x2f1   : > { %2369 = vmatpush.msra.mxu0 %v2201_v34  ;;  %2348 = vmatpush.msrb.mxu3 %v2141_v36  ;;  %v2054_v34 = vld [vmem:[#allocation9 + $0x2b0] sm:$0xff] }
 0x2f2   : > { %2330 = vmatpush.msrb.mxu2 %v2069_v45  ;;  %2312 = vmatpush.msrb.mxu1 %v1997_v60  ;;  %v4046_v45 = vld [vmem:[%s4182_s12] sm:$0xf]  ;;  %v1998_v36 = vld [vmem:[#allocation9 + $0xf0] sm:$0xff] }
 0x2f3   : > { %2370 = vmatpush.msra.mxu0 %v2197_v37  ;;  %2349 = vmatpush.msrb.mxu3 %v2137_v40  ;;  %v1681_v52 = vperm.slane %v4046_v45, 1  ;;  %v2050_v37 = vld [vmem:[#allocation9 + $0x290] sm:$0xff] }
 0x2f4   : > { %2331 = vmatpush.msrb.mxu2 %v2065_v49  ;;  %2313 = vmatpush.msrb.mxu1 %v1993_v0  ;;  %v1994_v40 = vld [vmem:[#allocation9 + $0xd0] sm:$0xff] }
 0x2f5   : > { %2371 = vmatpush.msra.mxu0 %v2193_v41  ;;  %2350 = vmatpush.msrb.mxu3 %v2133_v42  ;;  %v2046_v42 = vld [vmem:[#allocation9 + $0x270] sm:$0xff] }
 0x2f6   : > { %2332 = vmatpush.msrb.mxu2 %v2061_v54  ;;  %2314 = vmatpush.msrb.mxu1 %v1989_v3  ;;  %v2125_v54 = vld [vmem:[#allocation9 + $0x4e8] sm:$0xff] }
 0x2f7   : > { %v1375_v27 = vpop.f32.mrf.mxu1  ;;  %2372 = vmatpush.msra.mxu0 %v2189_v44  ;;  %2351 = vmatpush.msrb.mxu3 %v2129_v46  ;;  %v2113_v3 = vld [vmem:[#allocation9 + $0x488] sm:$0xff]  ;;  %v1990_v46 = vld [vmem:[#allocation9 + $0xb0] sm:$0xff] }
 0x2f8   : > { %2333 = vmatpush.msrb.mxu2 %v2057_v58  ;;  %2315 = vmatpush.msrb.mxu1 %v1985_v7  ;;  %v2094_v7 = vld [vmem:[#allocation9 + $0x3f0] sm:$0xff] }
 0x2f9   : > { %2373 = vmatpush.msra.mxu0 %v2185_v47  ;;  %2352 = vmatpush.msrb.mxu3 %v2125_v54  ;;  %v1986_v54 = vld [vmem:[#allocation9 + $0x90] sm:$0xff] }
 0x2fa   : > { %2334 = vmatpush.msrb.mxu2 %v2053_v61  ;;  %2316 = vmatpush.msrb.mxu1 %v1981_v11  ;;  %v2090_v11 = vld [vmem:[#allocation9 + $0x3d0] sm:$0xff] }
 0x2fb   : > { %2374 = vmatpush.msra.mxu0 %v2181_v55  ;;  %2353 = vmatpush.msrb.mxu3 %v2121_v43  ;;  %v1682_v43 = vperm.slane %v4046_v45, 2 }
 0x2fc   : > { %2335 = vmatpush.msrb.mxu2 %v2049_v1  ;;  %2317 = vmatpush.msrb.mxu1 %v1977_v15  ;;  %v1680_v1 = vperm.slane %v4046_v45, 0  ;;  %v2086_v15 = vld [vmem:[#allocation9 + $0x3b0] sm:$0xff] }
 0x2fd   : > { %v1415_v18 = vpop.f32.mrf.mxu3  ;;  %v1435_v24 = vpop.f32.mrf.mxu0  ;;  %2375 = vmatpush.msra.mxu0 %v2177_v59  ;;  %2354 = vmatpush.msrb.mxu3 %v2117_v62  ;;  %v2034_v59 = vld [vmem:[#allocation9 + $0x210] sm:$0xff] }
 0x2fe   : > { %2336 = vmatpush.msrb.mxu2 %v2045_v4  ;;  %2318 = vmatpush.msrb.mxu1 %v1973_v20  ;;  %v1436_v48 = vadd.f32 %v1435_v24, %v1415_v18  ;;  %v2169_v4 = vld [vmem:[#allocation9 + $0x648] sm:$0xff]  ;;  %v2026_v20 = vld [vmem:[#allocation9 + $0x1d0] sm:$0xff] }
 0x2ff   : > { %2376 = vmatpush.msra.mxu0 %v2173_v63  ;;  %2355 = vmatpush.msrb.mxu3 %v2113_v3  ;;  %v2101_v18 = vld [vmem:[#allocation9 + $0x428] sm:$0xff]  ;;  %v2074_v24 = vld [vmem:[#allocation9 + $0x350] sm:$0xff] }
 0x300   : > { %2337 = vmatpush.msrb.mxu2 %v2041_v8  ;;  %2319 = vmatpush.msrb.mxu1 %v1969_v23  ;;  %v4041_v39 = vpop.f32.mrf.mxu1  ;;  %v2109_v8 = vld [vmem:[#allocation9 + $0x468] sm:$0xff]  ;;  %v2022_v23 = vld [vmem:[#allocation9 + $0x1b0] sm:$0xff] }
 0x301   : > { %2377 = vmatpush.msra.mxu0 %v2169_v4  ;;  %2356 = vmatpush.msrb.mxu3 %v2109_v8  ;;  %v1970_v3 = vld [vmem:[#allocation9 + $0x10] sm:$0xff] }
 0x302   : > { %2338 = vmatpush.msrb.mxu2 %v2037_v12  ;;  %v2105_v12 = vld [vmem:[#allocation9 + $0x448] sm:$0xff] }
 0x303   : > { %v1395_v32 = vpop.f32.mrf.mxu2  ;;  %2378 = vmatpush.msra.mxu0 %v2165_v9  ;;  %2357 = vmatpush.msrb.mxu3 %v2105_v12  ;;  %v2158_v9 = vld [vmem:[#allocation9 + $0x5f0] sm:$0xff]  ;;  %v2027_v12 = vld [vmem:[#allocation9 + $0x1d8] sm:$0xff] }
 0x304   : > { %2339 = vmatpush.msrb.mxu2 %v2033_v16  ;;  %v1396_v60 = vadd.f32 %v1395_v32, %v1375_v27  ;;  %v2014_v27 = vld [vmem:[#allocation9 + $0x170] sm:$0xff] }
 0x305   : > { %2379 = vmatpush.msra.mxu0 %v2161_v13  ;;  %2358 = vmatpush.msrb.mxu3 %v2101_v18  ;;  %v2058_v32 = vld [vmem:[#allocation9 + $0x2d0] sm:$0xff] }
 0x306   : > { %v4037_v35 = vpop.f32.mrf.mxu3  ;;  %v2154_v13 = vld [vmem:[#allocation9 + $0x5d0] sm:$0xff] }
 0x307   : > { %v4039_v38 = vpop.f32.mrf.mxu0  ;;  %2359 = vmatpush.msrb.mxu3 %v2097_v21  ;;  %v2150_v18 = vld [vmem:[#allocation9 + $0x5b0] sm:$0xff]  ;;  %v2079_v21 = vld [vmem:[#allocation9 + $0x378] sm:$0xff] }
 0x308   : > { %v1516_v41 = vadd.f32 %v4039_v38, %v4037_v35  ;;  %v2038_v35 = vld [vmem:[#allocation9 + $0x230] sm:$0xff] }
 0x309   : > { %v1982_v38 = vld [vmem:[#allocation9 + $0x70] sm:$0xff] }
 0x30d   : > { %v4048_v49 = vpop.f32.mrf.mxu2 }
 0x30e   : > { %v1476_v55 = vadd.f32 %v4048_v49, %v4041_v39  ;;  %v1974_v39 = vld [vmem:[#allocation9 + $0x30] sm:$0xff] }
 0x31a   : > { %v1535_v57 = vpop.f32.mrf.mxu1 }
 0x31b   : > { %v1536_v0 = vadd.f32 %v1535_v57, %v1396_v60 }
 0x320   : > { %v1575_v50 = vpop.f32.mrf.mxu3 }
 0x321   : > { %v1576_v51 = vadd.f32 %v1575_v50, %v1436_v48  ;;  %v1595_v56 = vpop.f32.mrf.mxu0  ;;  %v1683_v48 = vperm.slane %v4046_v45, 3  ;;  %v2042_v50 = vld [vmem:[#allocation9 + $0x250] sm:$0xff] }
 0x322   : > { %v2222_v45 = vld [vmem:[#allocation9 + $0x7f0] sm:$0xff] }
 0x323   : > { %v1596_v58 = vadd.f32 %v1595_v56, %v1576_v51 }
 0x325   : > { %v1689_v61 = vadd.f32 %v1681_v52, %v1596_v58 }
 0x327   : > { %v4052_v2 = vmax.f32 %v1689_v61, 0.0  ;;  %v1555_v53 = vpop.f32.mrf.mxu2  ;;  %v1978_v61 = vld [vmem:[#allocation9 + $0x50] sm:$0xff] }
 0x328   : > { %v1556_v5 = vadd.f32 %v1555_v53, %v1536_v0  ;;  %v2095_v0 = vld [vmem:[#allocation9 + $0x3f8] sm:$0xff] }
 0x329   : > { %v4055_v6 = vrot.slane %v4052_v2, 1  ;;  %v2091_v53 = vld [vmem:[#allocation9 + $0x3d8] sm:$0xff] }
 0x32a   : > { %v1688_v10 = vadd.f32 %v1680_v1, %v1556_v5  ;;  %v2218_v5 = vld [vmem:[#allocation9 + $0x7d0] sm:$0xff] }
 0x32b   : > { %3211 = vmatmul.msk.f32.vlgmr.msra.gmra.mxu2 %vm988_vm2, %v4055_v6 }
 0x32c   : > { %v4059_v14 = vmax.f32 %v1688_v10, 0.0  ;;  %2404 = vmatpush.msra.mxu2 %v2094_v7  ;;  %v2031_v7 = vld [vmem:[#allocation9 + $0x1f8] sm:$0xff]  ;;  %v2214_v10 = vld [vmem:[#allocation9 + $0x7b0] sm:$0xff] }
 0x32e   : > { %2405 = vmatpush.msra.mxu2 %v2090_v11  ;;  %v4062_v16 = vrot.slane %v4059_v14, 1  ;;  %v2087_v11 = vld [vmem:[#allocation9 + $0x3b8] sm:$0xff] }
 0x330   : > { %3210 = vmatmul.msk.f32.vlgmr.msra.gmra.mxu1 %vm988_vm2, %v4062_v16  ;;  %2406 = vmatpush.msra.mxu2 %v2086_v15  ;;  %v2210_v15 = vld [vmem:[#allocation9 + $0x790] sm:$0xff] }
 0x331   : > { %2384 = vmatpush.msra.mxu1 %v2030_v17  ;;  %v2083_v17 = vld [vmem:[#allocation9 + $0x398] sm:$0xff] }
 0x332   : > { %2407 = vmatpush.msra.mxu2 %v2082_v19  ;;  %v2206_v19 = vld [vmem:[#allocation9 + $0x770] sm:$0xff] }
 0x333   : > { %2385 = vmatpush.msra.mxu1 %v2026_v20  ;;  %3215 = vmatmul.msk.f32.vlgmr.msrb.gmra.mxu2 %vm988_vm2, %v4055_v6  ;;  %v2023_v20 = vld [vmem:[#allocation9 + $0x1b8] sm:$0xff] }
 0x334   : > { %2408 = vmatpush.msra.mxu2 %v2078_v22  ;;  %v2146_v22 = vld [vmem:[#allocation9 + $0x590] sm:$0xff] }
 0x335   : > { %2386 = vmatpush.msra.mxu1 %v2022_v23  ;;  %v2202_v23 = vld [vmem:[#allocation9 + $0x750] sm:$0xff] }
 0x336   : > { %2409 = vmatpush.msra.mxu2 %v2074_v24  ;;  %v2019_v24 = vld [vmem:[#allocation9 + $0x198] sm:$0xff] }
 0x337   : > { %2387 = vmatpush.msra.mxu1 %v2018_v25  ;;  %v2075_v25 = vld [vmem:[#allocation9 + $0x358] sm:$0xff] }
 0x338   : > { %3214 = vmatmul.msk.f32.vlgmr.msrb.gmra.mxu1 %vm988_vm2, %v4062_v16  ;;  %2410 = vmatpush.msra.mxu2 %v2070_v26  ;;  %v2198_v26 = vld [vmem:[#allocation9 + $0x730] sm:$0xff] }
 0x339   : > { %2388 = vmatpush.msra.mxu1 %v2014_v27  ;;  %v2142_v27 = vld [vmem:[#allocation9 + $0x570] sm:$0xff] }
 0x33a   : > { %2411 = vmatpush.msra.mxu2 %v2066_v28  ;;  %v2015_v28 = vld [vmem:[#allocation9 + $0x178] sm:$0xff] }
 0x33b   : > { %2389 = vmatpush.msra.mxu1 %v2010_v29  ;;  %v2071_v29 = vld [vmem:[#allocation9 + $0x338] sm:$0xff] }
 0x33c   : > { %2412 = vmatpush.msra.mxu2 %v2062_v30  ;;  %v1615_v51 = vpop.f32.mrf.mxu1  ;;  %v2194_v30 = vld [vmem:[#allocation9 + $0x710] sm:$0xff] }
 0x33d   : > { %2390 = vmatpush.msra.mxu1 %v2006_v31  ;;  %v1616_v57 = vadd.f32 %v1615_v51, %v1476_v55  ;;  %v2138_v31 = vld [vmem:[#allocation9 + $0x550] sm:$0xff]  ;;  %v2055_v51 = vld [vmem:[#allocation9 + $0x2b8] sm:$0xff] }
 0x33e   : > { %2413 = vmatpush.msra.mxu2 %v2058_v32  ;;  %v2011_v32 = vld [vmem:[#allocation9 + $0x158] sm:$0xff] }
 0x33f   : > { %2391 = vmatpush.msra.mxu1 %v2002_v33  ;;  %v2067_v33 = vld [vmem:[#allocation9 + $0x318] sm:$0xff] }
 0x340   : > { %2414 = vmatpush.msra.mxu2 %v2054_v34  ;;  %v2190_v34 = vld [vmem:[#allocation9 + $0x6f0] sm:$0xff]  ;;  %v1995_v55 = vld [vmem:[#allocation9 + $0xd8] sm:$0xff] }
 0x341   : > { %2392 = vmatpush.msra.mxu1 %v1998_v36  ;;  %v2134_v36 = vld [vmem:[#allocation9 + $0x530] sm:$0xff] }
 0x342   : > { %v1655_v44 = vpop.f32.mrf.mxu3  ;;  %2415 = vmatpush.msra.mxu2 %v2050_v37  ;;  %v1675_v52 = vpop.f32.mrf.mxu0  ;;  %v2007_v37 = vld [vmem:[#allocation9 + $0x138] sm:$0xff] }
 0x343   : > { %v1656_v47 = vadd.f32 %v1655_v44, %v1516_v41  ;;  %2393 = vmatpush.msra.mxu1 %v1994_v40  ;;  %v2063_v40 = vld [vmem:[#allocation9 + $0x2f8] sm:$0xff]  ;;  %v2186_v41 = vld [vmem:[#allocation9 + $0x6d0] sm:$0xff] }
 0x344   : > { %2416 = vmatpush.msra.mxu2 %v2046_v42  ;;  %v2130_v42 = vld [vmem:[#allocation9 + $0x510] sm:$0xff]  ;;  %v2003_v44 = vld [vmem:[#allocation9 + $0x118] sm:$0xff] }
 0x345   : > { %v1676_v56 = vadd.f32 %v1675_v52, %v1656_v47  ;;  %2394 = vmatpush.msra.mxu1 %v1990_v46  ;;  %v2059_v46 = vld [vmem:[#allocation9 + $0x2d8] sm:$0xff]  ;;  %v2182_v47 = vld [vmem:[#allocation9 + $0x6b0] sm:$0xff] }
 0x346   : > { %2417 = vmatpush.msra.mxu2 %v2042_v50  ;;  %v1999_v50 = vld [vmem:[#allocation9 + $0xf8] sm:$0xff]  ;;  %v2178_v52 = vld [vmem:[#allocation9 + $0x690] sm:$0xff] }
 0x347   : > { %v1691_v58 = vadd.f32 %v1683_v48, %v1676_v56  ;;  %2395 = vmatpush.msra.mxu1 %v1986_v54  ;;  %v2126_v48 = vld [vmem:[#allocation9 + $0x4f0] sm:$0xff]  ;;  %v2051_v56 = vld [vmem:[#allocation9 + $0x298] sm:$0xff] }
 0x348   : > { %v1635_v60 = vpop.f32.mrf.mxu2  ;;  %2418 = vmatpush.msra.mxu2 %v2038_v35  ;;  %v2122_v54 = vld [vmem:[#allocation9 + $0x4d0] sm:$0xff] }
 0x349   : > { %v4076_v62 = vmax.f32 %v1691_v58, 0.0  ;;  %v1636_v63 = vadd.f32 %v1635_v60, %v1616_v57  ;;  %2396 = vmatpush.msra.mxu1 %v1982_v38  ;;  %v2174_v35 = vld [vmem:[#allocation9 + $0x670] sm:$0xff]  ;;  %v1991_v57 = vld [vmem:[#allocation9 + $0xb8] sm:$0xff] }
 0x34a   : > { %2419 = vmatpush.msra.mxu2 %v2034_v59  ;;  %v2118_v38 = vld [vmem:[#allocation9 + $0x4b0] sm:$0xff]  ;;  %v2047_v58 = vld [vmem:[#allocation9 + $0x278] sm:$0xff] }
 0x34b   : > { %v1690_v49 = vadd.f32 %v1682_v43, %v1636_v63  ;;  %2397 = vmatpush.msra.mxu1 %v1978_v61  ;;  %v4079_v1 = vrot.slane %v4076_v62, 1  ;;  %3219 = vmatmul.msk.f32.vlgmr.msra.gmra.mxu2 %vm988_vm2, %v4055_v6  ;;  %v2170_v43 = vld [vmem:[#allocation9 + $0x650] sm:$0xff]  ;;  %v1987_v60 = vld [vmem:[#allocation9 + $0x98] sm:$0xff] }
 0x34c   : > { %2484 = vmatpush.msrb.mxu2 %v2095_v0  ;;  %v2114_v59 = vld [vmem:[#allocation9 + $0x490] sm:$0xff]  ;;  %v2043_v61 = vld [vmem:[#allocation9 + $0x258] sm:$0xff] }
 0x34d   : > { %v4083_v4 = vmax.f32 %v1690_v49, 0.0  ;;  %3213 = vmatmul.msk.f32.vlgmr.msrb.gmra.mxu0 %vm988_vm2, %v4079_v1  ;;  %2398 = vmatpush.msra.mxu1 %v1974_v39  ;;  %v2166_v63 = vld [vmem:[#allocation9 + $0x630] sm:$0xff]  ;;  %v1983_v39 = vld [vmem:[#allocation9 + $0x78] sm:$0xff] }
 0x34e   : > { %2444 = vmatpush.msrb.mxu0 %v2222_v45  ;;  %2485 = vmatpush.msrb.mxu2 %v2091_v53  ;;  %v2110_v0 = vld [vmem:[#allocation9 + $0x470] sm:$0xff]  ;;  %v2039_v49 = vld [vmem:[#allocation9 + $0x238] sm:$0xff] }
 0x34f   : > { %2399 = vmatpush.msra.mxu1 %v1970_v3  ;;  %v4088_v8 = vrot.slane %v4083_v4, 1  ;;  %v2162_v45 = vld [vmem:[#allocation9 + $0x610] sm:$0xff]  ;;  %v1979_v3 = vld [vmem:[#allocation9 + $0x58] sm:$0xff] }
 0x350   : > { %2445 = vmatpush.msrb.mxu0 %v2218_v5  ;;  %3218 = vmatmul.msk.f32.vlgmr.msra.gmra.mxu1 %vm988_vm2, %v4062_v16  ;;  %v2106_v53 = vld [vmem:[#allocation9 + $0x450] sm:$0xff]  ;;  %v2035_v5 = vld [vmem:[#allocation9 + $0x218] sm:$0xff] }
 0x351   : > { %3212 = vmatmul.msk.f32.vlgmr.msra.gmra.mxu3 %vm988_vm2, %v4088_v8  ;;  %2464 = vmatpush.msrb.mxu1 %v2031_v7  ;;  %v2223_v7 = vld [vmem:[#allocation9 + $0x7f8] sm:$0xff] }
 0x352   : > { %2424 = vmatpush.msra.mxu3 %v2158_v9  ;;  %2446 = vmatpush.msrb.mxu0 %v2214_v10  ;;  %v1836_v9 = vld [vmem:[#allocation8 + $0x3e0] sm:$0xff]  ;;  %v2102_v10 = vld [vmem:[#allocation9 + $0x430] sm:$0xff] }
 0x353   : > { %2486 = vmatpush.msrb.mxu2 %v2087_v11  ;;  %2465 = vmatpush.msrb.mxu1 %v2027_v12  ;;  %v1975_v11 = vld [vmem:[#allocation9 + $0x38] sm:$0xff] }
 0x354   : > { %2425 = vmatpush.msra.mxu3 %v2154_v13  ;;  %2447 = vmatpush.msrb.mxu0 %v2210_v15  ;;  %v2219_v12 = vld [vmem:[#allocation9 + $0x7d8] sm:$0xff]  ;;  %v1832_v13 = vld [vmem:[#allocation8 + $0x3c0] sm:$0xff]  ;;  %v2098_v15 = vld [vmem:[#allocation9 + $0x410] sm:$0xff] }
 0x355   : > { %2487 = vmatpush.msrb.mxu2 %v2083_v17  ;;  %3217 = vmatmul.msk.f32.vlgmr.msra.gmra.mxu0 %vm988_vm2, %v4079_v1  ;;  %v1971_v17 = vld [vmem:[#allocation9 + $0x18] sm:$0xff] }
 0x356   : > { %2426 = vmatpush.msra.mxu3 %v2150_v18  ;;  %2448 = vmatpush.msrb.mxu0 %v2206_v19  ;;  %v2159_v18 = vld [vmem:[#allocation9 + $0x5f8] sm:$0xff] }
 0x357   : > { %2466 = vmatpush.msrb.mxu1 %v2023_v20  ;;  %2488 = vmatpush.msrb.mxu2 %v2079_v21  ;;  %v2215_v19 = vld [vmem:[#allocation9 + $0x7b8] sm:$0xff]  ;;  %v1772_v20 = vld [vmem:[#allocation8 + $0x1e0] sm:$0xff] }
 0x358   : > { %2427 = vmatpush.msra.mxu3 %v2146_v22  ;;  %2449 = vmatpush.msrb.mxu0 %v2202_v23  ;;  %v1828_v21 = vld [vmem:[#allocation8 + $0x3a0] sm:$0xff]  ;;  %v2155_v22 = vld [vmem:[#allocation9 + $0x5d8] sm:$0xff] }
 0x359   : > { %2467 = vmatpush.msrb.mxu1 %v2019_v24  ;;  %2489 = vmatpush.msrb.mxu2 %v2075_v25  ;;  %v1768_v23 = vld [vmem:[#allocation8 + $0x1c0] sm:$0xff]  ;;  %v2151_v25 = vld [vmem:[#allocation9 + $0x5b8] sm:$0xff] }
 0x35a   : > { %3216 = vmatmul.msk.f32.vlgmr.msrb.gmra.mxu3 %vm988_vm2, %v4088_v8  ;;  %2450 = vmatpush.msrb.mxu0 %v2198_v26  ;;  %v1824_v24 = vld [vmem:[#allocation8 + $0x380] sm:$0xff]  ;;  %v2207_v26 = vld [vmem:[#allocation9 + $0x778] sm:$0xff] }
 0x35b   : > { %2428 = vmatpush.msra.mxu3 %v2142_v27  ;;  %2468 = vmatpush.msrb.mxu1 %v2015_v28  ;;  %v1764_v27 = vld [vmem:[#allocation8 + $0x1a0] sm:$0xff] }
 0x35c   : > { %2490 = vmatpush.msrb.mxu2 %v2071_v29  ;;  %2451 = vmatpush.msrb.mxu0 %v2194_v30  ;;  %v1820_v28 = vld [vmem:[#allocation8 + $0x360] sm:$0xff]  ;;  %v2147_v29 = vld [vmem:[#allocation9 + $0x598] sm:$0xff] }
 0x35d   : > { %2429 = vmatpush.msra.mxu3 %v2138_v31  ;;  %2469 = vmatpush.msrb.mxu1 %v2011_v32  ;;  %v2203_v30 = vld [vmem:[#allocation9 + $0x758] sm:$0xff]  ;;  %v1760_v31 = vld [vmem:[#allocation8 + $0x180] sm:$0xff] }
 0x35e   : > { %2491 = vmatpush.msrb.mxu2 %v2067_v33  ;;  %2452 = vmatpush.msrb.mxu0 %v2190_v34  ;;  %v2143_v32 = vld [vmem:[#allocation9 + $0x578] sm:$0xff]  ;;  %v1756_v34 = vld [vmem:[#allocation8 + $0x160] sm:$0xff] }
 0x35f   : > { %2430 = vmatpush.msra.mxu3 %v2134_v36  ;;  %2470 = vmatpush.msrb.mxu1 %v2007_v37  ;;  %v2199_v33 = vld [vmem:[#allocation9 + $0x738] sm:$0xff]  ;;  %v1812_v36 = vld [vmem:[#allocation8 + $0x320] sm:$0xff] }
 0x360   : > { %2492 = vmatpush.msrb.mxu2 %v2063_v40  ;;  %2453 = vmatpush.msrb.mxu0 %v2186_v41  ;;  %v2139_v37 = vld [vmem:[#allocation9 + $0x558] sm:$0xff]  ;;  %v1752_v41 = vld [vmem:[#allocation8 + $0x140] sm:$0xff] }
 0x361   : > { %2431 = vmatpush.msra.mxu3 %v2130_v42  ;;  %2471 = vmatpush.msrb.mxu1 %v2003_v44  ;;  %v2195_v40 = vld [vmem:[#allocation9 + $0x718] sm:$0xff]  ;;  %v1808_v42 = vld [vmem:[#allocation8 + $0x300] sm:$0xff] }
 0x362   : > { %2493 = vmatpush.msrb.mxu2 %v2059_v46  ;;  %2454 = vmatpush.msrb.mxu0 %v2182_v47  ;;  %v2135_v44 = vld [vmem:[#allocation9 + $0x538] sm:$0xff]  ;;  %v1748_v47 = vld [vmem:[#allocation8 + $0x120] sm:$0xff] }
 0x363   : > { %2432 = vmatpush.msra.mxu3 %v2126_v48  ;;  %2472 = vmatpush.msrb.mxu1 %v1999_v50  ;;  %v2191_v46 = vld [vmem:[#allocation9 + $0x6f8] sm:$0xff]  ;;  %v1804_v48 = vld [vmem:[#allocation8 + $0x2e0] sm:$0xff] }
 0x364   : > { %2494 = vmatpush.msrb.mxu2 %v2055_v51  ;;  %2455 = vmatpush.msrb.mxu0 %v2178_v52  ;;  %v2131_v50 = vld [vmem:[#allocation9 + $0x518] sm:$0xff]  ;;  %v1744_v52 = vld [vmem:[#allocation8 + $0x100] sm:$0xff] }
 0x365   : > { %2433 = vmatpush.msra.mxu3 %v2122_v54  ;;  %2473 = vmatpush.msrb.mxu1 %v1995_v55  ;;  %v2187_v51 = vld [vmem:[#allocation9 + $0x6d8] sm:$0xff]  ;;  %v1800_v54 = vld [vmem:[#allocation8 + $0x2c0] sm:$0xff] }
 0x366   : > { %2495 = vmatpush.msrb.mxu2 %v2051_v56  ;;  %2456 = vmatpush.msrb.mxu0 %v2174_v35  ;;  %v2127_v55 = vld [vmem:[#allocation9 + $0x4f8] sm:$0xff]  ;;  %v1740_v35 = vld [vmem:[#allocation8 + $0xe0] sm:$0xff] }
 0x367   : > { %2434 = vmatpush.msra.mxu3 %v2118_v38  ;;  %2474 = vmatpush.msrb.mxu1 %v1991_v57  ;;  %v2183_v56 = vld [vmem:[#allocation9 + $0x6b8] sm:$0xff]  ;;  %v1796_v38 = vld [vmem:[#allocation8 + $0x2a0] sm:$0xff] }
 0x368   : > { %2496 = vmatpush.msrb.mxu2 %v2047_v58  ;;  %2457 = vmatpush.msrb.mxu0 %v2170_v43  ;;  %v2123_v57 = vld [vmem:[#allocation9 + $0x4d8] sm:$0xff]  ;;  %v1736_v43 = vld [vmem:[#allocation8 + $0xc0] sm:$0xff] }
 0x369   : > { %2435 = vmatpush.msra.mxu3 %v2114_v59  ;;  %2475 = vmatpush.msrb.mxu1 %v1987_v60  ;;  %v2179_v58 = vld [vmem:[#allocation9 + $0x698] sm:$0xff]  ;;  %v1792_v59 = vld [vmem:[#allocation8 + $0x280] sm:$0xff] }
 0x36a   : > { %2497 = vmatpush.msrb.mxu2 %v2043_v61  ;;  %2458 = vmatpush.msrb.mxu0 %v2166_v63  ;;  %v2119_v60 = vld [vmem:[#allocation9 + $0x4b8] sm:$0xff]  ;;  %v1732_v63 = vld [vmem:[#allocation8 + $0xa0] sm:$0xff] }
 0x36b   : > { %2436 = vmatpush.msra.mxu3 %v2110_v0  ;;  %2476 = vmatpush.msrb.mxu1 %v1983_v39  ;;  %v2175_v61 = vld [vmem:[#allocation9 + $0x678] sm:$0xff]  ;;  %v1788_v0 = vld [vmem:[#allocation8 + $0x260] sm:$0xff] }
 0x36c   : > { %2498 = vmatpush.msrb.mxu2 %v2039_v49  ;;  %2459 = vmatpush.msrb.mxu0 %v2162_v45  ;;  %v2115_v39 = vld [vmem:[#allocation9 + $0x498] sm:$0xff]  ;;  %v1728_v45 = vld [vmem:[#allocation8 + $0x80] sm:$0xff] }
 0x36d   : > { %2437 = vmatpush.msra.mxu3 %v2106_v53  ;;  %2477 = vmatpush.msrb.mxu1 %v1979_v3  ;;  %v2171_v49 = vld [vmem:[#allocation9 + $0x658] sm:$0xff]  ;;  %v1784_v53 = vld [vmem:[#allocation8 + $0x240] sm:$0xff] }
 0x36e   : > { %2499 = vmatpush.msrb.mxu2 %v2035_v5  ;;  %3221 = vmatmul.msk.f32.vlgmr.msrb.gmra.mxu0 %vm988_vm2, %v4079_v1  ;;  %v2111_v3 = vld [vmem:[#allocation9 + $0x478] sm:$0xff] }
 0x36f   : > { %3223 = vmatmul.msk.f32.vlgmr.msrb.gmra.mxu2 %vm988_vm2, %v4055_v6  ;;  %2524 = vmatpush.msra.mxu0 %v2223_v7  ;;  %v2211_v6 = vld [vmem:[#allocation9 + $0x798] sm:$0xff]  ;;  %v1724_v7 = vld [vmem:[#allocation8 + $0x60] sm:$0xff] }
 0x370   : > { %2564 = vmatpush.msra.mxu2 %v1836_v9  ;;  %2438 = vmatpush.msra.mxu3 %v2102_v10  ;;  %v2167_v5 = vld [vmem:[#allocation9 + $0x638] sm:$0xff]  ;;  %v1780_v9 = vld [vmem:[#allocation8 + $0x220] sm:$0xff] }
 0x371   : > { %2478 = vmatpush.msrb.mxu1 %v1975_v11  ;;  %2525 = vmatpush.msra.mxu0 %v2219_v12  ;;  %v2107_v10 = vld [vmem:[#allocation9 + $0x458] sm:$0xff]  ;;  %v1720_v12 = vld [vmem:[#allocation8 + $0x40] sm:$0xff] }
 0x372   : > { %2565 = vmatpush.msra.mxu2 %v1832_v13  ;;  %2439 = vmatpush.msra.mxu3 %v2098_v15  ;;  %v2163_v11 = vld [vmem:[#allocation9 + $0x618] sm:$0xff]  ;;  %v1776_v13 = vld [vmem:[#allocation8 + $0x200] sm:$0xff] }
 0x373   : > { %2479 = vmatpush.msrb.mxu1 %v1971_v17  ;;  %3220 = vmatmul.msk.f32.vlgmr.msra.gmra.mxu3 %vm988_vm2, %v4088_v8  ;;  %v1964_v15 = vld [vmem:[#allocation8 + $0x7e0] sm:$0xff]  ;;  %v1837_v17 = vld [vmem:[#allocation8 + $0x3e8] sm:$0xff] }
 0x374   : > { %3222 = vmatmul.msk.f32.vlgmr.msrb.gmra.mxu1 %vm988_vm2, %v4062_v16  ;;  %2504 = vmatpush.msrb.mxu3 %v2159_v18  ;;  %v1816_v16 = vld [vmem:[#allocation8 + $0x340] sm:$0xff]  ;;  %v2103_v18 = vld [vmem:[#allocation9 + $0x438] sm:$0xff] }
 0x375   : > { %2526 = vmatpush.msra.mxu0 %v2215_v19  ;;  %2544 = vmatpush.msra.mxu1 %v1772_v20  ;;  %v1716_v19 = vld [vmem:[#allocation8 + $0x20] sm:$0xff] }
 0x376   : > { %2566 = vmatpush.msra.mxu2 %v1828_v21  ;;  %2505 = vmatpush.msrb.mxu3 %v2155_v22  ;;  %v1960_v20 = vld [vmem:[#allocation8 + $0x7c0] sm:$0xff]  ;;  %v1833_v21 = vld [vmem:[#allocation8 + $0x3c8] sm:$0xff]  ;;  %v2099_v22 = vld [vmem:[#allocation9 + $0x418] sm:$0xff] }
 0x377   : > { %2527 = vmatpush.msra.mxu0 %v2211_v6  ;;  %2545 = vmatpush.msra.mxu1 %v1768_v23  ;;  %v1712_v6 = vld [vmem:[#allocation8] sm:$0xff] }
 0x378   : > { %2567 = vmatpush.msra.mxu2 %v1824_v24  ;;  %2506 = vmatpush.msrb.mxu3 %v2151_v25  ;;  %v1900_v23 = vld [vmem:[#allocation8 + $0x5e0] sm:$0xff]  ;;  %v1773_v25 = vld [vmem:[#allocation8 + $0x1e8] sm:$0xff] }
 0x379   : > { %2528 = vmatpush.msra.mxu0 %v2207_v26  ;;  %2546 = vmatpush.msra.mxu1 %v1764_v27  ;;  %v1956_v24 = vld [vmem:[#allocation8 + $0x7a0] sm:$0xff] }
 0x37a   : > { %2568 = vmatpush.msra.mxu2 %v1820_v28  ;;  %2507 = vmatpush.msrb.mxu3 %v2147_v29  ;;  %v1896_v26 = vld [vmem:[#allocation8 + $0x5c0] sm:$0xff]  ;;  %v1769_v28 = vld [vmem:[#allocation8 + $0x1c8] sm:$0xff] }
 0x37b   : > { %2529 = vmatpush.msra.mxu0 %v2203_v30  ;;  %2547 = vmatpush.msra.mxu1 %v1760_v31  ;;  %v1952_v27 = vld [vmem:[#allocation8 + $0x780] sm:$0xff]  ;;  %v1825_v29 = vld [vmem:[#allocation8 + $0x388] sm:$0xff] }
 0x37c   : > { %2569 = vmatpush.msra.mxu2 %v1816_v16  ;;  %2508 = vmatpush.msrb.mxu3 %v2143_v32  ;;  %v1892_v30 = vld [vmem:[#allocation8 + $0x5a0] sm:$0xff]  ;;  %v1765_v16 = vld [vmem:[#allocation8 + $0x1a8] sm:$0xff] }
 0x37d   : > { %2530 = vmatpush.msra.mxu0 %v2199_v33  ;;  %2548 = vmatpush.msra.mxu1 %v1756_v34  ;;  %v1948_v31 = vld [vmem:[#allocation8 + $0x760] sm:$0xff]  ;;  %v1821_v32 = vld [vmem:[#allocation8 + $0x368] sm:$0xff] }
 0x37e   : > { %2570 = vmatpush.msra.mxu2 %v1812_v36  ;;  %2509 = vmatpush.msrb.mxu3 %v2139_v37  ;;  %v1888_v33 = vld [vmem:[#allocation8 + $0x580] sm:$0xff]  ;;  %v1761_v34 = vld [vmem:[#allocation8 + $0x188] sm:$0xff] }
 0x37f   : > { %2531 = vmatpush.msra.mxu0 %v2195_v40  ;;  %2549 = vmatpush.msra.mxu1 %v1752_v41  ;;  %v1817_v36 = vld [vmem:[#allocation8 + $0x348] sm:$0xff]  ;;  %v1884_v37 = vld [vmem:[#allocation8 + $0x560] sm:$0xff] }
 0x380   : > { %2571 = vmatpush.msra.mxu2 %v1808_v42  ;;  %2510 = vmatpush.msrb.mxu3 %v2135_v44  ;;  %v1940_v40 = vld [vmem:[#allocation8 + $0x720] sm:$0xff]  ;;  %v1757_v41 = vld [vmem:[#allocation8 + $0x168] sm:$0xff] }
 0x381   : > { %2532 = vmatpush.msra.mxu0 %v2191_v46  ;;  %2550 = vmatpush.msra.mxu1 %v1748_v47  ;;  %v1813_v42 = vld [vmem:[#allocation8 + $0x328] sm:$0xff]  ;;  %v1880_v44 = vld [vmem:[#allocation8 + $0x540] sm:$0xff] }
 0x382   : > { %2572 = vmatpush.msra.mxu2 %v1804_v48  ;;  %2511 = vmatpush.msrb.mxu3 %v2131_v50  ;;  %v1936_v46 = vld [vmem:[#allocation8 + $0x700] sm:$0xff]  ;;  %v1753_v47 = vld [vmem:[#allocation8 + $0x148] sm:$0xff] }
 0x383   : > { %2533 = vmatpush.msra.mxu0 %v2187_v51  ;;  %2551 = vmatpush.msra.mxu1 %v1744_v52  ;;  %v1809_v48 = vld [vmem:[#allocation8 + $0x308] sm:$0xff]  ;;  %v1876_v50 = vld [vmem:[#allocation8 + $0x520] sm:$0xff] }
 0x384   : > { %2573 = vmatpush.msra.mxu2 %v1800_v54  ;;  %2512 = vmatpush.msrb.mxu3 %v2127_v55  ;;  %v1932_v51 = vld [vmem:[#allocation8 + $0x6e0] sm:$0xff]  ;;  %v1749_v52 = vld [vmem:[#allocation8 + $0x128] sm:$0xff] }
 0x385   : > { %2534 = vmatpush.msra.mxu0 %v2183_v56  ;;  %2552 = vmatpush.msra.mxu1 %v1740_v35  ;;  %v1805_v54 = vld [vmem:[#allocation8 + $0x2e8] sm:$0xff]  ;;  %v1872_v55 = vld [vmem:[#allocation8 + $0x500] sm:$0xff] }
 0x386   : > { %2574 = vmatpush.msra.mxu2 %v1796_v38  ;;  %2513 = vmatpush.msrb.mxu3 %v2123_v57  ;;  %v1928_v56 = vld [vmem:[#allocation8 + $0x6c0] sm:$0xff]  ;;  %v1745_v35 = vld [vmem:[#allocation8 + $0x108] sm:$0xff] }
 0x387   : > { %2535 = vmatpush.msra.mxu0 %v2179_v58  ;;  %2553 = vmatpush.msra.mxu1 %v1736_v43  ;;  %v1801_v38 = vld [vmem:[#allocation8 + $0x2c8] sm:$0xff]  ;;  %v1868_v57 = vld [vmem:[#allocation8 + $0x4e0] sm:$0xff] }
 0x388   : > { %2575 = vmatpush.msra.mxu2 %v1792_v59  ;;  %2514 = vmatpush.msrb.mxu3 %v2119_v60  ;;  %v1924_v58 = vld [vmem:[#allocation8 + $0x6a0] sm:$0xff]  ;;  %v1741_v43 = vld [vmem:[#allocation8 + $0xe8] sm:$0xff] }
 0x389   : > { %2536 = vmatpush.msra.mxu0 %v2175_v61  ;;  %2554 = vmatpush.msra.mxu1 %v1732_v63  ;;  %v1797_v59 = vld [vmem:[#allocation8 + $0x2a8] sm:$0xff]  ;;  %v1864_v60 = vld [vmem:[#allocation8 + $0x4c0] sm:$0xff] }
 0x38a   : > { %2576 = vmatpush.msra.mxu2 %v1788_v0  ;;  %2515 = vmatpush.msrb.mxu3 %v2115_v39  ;;  %v1920_v61 = vld [vmem:[#allocation8 + $0x680] sm:$0xff]  ;;  %v1737_v63 = vld [vmem:[#allocation8 + $0xc8] sm:$0xff] }
 0x38b   : > { %2537 = vmatpush.msra.mxu0 %v2171_v49  ;;  %2555 = vmatpush.msra.mxu1 %v1728_v45  ;;  %v1793_v0 = vld [vmem:[#allocation8 + $0x288] sm:$0xff]  ;;  %v1860_v39 = vld [vmem:[#allocation8 + $0x4a0] sm:$0xff] }
 0x38c   : > { %2577 = vmatpush.msra.mxu2 %v1784_v53  ;;  %2516 = vmatpush.msrb.mxu3 %v2111_v3  ;;  %v1916_v49 = vld [vmem:[#allocation8 + $0x660] sm:$0xff]  ;;  %v1733_v45 = vld [vmem:[#allocation8 + $0xa8] sm:$0xff] }
 0x38d   : > { %2538 = vmatpush.msra.mxu0 %v2167_v5  ;;  %2556 = vmatpush.msra.mxu1 %v1724_v7  ;;  %v1789_v53 = vld [vmem:[#allocation8 + $0x268] sm:$0xff]  ;;  %v1856_v3 = vld [vmem:[#allocation8 + $0x480] sm:$0xff] }
 0x38e   : > { %2578 = vmatpush.msra.mxu2 %v1780_v9  ;;  %2517 = vmatpush.msrb.mxu3 %v2107_v10  ;;  %v1912_v5 = vld [vmem:[#allocation8 + $0x640] sm:$0xff]  ;;  %v1729_v7 = vld [vmem:[#allocation8 + $0x88] sm:$0xff] }
 0x38f   : > { %2539 = vmatpush.msra.mxu0 %v2163_v11  ;;  %2557 = vmatpush.msra.mxu1 %v1720_v12  ;;  %v1785_v9 = vld [vmem:[#allocation8 + $0x248] sm:$0xff]  ;;  %v1852_v10 = vld [vmem:[#allocation8 + $0x460] sm:$0xff] }
 0x390   : > { %2579 = vmatpush.msra.mxu2 %v1776_v13  ;;  %3225 = vmatmul.msk.f32.vlgmr.msra.gmra.mxu0 %vm988_vm2, %v4079_v1  ;;  %v1829_v1 = vld [vmem:[#allocation8 + $0x3a8] sm:$0xff]  ;;  %v1908_v11 = vld [vmem:[#allocation8 + $0x620] sm:$0xff] }
 0x391   : > { %2580 = vmatmul.f32.vlgmr.msra.gmra.mxu2 %v4052_v2  ;;  %2604 = vmatpush.msrb.mxu0 %v1964_v15  ;;  %v1725_v12 = vld [vmem:[#allocation8 + $0x68] sm:$0xff]  ;;  %v1848_v15 = vld [vmem:[#allocation8 + $0x440] sm:$0xff] }
 0x392   : > { %2644 = vmatpush.msrb.mxu2 %v1837_v17  ;;  %2518 = vmatpush.msrb.mxu3 %v2103_v18  ;;  %v1781_v13 = vld [vmem:[#allocation8 + $0x228] sm:$0xff]  ;;  %v1904_v17 = vld [vmem:[#allocation8 + $0x600] sm:$0xff] }
 0x393   : > { %2558 = vmatpush.msra.mxu1 %v1716_v19  ;;  %2605 = vmatpush.msrb.mxu0 %v1960_v20  ;;  %v1721_v18 = vld [vmem:[#allocation8 + $0x48] sm:$0xff] }
 0x394   : > { %2645 = vmatpush.msrb.mxu2 %v1833_v21  ;;  %2519 = vmatpush.msrb.mxu3 %v2099_v22  ;;  %v1777_v19 = vld [vmem:[#allocation8 + $0x208] sm:$0xff]  ;;  %v1838_v21 = vld [vmem:[#allocation8 + $0x3f0] sm:$0xff]  ;;  %v1844_v22 = vld [vmem:[#allocation8 + $0x420] sm:$0xff] }
 0x395   : > { %2559 = vmatpush.msra.mxu1 %v1712_v6  ;;  %3224 = vmatmul.msk.f32.vlgmr.msrb.gmra.mxu3 %vm988_vm2, %v4088_v8  ;;  %v1944_v8 = vld [vmem:[#allocation8 + $0x740] sm:$0xff]  ;;  %v1965_v20 = vld [vmem:[#allocation8 + $0x7e8] sm:$0xff] }
 0x396   : > { %2560 = vmatmul.f32.vlgmr.msra.gmra.mxu1 %v4059_v14  ;;  %2584 = vmatpush.msra.mxu3 %v1900_v23  ;;  %v1717_v6 = vld [vmem:[#allocation8 + $0x28] sm:$0xff] }
 0x397   : > { %2606 = vmatpush.msrb.mxu0 %v1956_v24  ;;  %2624 = vmatpush.msrb.mxu1 %v1773_v25  ;;  %v1961_v23 = vld [vmem:[#allocation8 + $0x7c8] sm:$0xff]  ;;  %v1834_v24 = vld [vmem:[#allocation8 + $0x3d0] sm:$0xff]  ;;  %v1840_v25 = vld [vmem:[#allocation8 + $0x400] sm:$0xff] }
 0x398   : > { %2646 = vmatpush.msrb.mxu2 %v1829_v1  ;;  %2585 = vmatpush.msra.mxu3 %v1896_v26  ;;  %v1713_v1 = vld [vmem:[#allocation8 + $0x8] sm:$0xff] }
 0x399   : > { %2607 = vmatpush.msrb.mxu0 %v1952_v27  ;;  %2625 = vmatpush.msrb.mxu1 %v1769_v28  ;;  %v1901_v26 = vld [vmem:[#allocation8 + $0x5e8] sm:$0xff]  ;;  %v1774_v28 = vld [vmem:[#allocation8 + $0x1f0] sm:$0xff] }
 0x39a   : > { %2647 = vmatpush.msrb.mxu2 %v1825_v29  ;;  %2586 = vmatpush.msra.mxu3 %v1892_v30  ;;  %v1957_v27 = vld [vmem:[#allocation8 + $0x7a8] sm:$0xff]  ;;  %v1830_v29 = vld [vmem:[#allocation8 + $0x3b0] sm:$0xff] }
 0x39b   : > { %2608 = vmatpush.msrb.mxu0 %v1948_v31  ;;  %2626 = vmatpush.msrb.mxu1 %v1765_v16  ;;  %v1897_v30 = vld [vmem:[#allocation8 + $0x5c8] sm:$0xff]  ;;  %v1770_v16 = vld [vmem:[#allocation8 + $0x1d0] sm:$0xff] }
 0x39c   : > { %2648 = vmatpush.msrb.mxu2 %v1821_v32  ;;  %2587 = vmatpush.msra.mxu3 %v1888_v33  ;;  %v1953_v31 = vld [vmem:[#allocation8 + $0x788] sm:$0xff]  ;;  %v1826_v32 = vld [vmem:[#allocation8 + $0x390] sm:$0xff] }
 0x39d   : > { %2609 = vmatpush.msrb.mxu0 %v1944_v8  ;;  %2627 = vmatpush.msrb.mxu1 %v1761_v34  ;;  %v1893_v33 = vld [vmem:[#allocation8 + $0x5a8] sm:$0xff]  ;;  %v1766_v34 = vld [vmem:[#allocation8 + $0x1b0] sm:$0xff] }
 0x39e   : > { %2649 = vmatpush.msrb.mxu2 %v1817_v36  ;;  %2588 = vmatpush.msra.mxu3 %v1884_v37  ;;  %v1949_v8 = vld [vmem:[#allocation8 + $0x768] sm:$0xff]  ;;  %v1822_v36 = vld [vmem:[#allocation8 + $0x370] sm:$0xff] }
 0x39f   : > { %2610 = vmatpush.msrb.mxu0 %v1940_v40  ;;  %2628 = vmatpush.msrb.mxu1 %v1757_v41  ;;  %v1889_v37 = vld [vmem:[#allocation8 + $0x588] sm:$0xff]  ;;  %v1762_v41 = vld [vmem:[#allocation8 + $0x190] sm:$0xff] }
 0x3a0   : > { %2650 = vmatpush.msrb.mxu2 %v1813_v42  ;;  %2589 = vmatpush.msra.mxu3 %v1880_v44  ;;  %v1945_v40 = vld [vmem:[#allocation8 + $0x748] sm:$0xff]  ;;  %v1818_v42 = vld [vmem:[#allocation8 + $0x350] sm:$0xff] }
 0x3a1   : > { %2611 = vmatpush.msrb.mxu0 %v1936_v46  ;;  %2629 = vmatpush.msrb.mxu1 %v1753_v47  ;;  %v1885_v44 = vld [vmem:[#allocation8 + $0x568] sm:$0xff]  ;;  %v1758_v47 = vld [vmem:[#allocation8 + $0x170] sm:$0xff] }
 0x3a2   : > { %2651 = vmatpush.msrb.mxu2 %v1809_v48  ;;  %2590 = vmatpush.msra.mxu3 %v1876_v50  ;;  %v1941_v46 = vld [vmem:[#allocation8 + $0x728] sm:$0xff]  ;;  %v1814_v48 = vld [vmem:[#allocation8 + $0x330] sm:$0xff] }
 0x3a3   : > { %2612 = vmatpush.msrb.mxu0 %v1932_v51  ;;  %2630 = vmatpush.msrb.mxu1 %v1749_v52  ;;  %v1881_v50 = vld [vmem:[#allocation8 + $0x548] sm:$0xff]  ;;  %v1754_v52 = vld [vmem:[#allocation8 + $0x150] sm:$0xff] }
 0x3a4   : > { %2652 = vmatpush.msrb.mxu2 %v1805_v54  ;;  %2591 = vmatpush.msra.mxu3 %v1872_v55  ;;  %v1937_v51 = vld [vmem:[#allocation8 + $0x708] sm:$0xff]  ;;  %v1810_v54 = vld [vmem:[#allocation8 + $0x310] sm:$0xff] }
 0x3a5   : > { %2613 = vmatpush.msrb.mxu0 %v1928_v56  ;;  %2631 = vmatpush.msrb.mxu1 %v1745_v35  ;;  %v1877_v55 = vld [vmem:[#allocation8 + $0x528] sm:$0xff]  ;;  %v1750_v35 = vld [vmem:[#allocation8 + $0x130] sm:$0xff] }
 0x3a6   : > { %2653 = vmatpush.msrb.mxu2 %v1801_v38  ;;  %2592 = vmatpush.msra.mxu3 %v1868_v57  ;;  %v1933_v56 = vld [vmem:[#allocation8 + $0x6e8] sm:$0xff]  ;;  %v1806_v38 = vld [vmem:[#allocation8 + $0x2f0] sm:$0xff] }
 0x3a7   : > { %2614 = vmatpush.msrb.mxu0 %v1924_v58  ;;  %2632 = vmatpush.msrb.mxu1 %v1741_v43  ;;  %v1873_v57 = vld [vmem:[#allocation8 + $0x508] sm:$0xff]  ;;  %v1746_v43 = vld [vmem:[#allocation8 + $0x110] sm:$0xff] }
 0x3a8   : > { %2654 = vmatpush.msrb.mxu2 %v1797_v59  ;;  %2593 = vmatpush.msra.mxu3 %v1864_v60  ;;  %v1929_v58 = vld [vmem:[#allocation8 + $0x6c8] sm:$0xff]  ;;  %v1802_v59 = vld [vmem:[#allocation8 + $0x2d0] sm:$0xff] }
 0x3a9   : > { %2615 = vmatpush.msrb.mxu0 %v1920_v61  ;;  %2633 = vmatpush.msrb.mxu1 %v1737_v63  ;;  %v1869_v60 = vld [vmem:[#allocation8 + $0x4e8] sm:$0xff]  ;;  %v1742_v63 = vld [vmem:[#allocation8 + $0xf0] sm:$0xff] }
 0x3aa   : > { %2655 = vmatpush.msrb.mxu2 %v1793_v0  ;;  %2594 = vmatpush.msra.mxu3 %v1860_v39  ;;  %v1925_v61 = vld [vmem:[#allocation8 + $0x6a8] sm:$0xff]  ;;  %v1798_v0 = vld [vmem:[#allocation8 + $0x2b0] sm:$0xff] }
 0x3ab   : > { %2616 = vmatpush.msrb.mxu0 %v1916_v49  ;;  %2634 = vmatpush.msrb.mxu1 %v1733_v45  ;;  %v1865_v39 = vld [vmem:[#allocation8 + $0x4c8] sm:$0xff]  ;;  %v1738_v45 = vld [vmem:[#allocation8 + $0xd0] sm:$0xff] }
 0x3ac   : > { %2656 = vmatpush.msrb.mxu2 %v1789_v53  ;;  %2595 = vmatpush.msra.mxu3 %v1856_v3  ;;  %v1921_v49 = vld [vmem:[#allocation8 + $0x688] sm:$0xff]  ;;  %v1794_v53 = vld [vmem:[#allocation8 + $0x290] sm:$0xff] }
 0x3ad   : > { %2617 = vmatpush.msrb.mxu0 %v1912_v5  ;;  %2635 = vmatpush.msrb.mxu1 %v1729_v7  ;;  %v1861_v3 = vld [vmem:[#allocation8 + $0x4a8] sm:$0xff]  ;;  %v1734_v7 = vld [vmem:[#allocation8 + $0xb0] sm:$0xff] }
 0x3ae   : > { %2657 = vmatpush.msrb.mxu2 %v1785_v9  ;;  %2596 = vmatpush.msra.mxu3 %v1852_v10  ;;  %v1917_v5 = vld [vmem:[#allocation8 + $0x668] sm:$0xff]  ;;  %v1790_v9 = vld [vmem:[#allocation8 + $0x270] sm:$0xff] }
 0x3af   : > { %2618 = vmatpush.msrb.mxu0 %v1908_v11  ;;  %2636 = vmatpush.msrb.mxu1 %v1725_v12  ;;  %v1857_v10 = vld [vmem:[#allocation8 + $0x488] sm:$0xff]  ;;  %v1730_v12 = vld [vmem:[#allocation8 + $0x90] sm:$0xff] }
 0x3b0   : > { %2658 = vmatpush.msrb.mxu2 %v1781_v13  ;;  %2597 = vmatpush.msra.mxu3 %v1848_v15  ;;  %v1913_v11 = vld [vmem:[#allocation8 + $0x648] sm:$0xff]  ;;  %v1786_v13 = vld [vmem:[#allocation8 + $0x250] sm:$0xff] }
 0x3b1   : > { %2619 = vmatpush.msrb.mxu0 %v1904_v17  ;;  %2637 = vmatpush.msrb.mxu1 %v1721_v18  ;;  %v1853_v15 = vld [vmem:[#allocation8 + $0x468] sm:$0xff]  ;;  %v1726_v18 = vld [vmem:[#allocation8 + $0x70] sm:$0xff] }
 0x3b2   : > { %2659 = vmatpush.msrb.mxu2 %v1777_v19  ;;  %2620 = vmatmul.f32.vlgmr.msrb.gmra.mxu0 %v4076_v62  ;;  %v1909_v17 = vld [vmem:[#allocation8 + $0x628] sm:$0xff]  ;;  %v1782_v19 = vld [vmem:[#allocation8 + $0x230] sm:$0xff] }
 0x3b3   : > { %2660 = vmatmul.f32.vlgmr.msrb.gmra.mxu2 %v4052_v2  ;;  %2684 = vmatpush.msra.mxu0 %v1965_v20  ;;  %v1849_v20 = vld [vmem:[#allocation8 + $0x448] sm:$0xff] }
 0x3b4   : > { %2724 = vmatpush.msra.mxu2 %v1838_v21  ;;  %2598 = vmatpush.msra.mxu3 %v1844_v22  ;;  %v1905_v21 = vld [vmem:[#allocation8 + $0x608] sm:$0xff]  ;;  %v1722_v22 = vld [vmem:[#allocation8 + $0x50] sm:$0xff] }
 0x3b5   : > { %2638 = vmatpush.msrb.mxu1 %v1717_v6  ;;  %2685 = vmatpush.msra.mxu0 %v1961_v23  ;;  %v1778_v6 = vld [vmem:[#allocation8 + $0x210] sm:$0xff] }
 0x3b6   : > { %2725 = vmatpush.msra.mxu2 %v1834_v24  ;;  %2599 = vmatpush.msra.mxu3 %v1840_v25  ;;  %v1966_v23 = vld [vmem:[#allocation8 + $0x7f0] sm:$0xff]  ;;  %v1839_v24 = vld [vmem:[#allocation8 + $0x3f8] sm:$0xff]  ;;  %v1845_v25 = vld [vmem:[#allocation8 + $0x428] sm:$0xff] }
 0x3b7   : > { %2639 = vmatpush.msrb.mxu1 %v1713_v1  ;;  %2600 = vmatmul.f32.vlgmr.msra.gmra.mxu3 %v4083_v4  ;;  %v1718_v1 = vld [vmem:[#allocation8 + $0x30] sm:$0xff] }
 0x3b8   : > { %2640 = vmatmul.f32.vlgmr.msrb.gmra.mxu1 %v4059_v14  ;;  %2664 = vmatpush.msrb.mxu3 %v1901_v26  ;;  %v1962_v26 = vld [vmem:[#allocation8 + $0x7d0] sm:$0xff] }
 0x3b9   : > { %2686 = vmatpush.msra.mxu0 %v1957_v27  ;;  %2704 = vmatpush.msra.mxu1 %v1774_v28  ;;  %v1835_v27 = vld [vmem:[#allocation8 + $0x3d8] sm:$0xff]  ;;  %v1841_v28 = vld [vmem:[#allocation8 + $0x408] sm:$0xff] }
 0x3ba   : > { %2726 = vmatpush.msra.mxu2 %v1830_v29  ;;  %2665 = vmatpush.msrb.mxu3 %v1897_v30  ;;  %v1714_v29 = vld [vmem:[#allocation8 + $0x10] sm:$0xff] }
 0x3bb   : > { %2687 = vmatpush.msra.mxu0 %v1953_v31  ;;  %2705 = vmatpush.msra.mxu1 %v1770_v16  ;;  %v1902_v30 = vld [vmem:[#allocation8 + $0x5f0] sm:$0xff]  ;;  %v1775_v16 = vld [vmem:[#allocation8 + $0x1f8] sm:$0xff] }
 0x3bc   : > { %2727 = vmatpush.msra.mxu2 %v1826_v32  ;;  %2666 = vmatpush.msrb.mxu3 %v1893_v33  ;;  %v1958_v31 = vld [vmem:[#allocation8 + $0x7b0] sm:$0xff]  ;;  %v1831_v32 = vld [vmem:[#allocation8 + $0x3b8] sm:$0xff] }
 0x3bd   : > { %2688 = vmatpush.msra.mxu0 %v1949_v8  ;;  %2706 = vmatpush.msra.mxu1 %v1766_v34  ;;  %v1898_v33 = vld [vmem:[#allocation8 + $0x5d0] sm:$0xff]  ;;  %v1771_v34 = vld [vmem:[#allocation8 + $0x1d8] sm:$0xff] }
 0x3be   : > { %2728 = vmatpush.msra.mxu2 %v1822_v36  ;;  %2667 = vmatpush.msrb.mxu3 %v1889_v37  ;;  %v1954_v8 = vld [vmem:[#allocation8 + $0x790] sm:$0xff]  ;;  %v1827_v36 = vld [vmem:[#allocation8 + $0x398] sm:$0xff] }
 0x3bf   : > { %2689 = vmatpush.msra.mxu0 %v1945_v40  ;;  %2707 = vmatpush.msra.mxu1 %v1762_v41  ;;  %v1894_v37 = vld [vmem:[#allocation8 + $0x5b0] sm:$0xff]  ;;  %v1767_v41 = vld [vmem:[#allocation8 + $0x1b8] sm:$0xff] }
 0x3c0   : > { %2729 = vmatpush.msra.mxu2 %v1818_v42  ;;  %2668 = vmatpush.msrb.mxu3 %v1885_v44  ;;  %v1950_v40 = vld [vmem:[#allocation8 + $0x770] sm:$0xff]  ;;  %v1823_v42 = vld [vmem:[#allocation8 + $0x378] sm:$0xff] }
 0x3c1   : > { %2690 = vmatpush.msra.mxu0 %v1941_v46  ;;  %2708 = vmatpush.msra.mxu1 %v1758_v47  ;;  %v1890_v44 = vld [vmem:[#allocation8 + $0x590] sm:$0xff]  ;;  %v1763_v47 = vld [vmem:[#allocation8 + $0x198] sm:$0xff] }
 0x3c2   : > { %2730 = vmatpush.msra.mxu2 %v1814_v48  ;;  %2669 = vmatpush.msrb.mxu3 %v1881_v50  ;;  %v1946_v46 = vld [vmem:[#allocation8 + $0x750] sm:$0xff]  ;;  %v1819_v48 = vld [vmem:[#allocation8 + $0x358] sm:$0xff] }
 0x3c3   : > { %2691 = vmatpush.msra.mxu0 %v1937_v51  ;;  %2709 = vmatpush.msra.mxu1 %v1754_v52  ;;  %v1886_v50 = vld [vmem:[#allocation8 + $0x570] sm:$0xff]  ;;  %v1759_v52 = vld [vmem:[#allocation8 + $0x178] sm:$0xff] }
 0x3c4   : > { %2731 = vmatpush.msra.mxu2 %v1810_v54  ;;  %2670 = vmatpush.msrb.mxu3 %v1877_v55  ;;  %v1942_v51 = vld [vmem:[#allocation8 + $0x730] sm:$0xff]  ;;  %v1815_v54 = vld [vmem:[#allocation8 + $0x338] sm:$0xff] }
 0x3c5   : > { %2692 = vmatpush.msra.mxu0 %v1933_v56  ;;  %2710 = vmatpush.msra.mxu1 %v1750_v35  ;;  %v1882_v55 = vld [vmem:[#allocation8 + $0x550] sm:$0xff]  ;;  %v1755_v35 = vld [vmem:[#allocation8 + $0x158] sm:$0xff] }
 0x3c6   : > { %2732 = vmatpush.msra.mxu2 %v1806_v38  ;;  %2671 = vmatpush.msrb.mxu3 %v1873_v57  ;;  %v1938_v56 = vld [vmem:[#allocation8 + $0x710] sm:$0xff]  ;;  %v1811_v38 = vld [vmem:[#allocation8 + $0x318] sm:$0xff] }
 0x3c7   : > { %2693 = vmatpush.msra.mxu0 %v1929_v58  ;;  %2711 = vmatpush.msra.mxu1 %v1746_v43  ;;  %v1878_v57 = vld [vmem:[#allocation8 + $0x530] sm:$0xff]  ;;  %v1751_v43 = vld [vmem:[#allocation8 + $0x138] sm:$0xff] }
 0x3c8   : > { %2733 = vmatpush.msra.mxu2 %v1802_v59  ;;  %2672 = vmatpush.msrb.mxu3 %v1869_v60  ;;  %v1934_v58 = vld [vmem:[#allocation8 + $0x6f0] sm:$0xff]  ;;  %v1807_v59 = vld [vmem:[#allocation8 + $0x2f8] sm:$0xff] }
 0x3c9   : > { %2694 = vmatpush.msra.mxu0 %v1925_v61  ;;  %2712 = vmatpush.msra.mxu1 %v1742_v63  ;;  %v1874_v60 = vld [vmem:[#allocation8 + $0x510] sm:$0xff]  ;;  %v1747_v63 = vld [vmem:[#allocation8 + $0x118] sm:$0xff] }
 0x3ca   : > { %2734 = vmatpush.msra.mxu2 %v1798_v0  ;;  %2673 = vmatpush.msrb.mxu3 %v1865_v39  ;;  %v1930_v61 = vld [vmem:[#allocation8 + $0x6d0] sm:$0xff]  ;;  %v1803_v0 = vld [vmem:[#allocation8 + $0x2d8] sm:$0xff] }
 0x3cb   : > { %2695 = vmatpush.msra.mxu0 %v1921_v49  ;;  %2713 = vmatpush.msra.mxu1 %v1738_v45  ;;  %v1870_v39 = vld [vmem:[#allocation8 + $0x4f0] sm:$0xff]  ;;  %v1743_v45 = vld [vmem:[#allocation8 + $0xf8] sm:$0xff] }
 0x3cc   : > { %2735 = vmatpush.msra.mxu2 %v1794_v53  ;;  %2674 = vmatpush.msrb.mxu3 %v1861_v3  ;;  %v1926_v49 = vld [vmem:[#allocation8 + $0x6b0] sm:$0xff]  ;;  %v1799_v53 = vld [vmem:[#allocation8 + $0x2b8] sm:$0xff] }
 0x3cd   : > { %2696 = vmatpush.msra.mxu0 %v1917_v5  ;;  %2714 = vmatpush.msra.mxu1 %v1734_v7  ;;  %v1866_v3 = vld [vmem:[#allocation8 + $0x4d0] sm:$0xff]  ;;  %v1739_v7 = vld [vmem:[#allocation8 + $0xd8] sm:$0xff] }
 0x3ce   : > { %2736 = vmatpush.msra.mxu2 %v1790_v9  ;;  %2675 = vmatpush.msrb.mxu3 %v1857_v10  ;;  %v1922_v5 = vld [vmem:[#allocation8 + $0x690] sm:$0xff]  ;;  %v1795_v9 = vld [vmem:[#allocation8 + $0x298] sm:$0xff] }
 0x3cf   : > { %2697 = vmatpush.msra.mxu0 %v1913_v11  ;;  %2715 = vmatpush.msra.mxu1 %v1730_v12  ;;  %v1862_v10 = vld [vmem:[#allocation8 + $0x4b0] sm:$0xff]  ;;  %v1735_v12 = vld [vmem:[#allocation8 + $0xb8] sm:$0xff] }
 0x3d0   : > { %2737 = vmatpush.msra.mxu2 %v1786_v13  ;;  %2676 = vmatpush.msrb.mxu3 %v1853_v15  ;;  %v1918_v11 = vld [vmem:[#allocation8 + $0x670] sm:$0xff]  ;;  %v1791_v13 = vld [vmem:[#allocation8 + $0x278] sm:$0xff] }
 0x3d1   : > { %2698 = vmatpush.msra.mxu0 %v1909_v17  ;;  %2716 = vmatpush.msra.mxu1 %v1726_v18  ;;  %v1858_v15 = vld [vmem:[#allocation8 + $0x490] sm:$0xff]  ;;  %v1731_v18 = vld [vmem:[#allocation8 + $0x98] sm:$0xff] }
 0x3d2   : > { %2738 = vmatpush.msra.mxu2 %v1782_v19  ;;  %2677 = vmatpush.msrb.mxu3 %v1849_v20  ;;  %v1914_v17 = vld [vmem:[#allocation8 + $0x650] sm:$0xff]  ;;  %v1787_v19 = vld [vmem:[#allocation8 + $0x258] sm:$0xff] }
 0x3d3   : > { %2699 = vmatpush.msra.mxu0 %v1905_v21  ;;  %2717 = vmatpush.msra.mxu1 %v1722_v22  ;;  %v1854_v20 = vld [vmem:[#allocation8 + $0x470] sm:$0xff]  ;;  %v1727_v22 = vld [vmem:[#allocation8 + $0x78] sm:$0xff] }
 0x3d4   : > { %2739 = vmatpush.msra.mxu2 %v1778_v6  ;;  %2700 = vmatmul.f32.vlgmr.msra.gmra.mxu0 %v4076_v62  ;;  %v1910_v21 = vld [vmem:[#allocation8 + $0x630] sm:$0xff]  ;;  %v1783_v6 = vld [vmem:[#allocation8 + $0x238] sm:$0xff] }
 0x3d5   : > { %2740 = vmatmul.f32.vlgmr.msra.gmra.mxu2 %v4052_v2  ;;  %2764 = vmatpush.msrb.mxu0 %v1966_v23  ;;  %v1850_v23 = vld [vmem:[#allocation8 + $0x450] sm:$0xff] }
 0x3d6   : > { %2804 = vmatpush.msrb.mxu2 %v1839_v24  ;;  %2678 = vmatpush.msrb.mxu3 %v1845_v25  ;;  %v1906_v24 = vld [vmem:[#allocation8 + $0x610] sm:$0xff]  ;;  %v1723_v25 = vld [vmem:[#allocation8 + $0x58] sm:$0xff] }
 0x3d7   : > { %2718 = vmatpush.msra.mxu1 %v1718_v1  ;;  %2765 = vmatpush.msrb.mxu0 %v1962_v26  ;;  %v1779_v1 = vld [vmem:[#allocation8 + $0x218] sm:$0xff] }
 0x3d8   : > { %2805 = vmatpush.msrb.mxu2 %v1835_v27  ;;  %2679 = vmatpush.msrb.mxu3 %v1841_v28  ;;  %v1967_v26 = vld [vmem:[#allocation8 + $0x7f8] sm:$0xff]  ;;  %v1846_v27 = vld [vmem:[#allocation8 + $0x430] sm:$0xff] }
 0x3d9   : > { %2719 = vmatpush.msra.mxu1 %v1714_v29  ;;  %2680 = vmatmul.f32.vlgmr.msrb.gmra.mxu3 %v4083_v4  ;;  %v1719_v28 = vld [vmem:[#allocation8 + $0x38] sm:$0xff] }
 0x3da   : > { %2720 = vmatmul.f32.vlgmr.msra.gmra.mxu1 %v4059_v14  ;;  %2744 = vmatpush.msra.mxu3 %v1902_v30  ;;  %v1963_v29 = vld [vmem:[#allocation8 + $0x7d8] sm:$0xff]  ;;  %v1842_v30 = vld [vmem:[#allocation8 + $0x410] sm:$0xff] }
 0x3db   : > { %2766 = vmatpush.msrb.mxu0 %v1958_v31  ;;  %2784 = vmatpush.msrb.mxu1 %v1775_v16  ;;  %v1715_v31 = vld [vmem:[#allocation8 + $0x18] sm:$0xff] }
 0x3dc   : > { %2806 = vmatpush.msrb.mxu2 %v1831_v32  ;;  %2745 = vmatpush.msra.mxu3 %v1898_v33  ;;  %v1903_v16 = vld [vmem:[#allocation8 + $0x5f8] sm:$0xff] }
 0x3dd   : > { %2767 = vmatpush.msrb.mxu0 %v1954_v8  ;;  %2785 = vmatpush.msrb.mxu1 %v1771_v34  ;;  %v1959_v32 = vld [vmem:[#allocation8 + $0x7b8] sm:$0xff] }
 0x3de   : > { %2807 = vmatpush.msrb.mxu2 %v1827_v36  ;;  %2746 = vmatpush.msra.mxu3 %v1894_v37  ;;  %v1899_v33 = vld [vmem:[#allocation8 + $0x5d8] sm:$0xff] }
 0x3df   : > { %2768 = vmatpush.msrb.mxu0 %v1950_v40  ;;  %2786 = vmatpush.msrb.mxu1 %v1767_v41  ;;  %v1955_v8 = vld [vmem:[#allocation8 + $0x798] sm:$0xff] }
 0x3e0   : > { %2808 = vmatpush.msrb.mxu2 %v1823_v42  ;;  %2747 = vmatpush.msra.mxu3 %v1890_v44  ;;  %v1895_v34 = vld [vmem:[#allocation8 + $0x5b8] sm:$0xff] }
 0x3e1   : > { %2769 = vmatpush.msrb.mxu0 %v1946_v46  ;;  %2787 = vmatpush.msrb.mxu1 %v1763_v47  ;;  %v1891_v36 = vld [vmem:[#allocation8 + $0x598] sm:$0xff] }
 0x3e2   : > { %2809 = vmatpush.msrb.mxu2 %v1819_v48  ;;  %2748 = vmatpush.msra.mxu3 %v1886_v50  ;;  %v1947_v37 = vld [vmem:[#allocation8 + $0x758] sm:$0xff] }
 0x3e3   : > { %2770 = vmatpush.msrb.mxu0 %v1942_v51  ;;  %2788 = vmatpush.msrb.mxu1 %v1759_v52  ;;  %v1887_v40 = vld [vmem:[#allocation8 + $0x578] sm:$0xff] }
 0x3e4   : > { %2810 = vmatpush.msrb.mxu2 %v1815_v54  ;;  %2749 = vmatpush.msra.mxu3 %v1882_v55  ;;  %v1943_v41 = vld [vmem:[#allocation8 + $0x738] sm:$0xff] }
 0x3e5   : > { %2771 = vmatpush.msrb.mxu0 %v1938_v56  ;;  %2789 = vmatpush.msrb.mxu1 %v1755_v35  ;;  %v1883_v42 = vld [vmem:[#allocation8 + $0x558] sm:$0xff] }
 0x3e6   : > { %2811 = vmatpush.msrb.mxu2 %v1811_v38  ;;  %2750 = vmatpush.msra.mxu3 %v1878_v57  ;;  %v1939_v44 = vld [vmem:[#allocation8 + $0x718] sm:$0xff] }
 0x3e7   : > { %2772 = vmatpush.msrb.mxu0 %v1934_v58  ;;  %2790 = vmatpush.msrb.mxu1 %v1751_v43  ;;  %v1935_v46 = vld [vmem:[#allocation8 + $0x6f8] sm:$0xff] }
 0x3e8   : > { %2812 = vmatpush.msrb.mxu2 %v1807_v59  ;;  %2751 = vmatpush.msra.mxu3 %v1874_v60  ;;  %v1875_v47 = vld [vmem:[#allocation8 + $0x518] sm:$0xff] }
 0x3e9   : > { %2773 = vmatpush.msrb.mxu0 %v1930_v61  ;;  %2791 = vmatpush.msrb.mxu1 %v1747_v63  ;;  %v1931_v48 = vld [vmem:[#allocation8 + $0x6d8] sm:$0xff]  ;;  %v2241_v63 = vpop.f32.mrf.mxu1 }
 0x3ea   : > { %2813 = vmatpush.msrb.mxu2 %v1803_v0  ;;  %2752 = vmatpush.msra.mxu3 %v1870_v39  ;;  %v1871_v50 = vld [vmem:[#allocation8 + $0x4f8] sm:$0xff]  ;;  %v2261_v0 = vpop.f32.mrf.mxu2  ;;  %v2281_v39 = vpop.f32.mrf.mxu3 }
 0x3eb   : > { %2774 = vmatpush.msrb.mxu0 %v1926_v49  ;;  %2792 = vmatpush.msrb.mxu1 %v1743_v45  ;;  %v1927_v51 = vld [vmem:[#allocation8 + $0x6b8] sm:$0xff]  ;;  %v2301_v45 = vpop.f32.mrf.mxu0 }
 0x3ec   : > { %2814 = vmatpush.msrb.mxu2 %v1799_v53  ;;  %2753 = vmatpush.msra.mxu3 %v1866_v3  ;;  %v1867_v52 = vld [vmem:[#allocation8 + $0x4d8] sm:$0xff] }
 0x3ed   : > { %2775 = vmatpush.msrb.mxu0 %v1922_v5  ;;  %2793 = vmatpush.msrb.mxu1 %v1739_v7  ;;  %v1923_v54 = vld [vmem:[#allocation8 + $0x698] sm:$0xff] }
 0x3ee   : > { %2815 = vmatpush.msrb.mxu2 %v1795_v9  ;;  %2754 = vmatpush.msra.mxu3 %v1862_v10  ;;  %v1863_v55 = vld [vmem:[#allocation8 + $0x4b8] sm:$0xff] }
 0x3ef   : > { %2776 = vmatpush.msrb.mxu0 %v1918_v11  ;;  %2794 = vmatpush.msrb.mxu1 %v1735_v12  ;;  %v1919_v56 = vld [vmem:[#allocation8 + $0x678] sm:$0xff] }
 0x3f0   : > { %2816 = vmatpush.msrb.mxu2 %v1791_v13  ;;  %2755 = vmatpush.msra.mxu3 %v1858_v15  ;;  %v1859_v35 = vld [vmem:[#allocation8 + $0x498] sm:$0xff] }
 0x3f1   : > { %2777 = vmatpush.msrb.mxu0 %v1914_v17  ;;  %2795 = vmatpush.msrb.mxu1 %v1731_v18  ;;  %v1915_v38 = vld [vmem:[#allocation8 + $0x658] sm:$0xff]  ;;  %v2321_v49 = vpop.f32.mrf.mxu1 }
 0x3f2   : > { %2817 = vmatpush.msrb.mxu2 %v1787_v19  ;;  %2756 = vmatpush.msra.mxu3 %v1854_v20  ;;  %v1855_v57 = vld [vmem:[#allocation8 + $0x478] sm:$0xff]  ;;  %v2341_v53 = vpop.f32.mrf.mxu2  ;;  %v2361_v3 = vpop.f32.mrf.mxu3 }
 0x3f3   : > { %2778 = vmatpush.msrb.mxu0 %v1910_v21  ;;  %2796 = vmatpush.msrb.mxu1 %v1727_v22  ;;  %v1911_v58 = vld [vmem:[#allocation8 + $0x638] sm:$0xff]  ;;  %v2381_v9 = vpop.f32.mrf.mxu0  ;;  %v2342_v20 = vadd.f32 %v2341_v53, %v2321_v49 }
 0x3f4   : > { %2818 = vmatpush.msrb.mxu2 %v1783_v6  ;;  %2757 = vmatpush.msra.mxu3 %v1850_v23  ;;  %v1851_v43 = vld [vmem:[#allocation8 + $0x458] sm:$0xff] }
 0x3f5   : > { %2779 = vmatpush.msrb.mxu0 %v1906_v24  ;;  %2797 = vmatpush.msrb.mxu1 %v1723_v25  ;;  %v1907_v59 = vld [vmem:[#allocation8 + $0x618] sm:$0xff]  ;;  %v2362_v22 = vadd.f32 %v2361_v3, %v2342_v20  ;;  %v2262_v25 = vadd.f32 %v2261_v0, %v2241_v63 }
 0x3f6   : > { %2819 = vmatpush.msrb.mxu2 %v1779_v1  ;;  %2780 = vmatmul.f32.vlgmr.msrb.gmra.mxu0 %v4076_v62  ;;  %v1847_v60 = vld [vmem:[#allocation8 + $0x438] sm:$0xff] }
 0x3f7   : > { %2820 = vmatmul.f32.vlgmr.msrb.gmra.mxu2 %v4052_v2  ;;  %2844 = vmatpush.msra.mxu0 %v1967_v26  ;;  %v1951_v2 = vld [vmem:[#allocation8 + $0x778] sm:$0xff]  ;;  %v2382_v26 = vadd.f32 %v2381_v9, %v2362_v22 }
 0x3f8   : > { %2758 = vmatpush.msra.mxu3 %v1846_v27  ;;  %2798 = vmatpush.msrb.mxu1 %v1719_v28  ;;  %v1843_v61 = vld [vmem:[#allocation8 + $0x418] sm:$0xff]  ;;  %v2282_v27 = vadd.f32 %v2281_v39, %v2262_v25 }
 0x3f9   : > { %2845 = vmatpush.msra.mxu0 %v1963_v29  ;;  %v2401_v5 = vpop.f32.mrf.mxu1 }
 0x3fa   : > { %2759 = vmatpush.msra.mxu3 %v1842_v30  ;;  %2799 = vmatpush.msrb.mxu1 %v1715_v31  ;;  %v2421_v7 = vpop.f32.mrf.mxu2  ;;  %v2441_v10 = vpop.f32.mrf.mxu3 }
 0x3fb   : > { %2760 = vmatmul.f32.vlgmr.msra.gmra.mxu3 %v4083_v4  ;;  %2800 = vmatmul.f32.vlgmr.msrb.gmra.mxu1 %v4059_v14  ;;  %v1879_v14 = vld [vmem:[#allocation8 + $0x538] sm:$0xff]  ;;  %v2461_v12 = vpop.f32.mrf.mxu0  ;;  %v2422_v21 = vadd.f32 %v2421_v7, %v2401_v5 }
 0x3fc   : > { %2824 = vmatpush.msrb.mxu3 %v1903_v16  ;;  %2846 = vmatpush.msra.mxu0 %v1959_v32  ;;  %v2302_v16 = vadd.f32 %v2301_v45, %v2282_v27 }
 0x3fd   : > { %v2442_v24 = vadd.f32 %v2441_v10, %v2422_v21 }
 0x3fe   : > { %2825 = vmatpush.msrb.mxu3 %v1899_v33  ;;  %2847 = vmatpush.msra.mxu0 %v1955_v8 }
 0x3ff   : > { %v2462_v30 = vadd.f32 %v2461_v12, %v2442_v24 }
 0x400   : > { %2826 = vmatpush.msrb.mxu3 %v1895_v34  ;;  %2848 = vmatpush.msra.mxu0 %v1951_v2 }
 0x401   : > { %v2481_v11 = vpop.f32.mrf.mxu1 }
 0x402   : > { %2827 = vmatpush.msrb.mxu3 %v1891_v36  ;;  %2849 = vmatpush.msra.mxu0 %v1947_v37  ;;  %v2501_v13 = vpop.f32.mrf.mxu2 }
 0x404   : > { %2828 = vmatpush.msrb.mxu3 %v1887_v40  ;;  %2850 = vmatpush.msra.mxu0 %v1943_v41 }
 0x406   : > { %2829 = vmatpush.msrb.mxu3 %v1883_v42  ;;  %2851 = vmatpush.msra.mxu0 %v1939_v44  ;;  %v2864_v42 = vld [vmem:[%s4185_s15] sm:$0xf] }
 0x407   : > { %v2869_v9 = vperm.slane %v2864_v42, 3 }
 0x408   : > { %2830 = vmatpush.msrb.mxu3 %v1879_v14  ;;  %2852 = vmatpush.msra.mxu0 %v1935_v46  ;;  %v2867_v14 = vperm.slane %v2864_v42, 1 }
 0x40a   : > { %2831 = vmatpush.msrb.mxu3 %v1875_v47  ;;  %2853 = vmatpush.msra.mxu0 %v1931_v48 }
 0x40c   : > { %2832 = vmatpush.msrb.mxu3 %v1871_v50  ;;  %2854 = vmatpush.msra.mxu0 %v1927_v51  ;;  %v2868_v50 = vperm.slane %v2864_v42, 2 }
 0x40d   : > { %v2541_v17 = vpop.f32.mrf.mxu0 }
 0x40e   : > { %2833 = vmatpush.msrb.mxu3 %v1867_v52  ;;  %2855 = vmatpush.msra.mxu0 %v1923_v54  ;;  %v2866_v54 = vperm.slane %v2864_v42, 0 }
 0x410   : > { %2834 = vmatpush.msrb.mxu3 %v1863_v55  ;;  %2856 = vmatpush.msra.mxu0 %v1919_v56 }
 0x412   : > { %2835 = vmatpush.msrb.mxu3 %v1859_v35  ;;  %2857 = vmatpush.msra.mxu0 %v1915_v38  ;;  %v2502_v38 = vadd.f32 %v2501_v13, %v2481_v11 }
 0x413   : > { %v2561_v15 = vpop.f32.mrf.mxu1 }
 0x414   : > { %2836 = vmatpush.msrb.mxu3 %v1855_v57  ;;  %2858 = vmatpush.msra.mxu0 %v1911_v58  ;;  %v2581_v18 = vpop.f32.mrf.mxu2  ;;  %v2562_v34 = vadd.f32 %v2561_v15, %v2302_v16 }
 0x416   : > { %2837 = vmatpush.msrb.mxu3 %v1851_v43  ;;  %2859 = vmatpush.msra.mxu0 %v1907_v59  ;;  %v2582_v41 = vadd.f32 %v2581_v18, %v2562_v34 }
 0x417   : > { %2860 = vmatmul.f32.vlgmr.msra.gmra.mxu0 %v4076_v62 }
 0x418   : > { %2838 = vmatpush.msrb.mxu3 %v1847_v60  ;;  %v2521_v62 = vpop.f32.mrf.mxu3 }
 0x419   : > { %v2522_v58 = vadd.f32 %v2521_v62, %v2502_v38 }
 0x41a   : > { %2839 = vmatpush.msrb.mxu3 %v1843_v61 }
 0x41b   : > { %2840 = vmatmul.f32.vlgmr.msrb.gmra.mxu3 %v4083_v4  ;;  %v2542_v60 = vadd.f32 %v2541_v17, %v2522_v58 }
 0x42f   : > { %v2621_v6 = vpop.f32.mrf.mxu0 }
 0x435   : > { %v2641_v4 = vpop.f32.mrf.mxu1 }
 0x436   : > { %v2661_v23 = vpop.f32.mrf.mxu2  ;;  %v2642_v29 = vadd.f32 %v2641_v4, %v2382_v26 }
 0x438   : > { %v2662_v8 = vadd.f32 %v2661_v23, %v2642_v29 }
 0x43a   : > { %v2601_v19 = vpop.f32.mrf.mxu3 }
 0x43b   : > { %v2602_v46 = vadd.f32 %v2601_v19, %v2582_v41 }
 0x43d   : > { %v2622_v52 = vadd.f32 %v2621_v6, %v2602_v46 }
 0x43f   : > { %v2874_v35 = vadd.f32 %v2866_v54, %v2622_v52 }
 0x441   : > { %v3226_v43 = vmul.f32 -1.442695, %v2874_v35 }
 0x451   : > { %v2701_v32 = vpop.f32.mrf.mxu0 }
 0x457   : > { %v2721_v28 = vpop.f32.mrf.mxu1 }
 0x458   : > { %v2722_v31 = vadd.f32 %v2721_v28, %v2462_v30  ;;  %v2741_v33 = vpop.f32.mrf.mxu2 }
 0x45a   : > { %v2742_v36 = vadd.f32 %v2741_v33, %v2722_v31 }
 0x45c   : > { %v2681_v1 = vpop.f32.mrf.mxu3 }
 0x45d   : > { %v2682_v37 = vadd.f32 %v2681_v1, %v2662_v8 }
 0x45f   : > { %v2702_v44 = vadd.f32 %v2701_v32, %v2682_v37 }
 0x461   : > { %v2875_v51 = vadd.f32 %v2867_v14, %v2702_v44 }
 0x463   : > { %v3227_v56 = vmul.f32 -1.442695, %v2875_v51 }
 0x465   : > { %3289 = vpow2.f32 %v3227_v56 }
 0x46b   : > { %v3290_v61 = vpop.eup %3289 }
 0x46c   : > { %v2891_v49 = vadd.f32 1.0, %v3290_v61 }
 0x46e   : > { %v2918_v29 = vand.u32 2147483647, %v2891_v49  ;;  %v2920_v30 = vand.u32 2147483648, %v2891_v49  ;;  %vm2914_vm5 = vweird.f32 %v2891_v49 }
 0x470   : > { %vm2919_vm10 = vcmp.eq.f32.partialorder %v2918_v29, 8.507059e+37  ;;  %v2921_v37 = vor.u32 1.1754944e-38, %v2920_v30 }
 0x473   : > { %v2781_v47 = vpop.f32.mrf.mxu0 }
 0x478   : > { %v2801_v59 = vpop.f32.mrf.mxu1 }
 0x479   : > { %v2802_v63 = vadd.f32 %v2801_v59, %v2542_v60 }
 0x47a   : > { %v2821_v0 = vpop.f32.mrf.mxu2 }
 0x47b   : > { %v2822_v45 = vadd.f32 %v2821_v0, %v2802_v63 }
 0x47e   : > { %v2761_v2 = vpop.f32.mrf.mxu3 }
 0x47f   : > { %v2762_v40 = vadd.f32 %v2761_v2, %v2742_v36 }
 0x481   : > { %v2782_v48 = vadd.f32 %v2781_v47, %v2762_v40 }
 0x483   : > { %v2876_v55 = vadd.f32 %v2868_v50, %v2782_v48 }
 0x485   : > { %v3228_v57 = vmul.f32 -1.442695, %v2876_v55 }
 0x487   : > { %3291 = vpow2.f32 %v3228_v57 }
 0x488   : > { %3293 = vpow2.f32 %v3226_v43 }
 0x489   : > { %3295 = vrcp.f32 %v2891_v49 }
 0x48d   : > { %v3292_v39 = vpop.eup %3291 }
 0x48e   : > { %v3294_v53 = vpop.eup %3293  ;;  %v2892_v3 = vadd.f32 1.0, %v3292_v39 }
 0x48f   : > { %v4129_v11 = vadd.f32 1.0, %v3294_v53  ;;  %v3296_v15 = vpop.eup %3295 }
 0x490   : > { %3297 = vrcp.f32 %v2892_v3  ;;  %v2910_v18 = vmul.f32 %v3296_v15, %v2891_v49  ;;  %vm2915_vm4 = vweird.f32 %v3296_v15  ;;  %v2935_v33 = vand.u32 2147483648, %v2892_v3 }
 0x491   : > { %3299 = vrcp.f32 %v4129_v11  ;;  %vm4138_vm8 = vmor %vm2914_vm5, %vm2915_vm4  ;;  %vm2929_vm9 = vweird.f32 %v2892_v3  ;;  %v2933_v34 = vand.u32 2147483647, %v2892_v3  ;;  %vm2899_vm13 = vweird.f32 %v4129_v11 }
 0x492   : > { %v2911_v21 = vsub.f32 1.0, %v2910_v18  ;;  %v2905_v46 = vand.u32 2147483648, %v4129_v11  ;;  %v2936_v48 = vor.u32 1.1754944e-38, %v2935_v33  ;;  %v2903_v51 = vand.u32 2147483647, %v4129_v11 }
 0x493   : > { %vm2934_vm15 = vcmp.eq.f32.partialorder %v2933_v34, 8.507059e+37  ;;  %vm2963_vm4 = vcmask 1045508  }
 0x494   : > { %v2861_v10 = vpop.f32.mrf.mxu0  ;;  %v2912_v24 = vmul.f32 %v3296_v15, %v2911_v21  ;;  %v2906_v57 = vor.u32 1.1754944e-38, %v2905_v46  ;;  %vm2904_vm5 = vcmp.eq.f32.partialorder %v2903_v51, 8.507059e+37 }
 0x496   : > { %v3298_v17 = vpop.eup %3297  ;;  %v2913_v26 = vadd.f32 %v3296_v15, %v2912_v24 }
 0x497   : > { %v4132_v19 = vpop.eup %3299  ;;  %v2925_v4 = vmul.f32 %v3298_v17, %v2892_v3  ;;  %vm2930_vm6 = vweird.f32 %v3298_v17 }
 0x498   : > { %v2895_v22 = vmul.f32 %v4132_v19, %v4129_v11  ;;  %vm2900_vm7 = vweird.f32 %v4132_v19  ;;  %v2917_v8 = vsel %vm4138_vm8, %v3296_v15, %v2913_v26  ;;  %vm4145_vm11 = vmor %vm2929_vm9, %vm2930_vm6  ;;  %vm2965_vm6 = vcmask 1043456  }
 0x499   : > { %v2926_v23 = vsub.f32 1.0, %v2925_v4  ;;  %v2922_v47 = vsel %vm2919_vm10, %v2921_v37, %v2917_v8  ;;  %vm4155_vm14 = vmor %vm2899_vm13, %vm2900_vm7 }
 0x49a   : > { %v2896_v25 = vsub.f32 1.0, %v2895_v22  ;;  %v2958_v35 = vrot.slane %v2922_v47, 6 }
 0x49b   : > { %v2927_v1 = vmul.f32 %v3298_v17, %v2926_v23 }
 0x49c   : > { %v2897_v28 = vmul.f32 %v4132_v19, %v2896_v25 }
 0x49d   : > { %v2928_v31 = vadd.f32 %v3298_v17, %v2927_v1 }
 0x49e   : > { %v2841_v5 = vpop.f32.mrf.mxu3  ;;  %v2898_v36 = vadd.f32 %v4132_v19, %v2897_v28 }
 0x49f   : > { %v2842_v7 = vadd.f32 %v2841_v5, %v2822_v45  ;;  %v2932_v42 = vsel %vm4145_vm11, %v3298_v17, %v2928_v31 }
 0x4a0   : > { %v2937_v54 = vsel %vm2934_vm15, %v2936_v48, %v2932_v42  ;;  %v2902_v56 = vsel %vm4155_vm14, %v4132_v19, %v2898_v36 }
 0x4a1   : > { %v2862_v12 = vadd.f32 %v2861_v10, %v2842_v7  ;;  %v2959_v43 = vrot.slane %v2937_v54, 4  ;;  %v2907_v60 = vsel %vm2904_vm5, %v2906_v57, %v2902_v56 }
 0x4a2   : > { %v2962_v61 = vsel %vm2961_vm3, %v2907_v60, %v2958_v35 }
 0x4a3   : > { %v2877_v13 = vadd.f32 %v2869_v9, %v2862_v12 }
 0x4a5   : > { %v3229_v62 = vmul.f32 -1.442695, %v2877_v13 }
 0x4a7   : > { %3301 = vpow2.f32 %v3229_v62 }
 0x4ad   : > { %v3302_v20 = vpop.eup %3301 }
 0x4ae   : > { %v2893_v6 = vadd.f32 1.0, %v3302_v20 }
 0x4b0   : > { %3303 = vrcp.f32 %v2893_v6  ;;  %v2950_v41 = vand.u32 2147483648, %v2893_v6  ;;  %v2948_v14 = vand.u32 2147483647, %v2893_v6  ;;  %vm2944_vm0 = vweird.f32 %v2893_v6 }
 0x4b2   : > { %v2951_v55 = vor.u32 1.1754944e-38, %v2950_v41  ;;  %vm2949_vm2 = vcmp.eq.f32.partialorder %v2948_v14, 8.507059e+37 }
 0x4b6   : > { %v3304_v27 = vpop.eup %3303 }
 0x4b7   : > { %v2940_v16 = vmul.f32 %v3304_v27, %v2893_v6  ;;  %vm2945_vm12 = vweird.f32 %v3304_v27 }
 0x4b8   : > { %vm2946_vm1 = vmor %vm2944_vm0, %vm2945_vm12 }
 0x4b9   : > { %v2941_v2 = vsub.f32 1.0, %v2940_v16 }
 0x4bb   : > { %v2942_v44 = vmul.f32 %v3304_v27, %v2941_v2 }
 0x4bd   : > { %v2943_v52 = vadd.f32 %v3304_v27, %v2942_v44 }
 0x4bf   : > { %v2947_v38 = vsel %vm2946_vm1, %v3304_v27, %v2943_v52 }
 0x4c0   : > { %v2952_v58 = vsel %vm2949_vm2, %v2951_v55, %v2947_v38 }
 0x4c1   : > { %v2960_v59 = vrot.slane %v2952_v58, 2 }
 0x4c3   : > { %v2964_v63 = vsel %vm2963_vm4, %v2959_v43, %v2960_v59 }
 0x4c4   : > { %v2966_v0 = vsel %vm2965_vm6, %v2962_v61, %v2964_v63 }
 0x4c5   : > { %2968 = vst [vmem:[%s626_s26] sm:$0xff] %v2966_v0 }
 0x4c6 PF: > { %s4209_s25 = sld [smem:[#allocation14_spill]] }
 0x4cc   : > { %s31_s24 = sadd.s32 1, %s4209_s25  }
 0x4cd   : > { %p28_p7 = scmp.ge.s32.totalorder %s31_s24, 4  }
 0x4cf   :  { %30 = sbr.rel (!%p28_p7) target bundleno = 9 (0x9), region = 155 }
 0x4d4   :  { %3004 = vsyncpa [#allocation5], 1 }
 0x4d5   :  { %3006 = vsyncpa [#allocation5 + $0x1], 1 }
 0x4d6   :  { %3007 = vsyncpa [#allocation7], 1 }
 0x4d7   :  { %3008 = vsyncpa [#allocation10], 1 }

</bundles_post_ra>
